<compile_context>
chip_gen: v7x
topology: tpu7x:2x2x1
jax: 0.10.0
libtpu: 0.0.40
codegen_flags: <defaults>
</compile_context>

<pallas_src>
import numpy as np
import jax
import jax.numpy as jnp
from jax.experimental import pallas as pl
from jax.experimental.pallas import tpu as pltpu


def _pick_seq_tile(s, bytes_per_frame, budget_bytes):
    """Largest divisor of s whose (in + out) frame tile fits the byte budget."""
    best = 1
    for ts in range(1, s + 1):
        if s % ts == 0 and ts * bytes_per_frame <= budget_bytes:
            best = ts
    return best


class SetBlockWrapper:
    """JAX/Pallas port of OpenGait's SetBlockWrapper.

    `block_fn(frames, *params)` maps a frame batch [B, c_in, h, w] ->
    [B, c_out, h_out, w_out] and must be per-frame independent (true for the
    conv / pool / activation blocks SetBlockWrapper wraps in OpenGait).
    `params` are traced arrays (weights / biases) passed into the kernel as
    extra pallas_call inputs with constant index_maps.
    """
    # TODO(synk): arbitrary runtime *args/**kwargs of the PyTorch forward are
    # only supported as traced arrays in `params` or statically via closure.

    def __init__(self, block_fn, params=(), *,
                 seq_tile_budget_bytes=8 << 20,
                 vmem_limit_bytes=32 * 1024 * 1024):
        self.block_fn = block_fn
        self.params = tuple(params)
        self.seq_tile_budget_bytes = seq_tile_budget_bytes
        self.vmem_limit_bytes = vmem_limit_bytes

    def __call__(self, x):
        n, c, s, h, w = x.shape
        in_dtype = np.dtype(x.dtype)

        # Per-frame output shape/dtype via abstract evaluation (no FLOPs).
        frame_aval = jax.ShapeDtypeStruct((1, c, h, w), x.dtype)
        out_aval = jax.eval_shape(self.block_fn, frame_aval, *self.params)
        _, c_out, h_out, w_out = out_aval.shape
        out_dtype = np.dtype(out_aval.dtype)

        in_frame_bytes = c * h * w * in_dtype.itemsize
        out_frame_bytes = c_out * h_out * w_out * out_dtype.itemsize
        ts = _pick_seq_tile(s, in_frame_bytes + out_frame_bytes,
                            self.seq_tile_budget_bytes)
        grid = (n, s // ts)

        n_params = len(self.params)
        block_fn = self.block_fn

        def kernel(x_ref, *rest):
            param_refs = rest[:n_params]
            o_ref = rest[n_params]
            xt = x_ref[0]                              # [c, ts, h, w]
            frames = jnp.transpose(xt, (1, 0, 2, 3))   # [ts, c, h, w] (non-minor permute)
            pvals = [p_ref[...] for p_ref in param_refs]
            y = block_fn(frames, *pvals)               # [ts, c_out, h_out, w_out]
            o_ref[0] = jnp.transpose(y, (1, 0, 2, 3)).astype(o_ref.dtype)

        in_specs = [pl.BlockSpec((1, c, ts, h, w),
                                 lambda i, j: (i, 0, j, 0, 0))]
        for p in self.params:
            rank = len(p.shape)
            in_specs.append(
                pl.BlockSpec(tuple(p.shape), lambda i, j, _r=rank: (0,) * _r))

        out_spec = pl.BlockSpec((1, c_out, ts, h_out, w_out),
                                lambda i, j: (i, 0, j, 0, 0))

        param_bytes = sum(int(np.prod(p.shape)) * np.dtype(p.dtype).itemsize
                          for p in self.params)
        cost = pl.CostEstimate(
            flops=n * s * (c * h * w + c_out * h_out * w_out),   # rough, advisory
            transcendentals=0,
            bytes_accessed=n * s * (in_frame_bytes + out_frame_bytes) + param_bytes,
        )

        return pl.pallas_call(
            kernel,
            out_shape=jax.ShapeDtypeStruct((n, c_out, s, h_out, w_out),
                                           out_aval.dtype),
            grid=grid,
            in_specs=in_specs,
            out_specs=out_spec,
            compiler_params=pltpu.CompilerParams(
                dimension_semantics=("parallel", "parallel"),
                vmem_limit_bytes=self.vmem_limit_bytes),
            cost_estimate=cost,
        )(x, *self.params)


def conv1x1_leaky_relu(frames, weight, bias):
    """Demo forward_block (BasicConv2d-style 1x1 conv + LeakyReLU).

    frames: [B, c_in, h, w]; weight: [c_out, c_in]; bias: [c_out, 1].
    Returns [B, c_out, h, w].
    """
    B, c, h, w = frames.shape
    x2 = frames.reshape(B, c, h * w)                               # [B, c, h*w]
    y2 = jnp.einsum('oc,bcf->bof', weight, x2,
                    preferred_element_type=jnp.float32)            # [B, c_out, h*w]
    y2 = y2 + bias[None, :, :]
    y2 = jnp.where(y2 > 0, y2, 0.01 * y2)                          # LeakyReLU(0.01)
    return y2.reshape(B, weight.shape[0], h, w).astype(frames.dtype)


if __name__ == "__main__":
    key = jax.random.PRNGKey(0)
    k1, k2, k3 = jax.random.split(key, 3)

    n, c, s, h, w = 2, 4, 8, 16, 16
    c_out = 8
    x = jax.random.normal(k1, (n, c, s, h, w), dtype=jnp.float32)
    weight = jax.random.normal(k2, (c_out, c), dtype=jnp.float32) * 0.1
    bias = jax.random.normal(k3, (c_out, 1), dtype=jnp.float32) * 0.1

    wrapper = SetBlockWrapper(conv1x1_leaky_relu, params=(weight, bias))
    out = jax.block_until_ready(wrapper(x))

    # Pure-JAX reference mirroring the PyTorch SetBlockWrapper exactly.
    frames = jnp.transpose(x, (0, 2, 1, 3, 4)).reshape(n * s, c, h, w)
    y = conv1x1_leaky_relu(frames, weight, bias)
    ref = jnp.transpose(y.reshape(n, s, *y.shape[1:]), (0, 2, 1, 3, 4))

    assert out.shape == ref.shape, (out.shape, ref.shape)
    np.testing.assert_allclose(np.asarray(out), np.asarray(ref),
                               rtol=1e-5, atol=1e-5)
    print("KERNEL_OK")
</pallas_src>

<mosaic_0001>
module attributes {stable_mosaic.version = 11 : i64} {
  func.func @kernel(%arg0: i32, %arg1: i32, %arg2: memref<1x4x8x16x16xf32, #tpu.memory_space<vmem>>, %arg3: memref<8x4xf32, #tpu.memory_space<vmem>>, %arg4: memref<8x1xf32, #tpu.memory_space<vmem>>, %arg5: memref<1x8x8x16x16xf32, #tpu.memory_space<vmem>>) attributes {dimension_semantics = [#tpu.dimension_semantics<parallel>, #tpu.dimension_semantics<parallel>], iteration_bounds = array<i64: 2, 1>, scalar_prefetch = 0 : i64, scratch_operands = 0 : i64, tpu.core_type = #tpu.core_type<tc>, window_params = [{transform_indices = @transform_0, window_bounds = array<i64: 1, 4, 8, 16, 16>}, {pipeline_mode = #tpu.pipeline_mode<synchronous>, transform_indices = @transform_1, window_bounds = array<i64: 8, 4>}, {pipeline_mode = #tpu.pipeline_mode<synchronous>, transform_indices = @transform_2, window_bounds = array<i64: 8, 1>}, {transform_indices = @transform_3, window_bounds = array<i64: 1, 8, 8, 16, 16>}]} {
    %c0 = arith.constant 0 : index
    %c0_0 = arith.constant 0 : index
    %c0_1 = arith.constant 0 : index
    %c0_2 = arith.constant 0 : index
    %c0_3 = arith.constant 0 : index
    %0 = vector.load %arg2[%c0, %c0_0, %c0_1, %c0_2, %c0_3] : memref<1x4x8x16x16xf32, #tpu.memory_space<vmem>>, vector<1x4x8x16x16xf32>
    %1 = vector.shape_cast %0 : vector<1x4x8x16x16xf32> to vector<4x8x16x16xf32>
    %2 = tpu.transpose %1, [1, 0, 2, 3] : vector<4x8x16x16xf32> -> vector<8x4x16x16xf32>
    %c0_4 = arith.constant 0 : index
    %c0_5 = arith.constant 0 : index
    %3 = vector.load %arg3[%c0_4, %c0_5] : memref<8x4xf32, #tpu.memory_space<vmem>>, vector<8x4xf32>
    %c0_6 = arith.constant 0 : index
    %c0_7 = arith.constant 0 : index
    %4 = vector.load %arg4[%c0_6, %c0_7] : memref<8x1xf32, #tpu.memory_space<vmem>>, vector<8x1xf32>
    %5 = vector.shape_cast %2 : vector<8x4x16x16xf32> to vector<8x4x256xf32>
    "tpu.trace_start"() <{level = 10 : i32, message = "oc,bcf->bof"}> : () -> ()
    %cst = arith.constant dense<0.000000e+00> : vector<8x256x8xf32>
    %6 = tpu.matmul %5, %3, %cst {dimension_numbers = #tpu.dot_dimension_numbers<[1], [1], [0, 2], [0], [0, 0, 0, 2, 1, 0], [], []>} : vector<8x4x256xf32>, vector<8x4xf32>, vector<8x256x8xf32> -> vector<8x256x8xf32>
    %7 = tpu.transpose %6, [0, 2, 1] : vector<8x256x8xf32> -> vector<8x8x256xf32>
    "tpu.trace_stop"() : () -> ()
    %8 = vector.shape_cast %4 : vector<8x1xf32> to vector<1x8x1xf32>
    %9 = vector.broadcast %8 : vector<1x8x1xf32> to vector<8x8x256xf32>
    %10 = arith.addf %7, %9 : vector<8x8x256xf32>
    %cst_8 = arith.constant 0.000000e+00 : f32
    %11 = vector.broadcast %cst_8 : f32 to vector<8x8x256xf32>
    %12 = arith.cmpf ogt, %10, %11 : vector<8x8x256xf32>
    %cst_9 = arith.constant 0.00999999977 : f32
    %13 = vector.broadcast %cst_9 : f32 to vector<8x8x256xf32>
    %14 = arith.mulf %13, %10 : vector<8x8x256xf32>
    %15 = arith.select %12, %10, %14 : vector<8x8x256xi1>, vector<8x8x256xf32>
    %16 = vector.shape_cast %15 : vector<8x8x256xf32> to vector<8x8x16x16xf32>
    %17 = tpu.transpose %16, [1, 0, 2, 3] : vector<8x8x16x16xf32> -> vector<8x8x16x16xf32>
    %c0_10 = arith.constant 0 : index
    %c0_11 = arith.constant 0 : index
    %c0_12 = arith.constant 0 : index
    %c0_13 = arith.constant 0 : index
    %c0_14 = arith.constant 0 : index
    %18 = vector.load %arg5[%c0_10, %c0_11, %c0_12, %c0_13, %c0_14] : memref<1x8x8x16x16xf32, #tpu.memory_space<vmem>>, vector<1x8x8x16x16xf32>
    %19 = vector.shape_cast %18 : vector<1x8x8x16x16xf32> to vector<8x8x16x16xf32>
    %20 = vector.shape_cast %17 : vector<8x8x16x16xf32> to vector<1x8x8x16x16xf32>
    tpu.vector_store %arg5[%c0_10, %c0_11, %c0_12, %c0_13, %c0_14], %20 {strides = array<i32>} : memref<1x8x8x16x16xf32, #tpu.memory_space<vmem>>, vector<1x8x8x16x16xf32>,
    return
  }
  func.func @transform_0(%arg0: i32, %arg1: i32) -> (i32, i32, i32, i32, i32) {
    %c0_i32 = arith.constant 0 : i32
    %c0_i32_0 = arith.constant 0 : i32
    %c0_i32_1 = arith.constant 0 : i32
    %c0_i32_2 = arith.constant 0 : i32
    return %arg0, %c0_i32, %arg1, %c0_i32_0, %c0_i32_1 : i32, i32, i32, i32, i32
  }
  func.func @transform_1(%arg0: i32, %arg1: i32) -> (i32, i32) {
    %c0_i32 = arith.constant 0 : i32
    %c0_i32_0 = arith.constant 0 : i32
    %c0_i32_1 = arith.constant 0 : i32
    return %c0_i32, %c0_i32_0 : i32, i32
  }
  func.func @transform_2(%arg0: i32, %arg1: i32) -> (i32, i32) {
    %c0_i32 = arith.constant 0 : i32
    %c0_i32_0 = arith.constant 0 : i32
    %c0_i32_1 = arith.constant 0 : i32
    return %c0_i32, %c0_i32_0 : i32, i32
  }
  func.func @transform_3(%arg0: i32, %arg1: i32) -> (i32, i32, i32, i32, i32) {
    %c0_i32 = arith.constant 0 : i32
    %c0_i32_0 = arith.constant 0 : i32
    %c0_i32_1 = arith.constant 0 : i32
    %c0_i32_2 = arith.constant 0 : i32
    return %arg0, %c0_i32, %arg1, %c0_i32_0, %c0_i32_1 : i32, i32, i32, i32, i32
  }
}

</mosaic_0001>

<bundles_post_ra>
// kernel: tpu_custom_call.1
= control target key start
LH: loop header
LB: loop body
LE: loop exit
PB: predicated region body
PF: predicated region fallthrough
CT: control target
= control target key end

     0   :  { %8 = vsyncpa [#allocation3], 0  ;;  %s13266_s0 = inlined_call_operand.hbm [shape: f32[2,4,8,16,16], index: 0, kind: input, shape index: {}]   ;;  %s13267_s1 = inlined_call_operand.vmem [shape: f32[8,4], index: 1, kind: input, shape index: {}]   ;;  %s13268_s2 = inlined_call_operand.vmem [shape: f32[8,1], index: 2, kind: input, shape index: {}]   ;;  %s13269_s3 = inlined_call_operand.hbm [shape: f32[2,8,8,16,16], index: 3, kind: output, shape index: {}]  }
   0x1   :  { %10 = vsyncpa [#allocation3 + $0x1], 0 }
   0x2   :  { %11 = vsyncpa [#allocation4], 0 }
   0x3   :  { %13 = vsyncpa [#allocation4 + $0x1], 0  ;;  %s9049_s12 = smov 0   ;;  %s9051_s13 = smov 0  }
   0x4   :  { %s9053_s14 = smov 0   ;;  %s9055_s15 = smov 0  }
   0x5   :  { %s9057_s16 = smov 0   ;;  %s9059_s17 = smov 0  }
   0x6 LB: > { %s7901_s18 = sadd.s32 4294967295, %s9010_s17   ;;  %s7902_s19 = sadd.s32 4294967294, %s9010_s17   ;;  %s9010_s17 = sphi %s9059_s17, %s19_s17   ;;  %s9006_s16 = sphi %s9057_s16, %s13554_s16   ;;  %s9002_s15 = sphi %s9055_s15, %s13553_s15   ;;  %s8998_s14 = sphi %s9053_s14, %s13552_s14   ;;  %s8994_s13 = sphi %s9051_s13, %s13551_s13   ;;  %s8990_s12 = sphi %s9049_s12, %s13550_s12  }
   0x7   : > { %s31_s20 = sadd.s32 1, %s9006_s16  ;;  %s40_s21 = sadd.s32 1, %s8998_s14 }
   0x8   : > { %p33_p0 = scmp.ge.s32.totalorder %s31_s20, 2  ;;  %p47_p1 = scmp.ne.s32.totalorder %s8998_s14, %s8994_s13 }
   0x9   : > { %p48_p2 = scmp.eq.s32.totalorder %s9010_s17, 0  ;;  %p53_p3 = scmp.ne.s32.totalorder %s8994_s13, %s8990_s12 }
   0xa   : > { %s13556_s20 = smov (%p33_p0, %s31_s20), 0  ;;  %p54_p5 = scmp.eq.s32.totalorder %s7901_s18, 0 }
   0xb   : > { %p9090_p4 = por %p48_p2, %p47_p1  ;;  %s35_s23 = ssub.s32 %s9006_s16, %s13556_s20 }
   0xc   : > { %p121_p6 = scmp.eq.s32.totalorder %s7901_s18, 1  ;;  %p38_p7 = scmp.eq.s32.totalorder %s35_s23, 0 }
   0xd   : > { %p9096_p8 = por %p54_p5, %p53_p3  ;;  %p127_p10 = scmp.eq.s32.totalorder %s7902_s19, 1 }
   0xe   : > { %p9100_p9 = por %p121_p6, %p47_p1  ;;  %p8832_p13 = scmp.lt.s32.totalorder %s9010_s17, 2 }
   0xf   : > { %s9105_s26 = scalar_select %p38_p7, %s8998_s14, %s40_s21  }
  0x10   : > { %s13338_s25 = scalar_select %p9100_p9, 1, 0 }
  0x11   : > { %p9107_p11 = por %p127_p10, %p53_p3  ;;  %s153_s28 = sand.u32 1, %s8998_s14  }
  0x12   : > { %s7905_s29 = sshll.u32 %s153_s28, 9  ;;  %s8173_s30 = sshll.u32 %s9006_s16, 13 }
  0x13   : > { %s13339_s27 = scalar_select %p9107_p11, 1, 0 }
  0x14   : > { %s9118_s6 = scalar_lea.hbm %s13266_s0, %s8173_s30  ;;  %s157_s7 = scalar_lea.vmem [#allocation2], %s7905_s29 }
  0x15   : > { %s167_s8 = sshll.u32 %s157_s7, 4  ;;  %p9124_p0 = pnand %p8832_p13, %p9090_p4  ;;  %s9120_s8 = int_to_ptr.vmem [resolvable:$true] %s167_s8 }
  0x16   : > { %s9129_s10 = scalar_lea.sflag [#allocation3], %s153_s28  ;;  %s8898_s11 = scalar_lea.hbm %s9118_s6, 8192 }
  0x17   : > { %p8899_p2 = scmp.ne.s32.totalorder %s9118_s6, %s8898_s11  ;;  %p8900_p3 = pneg %p9124_p0 }
  0x18   : > { %s8903_s21 = scalar_lea.hbm %s13266_s0, 16384  ;;  %p8904_p4 = scmp.lt.u32.totalorder %s9118_s6, %s13266_s0 }
  0x19   : > { %p8901_p5 = pnand %p8900_p3, %p8899_p2  ;;  %p8905_p7 = scmp.lt.u32.totalorder %s8903_s21, %s8898_s11 }
  0x1a   : > { %p8907_p13 = scmp.lt.u32.totalorder %s8898_s11, %s9118_s6 }
  0x1b   : > { %p8902_p6 = pneg %p8901_p5  ;;  %p8906_p10 = por %p8905_p7, %p8904_p4 }
  0x1d   : > { %p8908_p12 = por %p8907_p13, %p8906_p10 }
  0x1f   : > { %p8909_p1 = pnand %p8908_p12, %p8902_p6 }
  0x21   : > { %8912 = shalt.err (!%p8909_p1)
}
  0x22   : > { %s8913_s28 = scalar_lea.vmem %s9120_s8, 8192  ;;  %s9012_s29 = smov [#allocation2]  }
  0x23   : > { %p8914_p2 = scmp.ne.s32.totalorder %s9120_s8, %s8913_s28  ;;  %s8918_s30 = sshll.u32 %s9012_s29, 4  ;;  %s8919_s30 = int_to_ptr.vmem [resolvable:$false] %s8918_s30 }
  0x24   : > { %s8920_s4 = scalar_lea.vmem %s8919_s30, 16384  ;;  %p8921_p9 = scmp.lt.s32.totalorder %s9120_s8, %s8919_s30 }
  0x25   : > { %p8916_p5 = pnand %p8914_p2, %p8900_p3  ;;  %p8922_p4 = scmp.lt.s32.totalorder %s8920_s4, %s8913_s28 }
  0x27   : > { %p8917_p11 = pneg %p8916_p5  ;;  %p8923_p7 = por %p8922_p4, %p8921_p9 }
  0x29   : > { %p8924_p10 = pnand %p8923_p7, %p8917_p11 }
  0x2b   : > { %8927 = shalt.err (!%p8924_p10)
}
  0x2c   : > { %s9013_s5 = smov 128   ;;  %s9014_s7 = smov 8  }
  0x2d   : > { %8827 = dma.hbm_to_vmem [thread:$0]  (!%p9124_p0), %s9118_s6, 8192, %s9120_s8, %s9129_s10, %s9013_s5, %s9013_s5, %s9014_s7  }
  0x2e   : > { %p175_p12 = scmp.lt.s32.totalorder %s9010_s17, 3  ;;  %p13341_p1 = scmp.ge.s32.totalorder %s9010_s17, 1 }
  0x30   : > { %p176_p3 = pnand %p13341_p1, %p175_p12 }
  0x32   : > { %179 = sbr.rel (%p176_p3) target bundleno = 1907 (0x773), region = 32 }
  0x39   : > { %s9161_s11 = sand.u32 1, %s8994_s13  }
  0x3a   : > { %s7909_s18 = sshll.u32 %s9161_s11, 9  ;;  %s182_s19 = scalar_lea.sflag [#allocation3], %s9161_s11 }
  0x3b   : > { %s9165_s21 = scalar_lea.vmem [#allocation2], %s7909_s18 }
  0x3c   : > { %8981 = dma.done.wait (%p9096_p8), %s182_s19, 8192  }
  0x3d   : > { %8983 = vsyncadd (%p9096_p8), %s182_s19, 4294959104  ;;  %v281_v0 = vlaneseq  ;;  %v9015_v1 = vmov 1983009808   ;;  %v9016_v5 = vmov 1934713408   ;;  %v9174_v8 = vld [vmem:[%s9165_s21 + $0x10] sm:$0xff] }
  0x3e   : > { %v279_v2 = vunpack.c.l.s4 %v9015_v1  ;;  %v311_v6 = vunpack.c.l.s4 %v9016_v5  ;;  %v9177_v9 = vld [vmem:[%s9165_s21 + $0x90] sm:$0xff]  ;;  %v9188_v14 = vld [vmem:[%s9165_s21] sm:$0xff]  ;;  %s9017_s24 = smov 32   ;;  %v13275_v5 = vmov 0.0   ;;  %s9019_s6 = smov 16   ;;  %vm1812_vm0 = vcmask 130048  }
  0x3f   : > { %v282_v3 = vshrl.u32 %v281_v0, 7  ;;  %v9180_v10 = vld [vmem:[%s9165_s21 + $0x110] sm:$0xff]  ;;  %v9191_v15 = vld [vmem:[%s9165_s21 + $0x80] sm:$0xff]  ;;  %s9020_s8 = smov 48   ;;  %s9021_s9 = smov 64   ;;  %vm1821_vm1 = vcmask 261120  }
  0x40   : > { %v280_v4 = vunpack.c.0.s8 %v279_v2  ;;  %v312_v11 = vunpack.c.0.s8 %v311_v6  ;;  %v9183_v12 = vld [vmem:[%s9165_s21 + $0x190] sm:$0xff]  ;;  %v412_v13 = vcombine.low %v9174_v8, %v9180_v10  ;;  %v9196_v17 = vld [vmem:[%s9165_s21 + $0x100] sm:$0xff]  ;;  %s9022_s10 = smov 80   ;;  %s9023_s22 = smov 96   ;;  %vm1830_vm2 = vcmask 392192  }
  0x41   : > { %v428_v16 = vcombine.low %v9177_v9, %v9183_v12  ;;  %v9199_v18 = vld [vmem:[%s9165_s21 + $0x180] sm:$0xff]  ;;  %v276_v21 = vcombine.low %v9188_v14, %v9196_v17  ;;  %v9226_v30 = vld [vmem:[%s9165_s21 + $0x30] sm:$0xff]  ;;  %s9024_s23 = smov 112   ;;  %vm1839_vm3 = vcmask 523264   ;;  %vm1848_vm4 = vcmask 654336   ;;  %s7910_s5 = sshll.u32 %s9161_s11, 10 }
  0x42   : > { %v9171_v7 = vsub.s32 %v280_v4, %v282_v3  ;;  %v9202_v19 = vld [vmem:[%s9165_s21 + $0x20] sm:$0xff]  ;;  %v292_v22 = vcombine.low %v9191_v15, %v9199_v18  ;;  %v9218_v26 = vsub.s32 %v312_v11, %v282_v3  ;;  %v9229_v31 = vld [vmem:[%s9165_s21 + $0xb0] sm:$0xff]  ;;  %vm1857_vm5 = vcmask 785408   ;;  %s12130_s7 = scalar_lea.vmem [#allocation5], %s7910_s5  ;;  %s8174_s18 = sshll.u32 %s9002_s15, 14 }
  0x43   : > { %v9210_v23 = vld [vmem:[%s9165_s21 + $0xa0] sm:$0xff]  ;;  %v9232_v32 = vld [vmem:[%s9165_s21 + $0x130] sm:$0xff]  ;;  %vm1866_vm6 = vcmask 916480   ;;  %vm2443_vm7 = vcmask 31744   ;;  %s7814_s19 = sshll.u32 %s12130_s7, 4  ;;  %p13547_p9 = scmp.ne.s32.totalorder %s13338_s25, 0  ;;  %s13193_s19 = int_to_ptr.vmem [resolvable:$true] %s7814_s19 }
  0x44   : > { %13342 = vst [vmem:[#allocation8_spill] sm:$0xff] %v9171_v7  ;;  %v420_v20 = vrot.slane %v412_v13, %v9171_v7  ;;  %v9213_v24 = vld [vmem:[%s9165_s21 + $0x120] sm:$0xff]  ;;  %13343 = vst [vmem:[#allocation9_spill] sm:$0xff] %v9218_v26  ;;  %v436_v27 = vrot.slane %v428_v16, %v9171_v7  ;;  %v284_v33 = vrot.slane %v276_v21, %v9171_v7  ;;  %v9237_v35 = vld [vmem:[%s9165_s21 + $0x1b0] sm:$0xff] }
  0x45   : > { %v9216_v25 = vld [vmem:[%s9165_s21 + $0x1a0] sm:$0xff]  ;;  %v548_v28 = vcombine.low %v9202_v19, %v9213_v24  ;;  %v300_v34 = vrot.slane %v292_v22, %v9171_v7  ;;  %v684_v36 = vcombine.low %v9226_v30, %v9232_v32  ;;  %v9242_v37 = vld [vmem:[%s9165_s21 + $0x50] sm:$0xff]  ;;  %v700_v48 = vcombine.low %v9229_v31, %v9237_v35 }
  0x46   : > { %v564_v29 = vcombine.low %v9210_v23, %v9216_v25  ;;  %v445_v38 = vcombine.high %v420_v20, %v436_v27  ;;  %v444_v39 = vcombine.low %v420_v20, %v436_v27  ;;  %v9251_v42 = vld [vmem:[%s9165_s21 + $0xd0] sm:$0xff]  ;;  %v9265_v49 = vld [vmem:[%s9165_s21 + $0x40] sm:$0xff] }
  0x47   : > { %v9245_v40 = vrot.slane %v548_v28, %v9171_v7  ;;  %v9254_v43 = vld [vmem:[%s9165_s21 + $0x150] sm:$0xff]  ;;  %v309_v45 = vcombine.high %v284_v33, %v300_v34  ;;  %v308_v46 = vcombine.low %v284_v33, %v300_v34  ;;  %v9260_v47 = vrot.slane %v684_v36, %v9171_v7  ;;  %v9278_v54 = vld [vmem:[%s9165_s21 + $0xc0] sm:$0xff] }
  0x48   : > { %v9248_v41 = vrot.slane %v564_v29, %v9171_v7  ;;  %v9257_v44 = vld [vmem:[%s9165_s21 + $0x1d0] sm:$0xff]  ;;  %v9268_v50 = vrot.slane %v445_v38, %v9218_v26  ;;  %v9273_v52 = vrot.slane %v444_v39, %v9218_v26  ;;  %v956_v53 = vcombine.low %v9242_v37, %v9254_v43  ;;  %v9281_v55 = vld [vmem:[%s9165_s21 + $0x140] sm:$0xff] }
  0x49   : > { %v9284_v56 = vld [vmem:[%s9165_s21 + $0x1c0] sm:$0xff]  ;;  %v9287_v57 = vrot.slane %v309_v45, %v9218_v26  ;;  %v9290_v58 = vrot.slane %v308_v46, %v9218_v26  ;;  %v708_v59 = vrot.slane %v700_v48, %v9171_v7  ;;  %v972_v60 = vcombine.low %v9251_v42, %v9257_v44  ;;  %v9296_v61 = vld [vmem:[%s9165_s21 + $0x70] sm:$0xff] }
  0x4a   : > { %v580_v51 = vcombine.low %v9245_v40, %v9248_v41  ;;  %13344 = vst [vmem:[#allocation10_spill] sm:$0xff] %v9273_v52  ;;  %v9299_v62 = vld [vmem:[%s9165_s21 + $0xf0] sm:$0xff]  ;;  %1406 = vrot.lane.b32.xlu1 %v9268_v50, %s9017_s24  ;;  %v964_v1 = vrot.slane %v956_v53, %v9171_v7  ;;  %v9314_v3 = vld [vmem:[%s9165_s21 + $0x60] sm:$0xff]  ;;  %v476_v13 = vcombine.high %v9273_v52, %v13275_v5 }
  0x4b   : > { %13345 = vst [vmem:[#allocation11_spill] sm:$0xff] %v9290_v58  ;;  %v9302_v63 = vld [vmem:[%s9165_s21 + $0x170] sm:$0xff]  ;;  %v9317_v4 = vld [vmem:[%s9165_s21 + $0x160] sm:$0xff]  ;;  %1404 = vrot.lane.b32.xlu0 %v9287_v57, %s9017_s24  ;;  %v340_v6 = vcombine.high %v9290_v58, %v13275_v5  ;;  %v716_v11 = vcombine.low %v9260_v47, %v708_v59  ;;  %v980_v16 = vrot.slane %v972_v60, %v9171_v7 }
  0x4c   : > { %v9307_v0 = vrot.slane %v580_v51, %v9218_v26  ;;  %v9311_v2 = vld [vmem:[%s9165_s21 + $0x1f0] sm:$0xff]  ;;  %v9328_v20 = vld [vmem:[%s9165_s21 + $0xe0] sm:$0xff]  ;;  %v820_v27 = vcombine.low %v9265_v49, %v9281_v55  ;;  %v836_v28 = vcombine.low %v9278_v54, %v9284_v56  ;;  %v1228_v29 = vcombine.low %v9296_v61, %v9302_v63 }
  0x4d   : > { %v9331_v21 = vld [vmem:[%s9165_s21 + $0x1e0] sm:$0xff]  ;;  %v9342_v33 = vrot.slane %v716_v11, %v9218_v26  ;;  %v988_v34 = vcombine.low %v964_v1, %v980_v16  ;;  %v1244_v36 = vcombine.low %v9299_v62, %v9311_v2  ;;  %v1092_v38 = vcombine.low %v9314_v3, %v9317_v4 }
  0x4e   : > { %13346 = vst [vmem:[#allocation12_spill] sm:$0xff] %v9307_v0  ;;  %v612_v22 = vcombine.high %v9307_v0, %v13275_v5  ;;  %v828_v39 = vrot.slane %v820_v27, %v9171_v7  ;;  %v844_v45 = vrot.slane %v836_v28, %v9171_v7  ;;  %v1236_v46 = vrot.slane %v1228_v29, %v9171_v7 }
  0x4f   : > { %13347 = vst [vmem:[#allocation13_spill] sm:$0xff] %v9342_v33  ;;  %v1108_v48 = vcombine.low %v9328_v20, %v9331_v21  ;;  %1372 = vrot.lane.b32.xlu0 %v340_v6, %s9019_s6  ;;  %v748_v51 = vcombine.high %v9342_v33, %v13275_v5  ;;  %v9358_v53 = vrot.slane %v988_v34, %v9218_v26  ;;  %v13355_v33 = vmov 0.0  }
  0x50   : > { %1376 = vrot.lane.b32.xlu1 %v612_v22, %s9019_s6  ;;  %v1252_v60 = vrot.slane %v1244_v36, %v9171_v7  ;;  %v1100_v11 = vrot.slane %v1092_v38, %v9171_v7  ;;  %v852_v22 = vcombine.low %v828_v39, %v844_v45 }
  0x51   : > { %13348 = vst [vmem:[#allocation14_spill] sm:$0xff] %v9358_v53  ;;  %v1116_v27 = vrot.slane %v1108_v48, %v9171_v7  ;;  %v1020_v29 = vcombine.high %v9358_v53, %v13275_v5 }
  0x52   : > { %v1260_v28 = vcombine.low %v1236_v46, %v1252_v60  ;;  %v9367_v6 = vrot.slane %v852_v22, %v9218_v26  ;;  %v581_v22 = vcombine.high %v9245_v40, %v9248_v41 }
  0x53   : > { %v1124_v0 = vcombine.low %v1100_v11, %v1116_v27  ;;  %1374 = vrot.lane.b32.xlu0 %v476_v13, %s9019_s6  ;;  %v1125_v40 = vcombine.high %v1100_v11, %v1116_v27  ;;  %v293_v11 = vcombine.high %v9191_v15, %v9199_v18  ;;  %v701_v15 = vcombine.high %v9229_v31, %v9237_v35 }
  0x54   : > { %1378 = vrot.lane.b32.xlu1 %v748_v51, %s9019_s6  ;;  %13349 = vst [vmem:[#allocation15_spill] sm:$0xff] %v9367_v6  ;;  %v9371_v34 = vrot.slane %v1260_v28, %v9218_v26  ;;  %v884_v36 = vcombine.high %v9367_v6, %v13275_v5  ;;  %v717_v51 = vcombine.high %v9260_v47, %v708_v59 }
  0x55   : > { %v9376_v38 = vrot.slane %v1124_v0, %v9218_v26  ;;  %v989_v28 = vcombine.high %v964_v1, %v980_v16  ;;  %v853_v6 = vcombine.high %v828_v39, %v844_v45  ;;  %v1261_v59 = vcombine.high %v1236_v46, %v1252_v60 }
  0x56   : > { %v1292_v48 = vcombine.high %v9371_v34, %v13275_v5  ;;  %v731_v0 = vrot.slane %v717_v51, %v9218_v26  ;;  %v1139_v1 = vrot.slane %v1125_v40, %v9218_v26  ;;  %v477_v16 = vcombine.high %v9268_v50, %v13275_v5 }
  0x57   : > { %13350 = vst [vmem:[#allocation16_spill] sm:$0xff] %v9376_v38  ;;  %1380 = vrot.lane.b32.xlu0 %v884_v36, %s9019_s6  ;;  %v1156_v13 = vcombine.high %v9376_v38, %v13275_v5  ;;  %v1003_v47 = vrot.slane %v989_v28, %v9218_v26  ;;  %v867_v36 = vrot.slane %v853_v6, %v9218_v26 }
  0x58   : > { %1382 = vrot.lane.b32.xlu1 %v1020_v29, %s9019_s6  ;;  %v595_v29 = vrot.slane %v581_v22, %v9218_v26  ;;  %v1275_v41 = vrot.slane %v1261_v59, %v9218_v26  ;;  %v341_v39 = vcombine.high %v9287_v57, %v13275_v5  ;;  %v413_v45 = vcombine.high %v9174_v8, %v9180_v10 }
  0x59   : > { %v429_v46 = vcombine.high %v9177_v9, %v9183_v12  ;;  %v277_v60 = vcombine.high %v9188_v14, %v9196_v17  ;;  %v749_v50 = vcombine.high %v731_v0, %v13275_v5  ;;  %v9427_v12 = vrot.slane %v293_v11, %v9171_v7 }
  0x5a   : > { %v613_v57 = vcombine.high %v595_v29, %v13275_v5  ;;  %v9418_v8 = vrot.slane %v413_v45, %v9171_v7  ;;  %v685_v14 = vcombine.high %v9226_v30, %v9232_v32  ;;  %v1021_v17 = vcombine.high %v1003_v47, %v13275_v5 }
  0x5b   : > { %1384 = vrot.lane.b32.xlu0 %v1156_v13, %s9019_s6  ;;  %v9421_v9 = vrot.slane %v429_v46, %v9171_v7  ;;  %v9424_v10 = vrot.slane %v277_v60, %v9171_v7  ;;  %v549_v18 = vcombine.high %v9202_v19, %v9213_v24  ;;  %v565_v27 = vcombine.high %v9210_v23, %v9216_v25 }
  0x5c   : > { %1386 = vrot.lane.b32.xlu1 %v1292_v48, %s9019_s6  ;;  %v885_v6 = vcombine.high %v867_v36, %v13275_v5  ;;  %v9446_v32 = vrot.slane %v685_v14, %v9171_v7  ;;  %v9449_v35 = vrot.slane %v701_v15, %v9171_v7  ;;  %v957_v19 = vcombine.high %v9242_v37, %v9254_v43 }
  0x5d   : > { %v460_v30 = vcombine.low %v9418_v8, %v9421_v9  ;;  %v324_v31 = vcombine.low %v9424_v10, %v9427_v12  ;;  %v1293_v23 = vcombine.high %v1275_v41, %v13275_v5  ;;  %v9456_v24 = vrot.slane %v549_v18, %v9171_v7 }
  0x5e   : > { %v9459_v25 = vrot.slane %v565_v27, %v9171_v7  ;;  %v973_v48 = vcombine.high %v9251_v42, %v9257_v44  ;;  %v1157_v51 = vcombine.high %v1139_v1, %v13275_v5  ;;  %v821_v37 = vcombine.high %v9265_v49, %v9281_v55 }
  0x5f   : > { %1408 = vrot.lane.b32.xlu0 %v595_v29, %s9017_s24  ;;  %v837_v43 = vcombine.high %v9278_v54, %v9284_v56  ;;  %v468_v13 = vrot.slane %v460_v30, %v9218_v26  ;;  %v332_v22 = vrot.slane %v324_v31, %v9218_v26  ;;  %v9474_v28 = vrot.slane %v957_v19, %v9171_v7 }
  0x60   : > { %1410 = vrot.lane.b32.xlu1 %v731_v0, %s9017_s24  ;;  %v732_v0 = vcombine.low %v9446_v32, %v9449_v35  ;;  %v596_v42 = vcombine.low %v9456_v24, %v9459_v25  ;;  %v9480_v44 = vrot.slane %v973_v48, %v9171_v7  ;;  %v1229_v49 = vcombine.high %v9296_v61, %v9302_v63  ;;  %v9560_v48 = vld [vmem:[%s9165_s21 + $0x118] sm:$0xff] }
  0x61   : > { %v1245_v54 = vcombine.high %v9299_v62, %v9311_v2  ;;  %v835_v55 = vrot.slane %v821_v37, %v9171_v7  ;;  %v851_v56 = vrot.slane %v837_v43, %v9171_v7  ;;  %v1093_v29 = vcombine.high %v9314_v3, %v9317_v4  ;;  %v9570_v43 = vld [vmem:[%s9165_s21 + $0x8] sm:$0xff] }
  0x62   : > { %v740_v61 = vrot.slane %v732_v0, %v9218_v26  ;;  %v1004_v62 = vcombine.low %v9474_v28, %v9480_v44  ;;  %v1243_v63 = vrot.slane %v1229_v49, %v9171_v7  ;;  %v604_v59 = vrot.slane %v596_v42, %v9218_v26  ;;  %v9579_v0 = vld [vmem:[%s9165_s21 + $0x188] sm:$0xff] }
  0x63   : > { %1412 = vrot.lane.b32.xlu0 %v867_v36, %s9017_s24  ;;  %v1259_v2 = vrot.slane %v1245_v54, %v9171_v7  ;;  %v868_v3 = vcombine.low %v835_v55, %v851_v56  ;;  %v1107_v4 = vrot.slane %v1093_v29, %v9171_v7  ;;  %v342_v45 = vcombine.high %v332_v22, %v13275_v5  ;;  %v9592_v54 = vld [vmem:[%s9165_s21 + $0xb8] sm:$0xff] }
  0x64   : > { %1414 = vrot.lane.b32.xlu1 %v1003_v47, %s9017_s24  ;;  %v1109_v47 = vcombine.high %v9328_v20, %v9331_v21  ;;  %v1012_v21 = vrot.slane %v1004_v62, %v9218_v26  ;;  %v750_v46 = vcombine.high %v740_v61, %v13275_v5  ;;  %v614_v60 = vcombine.high %v604_v59, %v13275_v5  ;;  %v9608_v62 = vld [vmem:[%s9165_s21 + $0x28] sm:$0xff] }
  0x65   : > { %v1276_v36 = vcombine.low %v1243_v63, %v1259_v2  ;;  %v876_v40 = vrot.slane %v868_v3, %v9218_v26  ;;  %v461_v14 = vcombine.high %v9418_v8, %v9421_v9  ;;  %v733_v27 = vcombine.high %v9446_v32, %v9449_v35 }
  0x66   : > { %v1123_v20 = vrot.slane %v1109_v47, %v9171_v7  ;;  %v1022_v11 = vcombine.high %v1012_v21, %v13275_v5  ;;  %v597_v8 = vcombine.high %v9456_v24, %v9459_v25  ;;  %v869_v30 = vcombine.high %v835_v55, %v851_v56  ;;  %v9557_v25 = vld [vmem:[%s9165_s21 + $0x98] sm:$0xff] }
  0x67   : > { %1416 = vrot.lane.b32.xlu0 %v1139_v1, %s9017_s24  ;;  %v1284_v1 = vrot.slane %v1276_v36, %v9218_v26  ;;  %v475_v18 = vrot.slane %v461_v14, %v9218_v26  ;;  %v747_v9 = vrot.slane %v733_v27, %v9218_v26  ;;  %v1277_v32 = vcombine.high %v1243_v63, %v1259_v2  ;;  %v9595_v55 = vld [vmem:[%s9165_s21 + $0x138] sm:$0xff]  ;;  %v9611_v63 = vld [vmem:[%s9165_s21 + $0x128] sm:$0xff] }
  0x68   : > { %1418 = vrot.lane.b32.xlu1 %v1275_v41, %s9017_s24  ;;  %v1140_v41 = vcombine.low %v1107_v4, %v1123_v20  ;;  %v883_v35 = vrot.slane %v869_v30, %v9218_v26  ;;  %v1141_v19 = vcombine.high %v1107_v4, %v1123_v20  ;;  %v9598_v56 = vld [vmem:[%s9165_s21 + $0x1b8] sm:$0xff]  ;;  %v9614_v2 = vld [vmem:[%s9165_s21 + $0xa8] sm:$0xff] }
  0x69   : > { %v9554_v24 = vrot.slane %v1277_v32, %v9218_v26  ;;  %v479_v49 = vcombine.high %v475_v18, %v13275_v5  ;;  %v751_v36 = vcombine.high %v747_v9, %v13275_v5  ;;  %v9662_v14 = vld [vmem:[%s9165_s21 + $0x148] sm:$0xff] }
  0x6a   : > { %v9567_v37 = vrot.slane %v1141_v19, %v9218_v26  ;;  %v9672_v27 = vld [vmem:[%s9165_s21 + $0xe8] sm:$0xff] }
  0x6b   : > { %1436 = vrot.lane.b32.xlu0 %v341_v39, %s9020_s8  ;;  %v478_v39 = vcombine.high %v468_v13, %v13275_v5  ;;  %13351 = vst [vmem:[#allocation17_spill] sm:$0xff] %v9672_v27  ;;  %v9688_v30 = vld [vmem:[%s9165_s21 + $0x168] sm:$0xff] }
  0x6c   : > { %1438 = vrot.lane.b32.xlu1 %v477_v16, %s9020_s8  ;;  %v1148_v16 = vrot.slane %v1140_v41, %v9218_v26  ;;  %v9634_v41 = vld [vmem:[%s9165_s21 + $0x48] sm:$0xff] }
  0x6d   : > { %v9691_v32 = vld [vmem:[%s9165_s21 + $0x1e8] sm:$0xff] }
  0x6e   : > { %v1158_v15 = vcombine.high %v1148_v16, %v13275_v5 }
  0x6f   : > { %1440 = vrot.lane.b32.xlu0 %v613_v57, %s9020_s8  ;;  %v1294_v57 = vcombine.high %v1284_v1, %v13275_v5 }
  0x70   : > { %1442 = vrot.lane.b32.xlu1 %v749_v50, %s9020_s8  ;;  %v886_v50 = vcombine.high %v876_v40, %v13275_v5 }
  0x73   : > { %1444 = vrot.lane.b32.xlu0 %v885_v6, %s9020_s8 }
  0x74   : > { %1446 = vrot.lane.b32.xlu1 %v1021_v17, %s9020_s8  ;;  %v325_v17 = vcombine.high %v9424_v10, %v9427_v12  ;;  %v1005_v10 = vcombine.high %v9474_v28, %v9480_v44  ;;  %v611_v12 = vrot.slane %v597_v8, %v9218_v26  ;;  %v9586_v44 = vld [vmem:[%s9165_s21 + $0x38] sm:$0xff] }
  0x75   : > { %v752_v20 = vcombine.low %v9586_v44, %v9595_v55 }
  0x76   : > { %v339_v6 = vrot.slane %v325_v17, %v9218_v26  ;;  %v1019_v31 = vrot.slane %v1005_v10, %v9218_v26  ;;  %v887_v17 = vcombine.high %v883_v35, %v13275_v5 }
  0x77   : > { %1448 = vrot.lane.b32.xlu0 %v1157_v51, %s9020_s8  ;;  %v9563_v51 = vld [vmem:[%s9165_s21 + $0x198] sm:$0xff]  ;;  %v9677_v8 = vrot.slane %v752_v20, %v9171_v7 }
  0x78   : > { %1450 = vrot.lane.b32.xlu1 %v1293_v23, %s9020_s8  ;;  %v9550_v23 = vld [vmem:[%s9165_s21 + $0x18] sm:$0xff]  ;;  %v496_v42 = vcombine.low %v9557_v25, %v9563_v51  ;;  %v343_v29 = vcombine.high %v339_v6, %v13275_v5 }
  0x79   : > { %v480_v28 = vcombine.low %v9550_v23, %v9560_v48  ;;  %v9717_v20 = vld [vmem:[%s9165_s21 + $0x1f8] sm:$0xff] }
  0x7a   : > { %v9623_v4 = vrot.slane %v496_v42, %v9171_v7 }
  0x7b   : > { %1468 = vrot.lane.b32.xlu0 %v332_v22, %s9021_s9  ;;  %v9576_v22 = vld [vmem:[%s9165_s21 + $0x108] sm:$0xff]  ;;  %v9620_v3 = vrot.slane %v480_v28, %v9171_v7  ;;  %v9698_v28 = vld [vmem:[%s9165_s21 + $0x78] sm:$0xff] }
  0x7c   : > { %1470 = vrot.lane.b32.xlu1 %v468_v13, %s9021_s9  ;;  %v9573_v13 = vld [vmem:[%s9165_s21 + $0x88] sm:$0xff]  ;;  %v344_v47 = vcombine.low %v9570_v43, %v9576_v22 }
  0x7f   : > { %1472 = vrot.lane.b32.xlu0 %v604_v59, %s9021_s9  ;;  %v9617_v59 = vld [vmem:[%s9165_s21 + $0x1a8] sm:$0xff] }
  0x80   : > { %1474 = vrot.lane.b32.xlu1 %v740_v61, %s9021_s9  ;;  %v360_v61 = vcombine.low %v9573_v13, %v9579_v0 }
  0x83   : > { %1476 = vrot.lane.b32.xlu0 %v876_v40, %s9021_s9  ;;  %v616_v40 = vcombine.low %v9608_v62, %v9611_v63 }
  0x84   : > { %1478 = vrot.lane.b32.xlu1 %v1012_v21, %s9021_s9  ;;  %v768_v21 = vcombine.low %v9592_v54, %v9598_v56 }
  0x85   : > { %v9684_v10 = vrot.slane %v616_v40, %v9171_v7 }
  0x87   : > { %1480 = vrot.lane.b32.xlu0 %v1148_v16, %s9021_s9  ;;  %v615_v16 = vcombine.high %v611_v12, %v13275_v5 }
  0x88   : > { %1482 = vrot.lane.b32.xlu1 %v1284_v1, %s9021_s9  ;;  %v9637_v1 = vld [vmem:[%s9165_s21 + $0x58] sm:$0xff] }
  0x8b   : > { %1500 = vrot.lane.b32.xlu0 %v342_v45, %s9022_s10  ;;  %v9645_v45 = vrot.slane %v360_v61, %v9171_v7  ;;  %v9714_v61 = vld [vmem:[%s9165_s21 + $0x178] sm:$0xff] }
  0x8c   : > { %1502 = vrot.lane.b32.xlu1 %v478_v39, %s9022_s10  ;;  %v9642_v39 = vrot.slane %v344_v47, %v9171_v7  ;;  %v9711_v47 = vld [vmem:[%s9165_s21 + $0xf8] sm:$0xff] }
  0x8e   : > { %v376_v42 = vcombine.low %v9642_v39, %v9645_v45 }
  0x8f   : > { %1504 = vrot.lane.b32.xlu0 %v614_v60, %s9022_s10  ;;  %v9650_v60 = vld [vmem:[%s9165_s21 + $0xd8] sm:$0xff] }
  0x90   : > { %1506 = vrot.lane.b32.xlu1 %v750_v46, %s9022_s10  ;;  %v632_v46 = vcombine.low %v9614_v2, %v9617_v59 }
  0x93   : > { %1508 = vrot.lane.b32.xlu0 %v886_v50, %s9022_s10  ;;  %v9656_v50 = vld [vmem:[%s9165_s21 + $0x1d8] sm:$0xff] }
  0x94   : > { %1510 = vrot.lane.b32.xlu1 %v1022_v11, %s9022_s10  ;;  %v9653_v11 = vld [vmem:[%s9165_s21 + $0x158] sm:$0xff]  ;;  %v1040_v19 = vcombine.low %v9650_v60, %v9656_v50 }
  0x97   : > { %1512 = vrot.lane.b32.xlu0 %v1158_v15, %s9022_s10  ;;  %v9665_v15 = vld [vmem:[%s9165_s21 + $0x1c8] sm:$0xff] }
  0x98   : > { %1514 = vrot.lane.b32.xlu1 %v1294_v57, %s9022_s10  ;;  %v9659_v57 = vld [vmem:[%s9165_s21 + $0xc8] sm:$0xff] }
  0x9b   : > { %1532 = vrot.lane.b32.xlu0 %v339_v6, %s9023_s22  ;;  %v512_v6 = vcombine.low %v9620_v3, %v9623_v4 }
  0x9c   : > { %1534 = vrot.lane.b32.xlu1 %v475_v18, %s9023_s22  ;;  %v9669_v18 = vld [vmem:[%s9165_s21 + $0x68] sm:$0xff] }
  0x9d   : > { %v1160_v40 = vcombine.low %v9669_v18, %v9688_v30 }
  0x9f   : > { %1536 = vrot.lane.b32.xlu0 %v611_v12, %s9023_s22  ;;  %v1023_v12 = vcombine.high %v1019_v31, %v13275_v5 }
  0xa0   : > { %1538 = vrot.lane.b32.xlu1 %v747_v9, %s9023_s22  ;;  %v9680_v9 = vrot.slane %v768_v21, %v9171_v7  ;;  %v1159_v21 = vcombine.high %v9567_v37, %v13275_v5 }
  0xa2   : > { %v784_v53 = vcombine.low %v9677_v8, %v9680_v9 }
  0xa3   : > { %1540 = vrot.lane.b32.xlu0 %v883_v35, %s9023_s22  ;;  %v1024_v35 = vcombine.low %v9637_v1, %v9653_v11 }
  0xa4   : > { %1542 = vrot.lane.b32.xlu1 %v1019_v31, %s9023_s22  ;;  %v888_v31 = vcombine.low %v9634_v41, %v9662_v14  ;;  %v9755_v52 = vrot.slane %v784_v53, %v9218_v26 }
  0xa5   : > { %v9734_v58 = vrot.slane %v1024_v35, %v9171_v7 }
  0xa6   : > { %v896_v35 = vrot.slane %v888_v31, %v9171_v7  ;;  %13354 = vst [vmem:[#allocation20_spill] sm:$0xff] %v9755_v52 }
  0xa7   : > { %1544 = vrot.lane.b32.xlu0 %v9567_v37, %s9023_s22  ;;  %v9737_v37 = vrot.slane %v1040_v19, %v9171_v7  ;;  %v9752_v19 = vrot.slane %v1160_v40, %v9171_v7 }
  0xa8   : > { %1546 = vrot.lane.b32.xlu1 %v9554_v24, %s9023_s22 }
  0xab   : > { %1564 = vrot.lane.b32.xlu0 %v343_v29, %s9024_s23  ;;  %v904_v29 = vcombine.low %v9659_v57, %v9665_v15 }
  0xac   : > { %1566 = vrot.lane.b32.xlu1 %v479_v49, %s9024_s23  ;;  %v9704_v49 = vrot.slane %v632_v46, %v9171_v7  ;;  %v9728_v46 = vrot.slane %v512_v6, %v9218_v26  ;;  %v9745_v6 = vrot.slane %v376_v42, %v9218_v26  ;;  %v1056_v42 = vcombine.low %v9734_v58, %v9737_v37 }
  0xad   : > { %v912_v38 = vrot.slane %v904_v29, %v9171_v7 }
  0xae   : > { %13352 = vst [vmem:[#allocation18_spill] sm:$0xff] %v9728_v46  ;;  %13353 = vst [vmem:[#allocation19_spill] sm:$0xff] %v9745_v6  ;;  %v408_v29 = vcombine.high %v9745_v6, %v13355_v33 }
  0xaf   : > { %1568 = vrot.lane.b32.xlu0 %v615_v16, %s9024_s23  ;;  %v1176_v16 = vcombine.low %v9672_v27, %v9691_v32  ;;  %v920_v40 = vcombine.low %v896_v35, %v912_v38 }
  0xb0   : > { %1570 = vrot.lane.b32.xlu1 %v751_v36, %s9024_s23  ;;  %v1295_v36 = vcombine.high %v9554_v24, %v13275_v5  ;;  %v1296_v24 = vcombine.low %v9698_v28, %v9714_v61  ;;  %v1312_v5 = vcombine.low %v9711_v47, %v9717_v20 }
  0xb2   : > { %v1304_v27 = vrot.slane %v1296_v24, %v9171_v7  ;;  %v1320_v31 = vrot.slane %v1312_v5, %v9171_v7  ;;  %v9775_v24 = vrot.slane %v1056_v42, %v9218_v26 }
  0xb3   : > { %1572 = vrot.lane.b32.xlu0 %v887_v17, %s9024_s23  ;;  %v544_v17 = vcombine.high %v9728_v46, %v13355_v33  ;;  %v816_v46 = vcombine.high %v9755_v52, %v13355_v33 }
  0xb4   : > { %1574 = vrot.lane.b32.xlu1 %v1023_v12, %s9024_s23  ;;  %v648_v12 = vcombine.low %v9684_v10, %v9704_v49  ;;  %13357 = vst [vmem:[#allocation22_spill] sm:$0xff] %v9775_v24  ;;  %v1328_v5 = vcombine.low %v1304_v27, %v1320_v31  ;;  %v1088_v42 = vcombine.high %v9775_v24, %v13355_v33 }
  0xb6   : > { %v9768_v53 = vrot.slane %v648_v12, %v9218_v26  ;;  %v9781_v12 = vrot.slane %v920_v40, %v9218_v26  ;;  %v9792_v52 = vrot.slane %v1328_v5, %v9218_v26  ;;  %v513_v5 = vcombine.high %v9620_v3, %v9623_v4 }
  0xb7   : > { %1576 = vrot.lane.b32.xlu0 %v1159_v21, %s9024_s23  ;;  %v649_v4 = vcombine.high %v9684_v10, %v9704_v49  ;;  %v1329_v49 = vcombine.high %v1304_v27, %v1320_v31 }
  0xb8   : > { %1578 = vrot.lane.b32.xlu1 %v1295_v36, %s9024_s23  ;;  %13356 = vst [vmem:[#allocation21_spill] sm:$0xff] %v9768_v53  ;;  %v1184_v36 = vrot.slane %v1176_v16, %v9171_v7  ;;  %v680_v21 = vcombine.high %v9768_v53, %v13355_v33  ;;  %13358 = vst [vmem:[#allocation23_spill] sm:$0xff] %v9781_v12 }
  0xb9   : > { %13360 = vst [vmem:[#allocation25_spill] sm:$0xff] %v9792_v52 }
  0xba   : > { %v1192_v6 = vcombine.low %v9752_v19, %v1184_v36 }
  0xbb   : > { %1596 = vrot.lane.b32.xlu0 %v408_v29, %s9019_s6  ;;  %v952_v29 = vcombine.high %v9781_v12, %v13355_v33 }
  0xbc   : > { %1598 = vrot.lane.b32.xlu1 %v544_v17, %s9019_s6  ;;  %v9784_v16 = vpop.permute.xlu1 %1406  ;;  %v9798_v40 = vrot.slane %v1192_v6, %v9218_v26  ;;  %v377_v6 = vcombine.high %v9642_v39, %v9645_v45 }
  0xbd   : > { %13359 = vst [vmem:[#allocation24_spill] sm:$0xff] %v9784_v16  ;;  %v9786_v17 = vpop.permute.xlu0 %1404 }
  0xbe   : > { %13361 = vst [vmem:[#allocation26_spill] sm:$0xff] %v9798_v40  ;;  %v391_v3 = vrot.slane %v377_v6, %v9218_v26  ;;  %v1193_v6 = vcombine.high %v9752_v19, %v1184_v36 }
  0xbf   : > { %1600 = vrot.lane.b32.xlu0 %v680_v21, %s9019_s6  ;;  %v1224_v21 = vcombine.high %v9798_v40, %v13355_v33  ;;  %v497_v40 = vcombine.high %v9557_v25, %v9563_v51 }
  0xc0   : > { %1602 = vrot.lane.b32.xlu1 %v816_v46, %s9019_s6  ;;  %v1360_v46 = vcombine.high %v9792_v52, %v13355_v33  ;;  %v785_v52 = vcombine.high %v9677_v8, %v9680_v9  ;;  %v663_v8 = vrot.slane %v649_v4, %v9218_v26  ;;  %v921_v9 = vcombine.high %v896_v35, %v912_v38 }
  0xc1   : > { %v9802_v16 = vpop.permute.xlu0 %1372  ;;  %v1343_v38 = vrot.slane %v1329_v49, %v9218_v26  ;;  %v1207_v35 = vrot.slane %v1193_v6, %v9218_v26  ;;  %v409_v31 = vcombine.high %v391_v3, %v13355_v33  ;;  %v481_v6 = vcombine.high %v9550_v23, %v9560_v48 }
  0xc2   : > { %v9800_v53 = vpop.permute.xlu1 %1376  ;;  %v799_v45 = vrot.slane %v785_v52, %v9218_v26  ;;  %v935_v52 = vrot.slane %v921_v9, %v9218_v26  ;;  %v361_v9 = vcombine.high %v9573_v13, %v9579_v0  ;;  %v633_v13 = vcombine.high %v9614_v2, %v9617_v59 }
  0xc3   : > { %1604 = vrot.lane.b32.xlu0 %v952_v29, %s9019_s6  ;;  %v9888_v51 = vrot.slane %v481_v6, %v9171_v7  ;;  %v9891_v0 = vrot.slane %v497_v40, %v9171_v7 }
  0xc4   : > { %1606 = vrot.lane.b32.xlu1 %v1088_v42, %s9019_s6  ;;  %v527_v42 = vrot.slane %v513_v5, %v9218_v26  ;;  %v9883_v25 = vrot.slane %v361_v9, %v9171_v7  ;;  %v953_v59 = vcombine.high %v935_v52, %v13355_v33  ;;  %v9905_v40 = vrot.slane %v633_v13, %v9171_v7  ;;  %v13363_v13 = vld [vmem:[#allocation13_spill] sm:$0xff] }
  0xc5   : > { %v9816_v24 = vpop.permute.xlu0 %1374 }
  0xc6   : > { %v9814_v12 = vpop.permute.xlu1 %1378  ;;  %v545_v19 = vcombine.high %v527_v42, %v13355_v33 }
  0xc7   : > { %1608 = vrot.lane.b32.xlu0 %v1224_v21, %s9019_s6 }
  0xc8   : > { %1610 = vrot.lane.b32.xlu1 %v1360_v46, %s9019_s6  ;;  %v1057_v46 = vcombine.high %v9734_v58, %v9737_v37 }
  0xc9   : > { %v9828_v39 = vpop.permute.xlu0 %1380 }
  0xca   : > { %v9826_v29 = vpop.permute.xlu1 %1382  ;;  %v1071_v10 = vrot.slane %v1057_v46, %v9218_v26  ;;  %v345_v46 = vcombine.high %v9570_v43, %v9576_v22  ;;  %v617_v43 = vcombine.high %v9608_v62, %v9611_v63  ;;  %v753_v62 = vcombine.high %v9586_v44, %v9595_v55 }
  0xcb   : > { %1628 = vrot.lane.b32.xlu0 %v391_v3, %s9017_s24  ;;  %v681_v3 = vcombine.high %v663_v8, %v13355_v33  ;;  %v769_v63 = vcombine.high %v9592_v54, %v9598_v56  ;;  %v528_v55 = vcombine.low %v9888_v51, %v9891_v0 }
  0xcc   : > { %1630 = vrot.lane.b32.xlu1 %v527_v42, %s9017_s24  ;;  %v817_v42 = vcombine.high %v799_v45, %v13355_v33  ;;  %v9880_v23 = vrot.slane %v345_v46, %v9171_v7  ;;  %v1089_v2 = vcombine.high %v1071_v10, %v13355_v33  ;;  %v9916_v56 = vrot.slane %v753_v62, %v9171_v7 }
  0xcd   : > { %v9836_v21 = vpop.permute.xlu0 %1384  ;;  %v1041_v46 = vcombine.high %v9650_v60, %v9656_v50  ;;  %v1161_v60 = vcombine.high %v9669_v18, %v9688_v30  ;;  %v1297_v18 = vcombine.high %v9698_v28, %v9714_v61  ;;  %v1313_v30 = vcombine.high %v9711_v47, %v9717_v20  ;;  %v13364_v47 = vld [vmem:[#allocation10_spill] sm:$0xff]  ;;  %v13365_v20 = vld [vmem:[#allocation16_spill] sm:$0xff] }
  0xce   : > { %v1387_v5 = vpop.permute.xlu1 %1386  ;;  %v392_v44 = vcombine.low %v9880_v23, %v9883_v25  ;;  %v1816_v28 = vsel %vm1812_vm0, %v13363_v13, %v9814_v12  ;;  %v1814_v61 = vsel %vm1812_vm0, %v13364_v47, %v9816_v24  ;;  %v1819_v62 = vsel %vm1812_vm0, %v13365_v20, %v9836_v21 }
  0xcf   : > { %1632 = vrot.lane.b32.xlu0 %v663_v8, %s9017_s24  ;;  %v1820_v9 = vsel %vm1812_vm0, %v9371_v34, %v1387_v5  ;;  %v9945_v5 = vrot.slane %v528_v55, %v9218_v26 }
  0xd0   : > { %1634 = vrot.lane.b32.xlu1 %v799_v45, %s9017_s24  ;;  %v9902_v45 = vrot.slane %v617_v43, %v9171_v7  ;;  %v9942_v34 = vrot.slane %v392_v44, %v9218_v26 }
  0xd1   : > { %v9845_v37 = vpop.permute.xlu0 %1408 }
  0xd2   : > { %v9843_v58 = vpop.permute.xlu1 %1410  ;;  %v664_v6 = vcombine.low %v9902_v45, %v9905_v40 }
  0xd3   : > { %1636 = vrot.lane.b32.xlu0 %v935_v52, %s9017_s24  ;;  %v1025_v52 = vcombine.high %v9637_v1, %v9653_v11  ;;  %v889_v1 = vcombine.high %v9634_v41, %v9662_v14  ;;  %v905_v11 = vcombine.high %v9659_v57, %v9665_v15  ;;  %v9955_v15 = vrot.slane %v1041_v46, %v9171_v7 }
  0xd4   : > { %1638 = vrot.lane.b32.xlu1 %v1071_v10, %s9017_s24  ;;  %v9919_v10 = vrot.slane %v769_v63, %v9171_v7 }
  0xd5   : > { %v9853_v27 = vpop.permute.xlu0 %1412  ;;  %v9950_v57 = vrot.slane %v1025_v52, %v9171_v7 }
  0xd6   : > { %v9851_v4 = vpop.permute.xlu1 %1414  ;;  %v800_v41 = vcombine.low %v9916_v56, %v9919_v10 }
  0xd7   : > { %1640 = vrot.lane.b32.xlu0 %v1207_v35, %s9017_s24  ;;  %v1072_v21 = vcombine.low %v9950_v57, %v9955_v15 }
  0xd8   : > { %1642 = vrot.lane.b32.xlu1 %v1343_v38, %s9017_s24  ;;  %v808_v24 = vrot.slane %v800_v41, %v9218_v26 }
  0xd9   : > { %v9863_v49 = vpop.permute.xlu0 %1416 }
  0xda   : > { %v1419_v36 = vpop.permute.xlu1 %1418  ;;  %v1828_v44 = vsel %vm1821_vm1, %v1819_v62, %v9863_v49  ;;  %v1825_v49 = vsel %vm1821_vm1, %v1816_v28, %v9843_v58 }
  0xdb   : > { %1660 = vrot.lane.b32.xlu0 %v409_v31, %s9020_s8  ;;  %v1361_v31 = vcombine.high %v1343_v38, %v13355_v33  ;;  %v1829_v14 = vsel %vm1821_vm1, %v1820_v9, %v1419_v36  ;;  %v9969_v36 = vrot.slane %v905_v11, %v9171_v7 }
  0xdc   : > { %1662 = vrot.lane.b32.xlu1 %v545_v19, %s9020_s8  ;;  %v1225_v19 = vcombine.high %v1207_v35, %v13355_v33  ;;  %v9963_v35 = vrot.slane %v664_v6, %v9218_v26 }
  0xdd   : > { %v9885_v48 = vpop.permute.xlu0 %1436 }
  0xde   : > { %v9877_v22 = vpop.permute.xlu1 %1438 }
  0xdf   : > { %1664 = vrot.lane.b32.xlu0 %v681_v3, %s9020_s8  ;;  %v13362_v3 = vld [vmem:[#allocation17_spill] sm:$0xff] }
  0xe0   : > { %1666 = vrot.lane.b32.xlu1 %v817_v42, %s9020_s8  ;;  %v9966_v42 = vrot.slane %v889_v1, %v9171_v7  ;;  %v1177_v43 = vcombine.high %v13362_v3, %v9691_v32  ;;  %v13368_v1 = vld [vmem:[#allocation14_spill] sm:$0xff] }
  0xe1   : > { %v9911_v54 = vpop.permute.xlu0 %1440  ;;  %v1818_v11 = vsel %vm1812_vm0, %v13368_v1, %v9826_v29 }
  0xe2   : > { %v9907_v8 = vpop.permute.xlu1 %1442  ;;  %v936_v9 = vcombine.low %v9966_v42, %v9969_v36  ;;  %v10012_v6 = vrot.slane %v1177_v43, %v9171_v7 }
  0xe3   : > { %1668 = vrot.lane.b32.xlu0 %v953_v59, %s9020_s8  ;;  %v13366_v59 = vld [vmem:[#allocation11_spill] sm:$0xff]  ;;  %v1834_v29 = vsel %vm1830_vm2, %v1825_v49, %v9907_v8 }
  0xe4   : > { %1670 = vrot.lane.b32.xlu1 %v1089_v2, %s9020_s8  ;;  %v9983_v2 = vrot.slane %v1161_v60, %v9171_v7  ;;  %v1813_v32 = vsel %vm1812_vm0, %v13366_v59, %v9802_v16  ;;  %v10001_v16 = vrot.slane %v1313_v30, %v9171_v7 }
  0xe5   : > { %v9939_v50 = vpop.permute.xlu0 %1444  ;;  %v1822_v58 = vsel %vm1821_vm1, %v1813_v32, %v9786_v17  ;;  %v1080_v17 = vrot.slane %v1072_v21, %v9218_v26  ;;  %v13370_v32 = vld [vmem:[#allocation15_spill] sm:$0xff] }
  0xe6   : > { %v1447_v38 = vpop.permute.xlu1 %1446  ;;  %v1831_v30 = vsel %vm1830_vm2, %v1822_v58, %v9885_v48  ;;  %v944_v48 = vrot.slane %v936_v9, %v9218_v26  ;;  %v1208_v8 = vcombine.low %v9983_v2, %v10012_v6 }
  0xe7   : > { %1672 = vrot.lane.b32.xlu0 %v1225_v19, %s9020_s8  ;;  %v9998_v19 = vrot.slane %v1297_v18, %v9171_v7 }
  0xe8   : > { %1674 = vrot.lane.b32.xlu1 %v1361_v31, %s9020_s8  ;;  %v13367_v31 = vld [vmem:[#allocation24_spill] sm:$0xff] }
  0xe9   : > { %v1449_v55 = vpop.permute.xlu0 %1448  ;;  %v1823_v46 = vsel %vm1821_vm1, %v1814_v61, %v13367_v31 }
  0xea   : > { %v1451_v63 = vpop.permute.xlu1 %1450  ;;  %v1837_v52 = vsel %vm1830_vm2, %v1828_v44, %v1449_v55  ;;  %v1832_v60 = vsel %vm1830_vm2, %v1823_v46, %v9877_v22  ;;  %v1344_v22 = vcombine.low %v9998_v19, %v10001_v16  ;;  %v1817_v44 = vsel %vm1812_vm0, %v13370_v32, %v9828_v39 }
  0xeb   : > { %v1838_v12 = vsel %vm1830_vm2, %v1829_v14, %v1451_v63  ;;  %1692 = vrot.lane.b32.xlu0 %v9942_v34, %s9021_s9  ;;  %v13369_v14 = vld [vmem:[#allocation12_spill] sm:$0xff]  ;;  %v546_v39 = vcombine.high %v9945_v5, %v13355_v33  ;;  %v410_v46 = vcombine.high %v9942_v34, %v13355_v33 }
  0xec   : > { %1694 = vrot.lane.b32.xlu1 %v9945_v5, %s9021_s9  ;;  %v1815_v18 = vsel %vm1812_vm0, %v13369_v14, %v9800_v53  ;;  %v1827_v53 = vsel %vm1821_vm1, %v1818_v11, %v9851_v4  ;;  %v1352_v59 = vrot.slane %v1344_v22, %v9218_v26  ;;  %v818_v11 = vcombine.high %v808_v24, %v13355_v33 }
  0xed   : > { %v1469_v43 = vpop.permute.xlu0 %1468  ;;  %v1824_v28 = vsel %vm1821_vm1, %v1815_v18, %v9845_v37  ;;  %v1836_v4 = vsel %vm1830_vm2, %v1827_v53, %v1447_v38  ;;  %v1216_v37 = vrot.slane %v1208_v8, %v9218_v26  ;;  %v682_v5 = vcombine.high %v9963_v35, %v13355_v33 }
  0xee   : > { %v1471_v41 = vpop.permute.xlu1 %1470  ;;  %v1840_v13 = vsel %vm1839_vm3, %v1831_v30, %v1469_v43  ;;  %v1833_v61 = vsel %vm1830_vm2, %v1824_v28, %v9911_v54  ;;  %v1826_v54 = vsel %vm1821_vm1, %v1817_v44, %v9853_v27  ;;  %v1362_v30 = vcombine.high %v1352_v59, %v13355_v33 }
  0xef   : > { %v1841_v3 = vsel %vm1839_vm3, %v1832_v60, %v1471_v41  ;;  %1696 = vrot.lane.b32.xlu0 %v9963_v35, %s9021_s9  ;;  %v1835_v38 = vsel %vm1830_vm2, %v1826_v54, %v9939_v50  ;;  %v1226_v43 = vcombine.high %v1216_v37, %v13355_v33 }
  0xf0   : > { %1698 = vrot.lane.b32.xlu1 %v808_v24, %s9021_s9  ;;  %v954_v24 = vcombine.high %v944_v48, %v13355_v33 }
  0xf1   : > { %v1473_v62 = vpop.permute.xlu0 %1472 }
  0xf2   : > { %v1475_v47 = vpop.permute.xlu1 %1474  ;;  %v1842_v63 = vsel %vm1839_vm3, %v1833_v61, %v1473_v62 }
  0xf3   : > { %v1843_v20 = vsel %vm1839_vm3, %v1834_v29, %v1475_v47  ;;  %1700 = vrot.lane.b32.xlu0 %v944_v48, %s9021_s9  ;;  %v393_v29 = vcombine.high %v9880_v23, %v9883_v25  ;;  %v665_v23 = vcombine.high %v9902_v45, %v9905_v40  ;;  %v937_v45 = vcombine.high %v9966_v42, %v9969_v36 }
  0xf4   : > { %1702 = vrot.lane.b32.xlu1 %v1080_v17, %s9021_s9 }
  0xf5   : > { %v1477_v49 = vpop.permute.xlu0 %1476 }
  0xf6   : > { %v1479_v55 = vpop.permute.xlu1 %1478  ;;  %v1844_v31 = vsel %vm1839_vm3, %v1835_v38, %v1477_v49 }
  0xf7   : > { %v1845_v21 = vsel %vm1839_vm3, %v1836_v4, %v1479_v55  ;;  %1704 = vrot.lane.b32.xlu0 %v1216_v37, %s9021_s9  ;;  %v1345_v4 = vcombine.high %v9998_v19, %v10001_v16 }
  0xf8   : > { %1706 = vrot.lane.b32.xlu1 %v1352_v59, %s9021_s9 }
  0xf9   : > { %v1481_v1 = vpop.permute.xlu0 %1480  ;;  %v1359_v32 = vrot.slane %v1345_v4, %v9218_v26  ;;  %v13374_v4 = vld [vmem:[#allocation21_spill] sm:$0xff] }
  0xfa   : > { %v1483_v27 = vpop.permute.xlu1 %1482  ;;  %v1846_v50 = vsel %vm1839_vm3, %v1837_v52, %v1481_v1  ;;  %v1090_v52 = vcombine.high %v1080_v17, %v13355_v33 }
  0xfb   : > { %v1847_v9 = vsel %vm1839_vm3, %v1838_v12, %v1483_v27  ;;  %1724 = vrot.lane.b32.xlu0 %v410_v46, %s9022_s10 }
  0xfc   : > { %1726 = vrot.lane.b32.xlu1 %v546_v39, %s9022_s10 }
  0xfd   : > { %v1501_v34 = vpop.permute.xlu0 %1500 }
  0xfe   : > { %v1503_v60 = vpop.permute.xlu1 %1502  ;;  %v10078_v12 = vsel %vm1848_vm4, %v1840_v13, %v1501_v34 }
  0xff   : > { %v10075_v58 = vsel %vm1848_vm4, %v1841_v3, %v1503_v60  ;;  %1728 = vrot.lane.b32.xlu0 %v682_v5, %s9022_s10  ;;  %v529_v3 = vcombine.high %v9888_v51, %v9891_v0  ;;  %v801_v51 = vcombine.high %v9916_v56, %v9919_v10  ;;  %v407_v0 = vrot.slane %v393_v29, %v9218_v26 }
 0x100   : > { %1730 = vrot.lane.b32.xlu1 %v818_v11, %s9022_s10  ;;  %v1073_v56 = vcombine.high %v9950_v57, %v9955_v15  ;;  %v679_v10 = vrot.slane %v665_v23, %v9218_v26  ;;  %v951_v57 = vrot.slane %v937_v45, %v9218_v26  ;;  %v1209_v15 = vcombine.high %v9983_v2, %v10012_v6 }
 0x101   : > { %v1505_v35 = vpop.permute.xlu0 %1504  ;;  %v543_v48 = vrot.slane %v529_v3, %v9218_v26  ;;  %v815_v61 = vrot.slane %v801_v51, %v9218_v26  ;;  %v411_v6 = vcombine.high %v407_v0, %v13355_v33  ;;  %v1363_v60 = vcombine.high %v1359_v32, %v13355_v33 }
 0x102   : > { %v1507_v41 = vpop.permute.xlu1 %1506  ;;  %v1851_v18 = vsel %vm1848_vm4, %v1842_v63, %v1505_v35  ;;  %v1087_v62 = vrot.slane %v1073_v56, %v9218_v26  ;;  %v1223_v19 = vrot.slane %v1209_v15, %v9218_v26 }
 0x103   : > { %v1852_v14 = vsel %vm1848_vm4, %v1843_v20, %v1507_v41  ;;  %1732 = vrot.lane.b32.xlu0 %v954_v24, %s9022_s10  ;;  %v547_v2 = vcombine.high %v543_v48, %v13355_v33  ;;  %v819_v49 = vcombine.high %v815_v61, %v13355_v33 }
 0x104   : > { %1734 = vrot.lane.b32.xlu1 %v1090_v52, %s9022_s10  ;;  %v1091_v27 = vcombine.high %v1087_v62, %v13355_v33  ;;  %v1227_v52 = vcombine.high %v1223_v19, %v13355_v33 }
 0x105   : > { %v1509_v22 = vpop.permute.xlu0 %1508 }
 0x106   : > { %v1511_v13 = vpop.permute.xlu1 %1510  ;;  %v1853_v53 = vsel %vm1848_vm4, %v1844_v31, %v1509_v22  ;;  %v683_v31 = vcombine.high %v679_v10, %v13355_v33 }
 0x107   : > { %v1854_v17 = vsel %vm1848_vm4, %v1845_v21, %v1511_v13  ;;  %1736 = vrot.lane.b32.xlu0 %v1226_v43, %s9022_s10 }
 0x108   : > { %1738 = vrot.lane.b32.xlu1 %v1362_v30, %s9022_s10 }
 0x109   : > { %v1513_v28 = vpop.permute.xlu0 %1512 }
 0x10a   : > { %v1515_v25 = vpop.permute.xlu1 %1514  ;;  %v1855_v47 = vsel %vm1848_vm4, %v1846_v50, %v1513_v28 }
 0x10b   : > { %v1856_v8 = vsel %vm1848_vm4, %v1847_v9, %v1515_v25  ;;  %1756 = vrot.lane.b32.xlu0 %v407_v0, %s9023_s22  ;;  %v955_v9 = vcombine.high %v951_v57, %v13355_v33  ;;  %v13371_v0 = vld [vmem:[#allocation18_spill] sm:$0xff] }
 0x10c   : > { %1758 = vrot.lane.b32.xlu1 %v543_v48, %s9023_s22 }
 0x10d   : > { %v10116_v20 = vpop.permute.xlu0 %1532 }
 0x10e   : > { %v10114_v40 = vpop.permute.xlu1 %1534 }
 0x10f   : > { %1760 = vrot.lane.b32.xlu0 %v679_v10, %s9023_s22  ;;  %v13373_v10 = vld [vmem:[#allocation20_spill] sm:$0xff] }
 0x110   : > { %1762 = vrot.lane.b32.xlu1 %v815_v61, %s9023_s22 }
 0x111   : > { %v1537_v63 = vpop.permute.xlu0 %1536 }
 0x112   : > { %v1539_v42 = vpop.permute.xlu1 %1538  ;;  %v1860_v59 = vsel %vm1857_vm5, %v1851_v18, %v1537_v63  ;;  %v13375_v63 = vld [vmem:[#allocation22_spill] sm:$0xff] }
 0x113   : > { %v1861_v36 = vsel %vm1857_vm5, %v1852_v14, %v1539_v42  ;;  %1764 = vrot.lane.b32.xlu0 %v951_v57, %s9023_s22 }
 0x114   : > { %1766 = vrot.lane.b32.xlu1 %v1087_v62, %s9023_s22 }
 0x115   : > { %v1541_v44 = vpop.permute.xlu0 %1540 }
 0x116   : > { %v1543_v16 = vpop.permute.xlu1 %1542  ;;  %v1862_v37 = vsel %vm1857_vm5, %v1853_v53, %v1541_v44  ;;  %v13376_v44 = vld [vmem:[#allocation23_spill] sm:$0xff] }
 0x117   : > { %1768 = vrot.lane.b32.xlu0 %v1223_v19, %s9023_s22  ;;  %v1863_v5 = vsel %vm1857_vm5, %v1854_v17, %v1543_v16 }
 0x118   : > { %1770 = vrot.lane.b32.xlu1 %v1359_v32, %s9023_s22  ;;  %v1858_v32 = vsel %vm1857_vm5, %v10078_v12, %v10116_v20 }
 0x119   : > { %v1545_v38 = vpop.permute.xlu0 %1544 }
 0x11a   : > { %v1547_v54 = vpop.permute.xlu1 %1546  ;;  %v1864_v21 = vsel %vm1857_vm5, %v1855_v47, %v1545_v38  ;;  %v13377_v38 = vld [vmem:[#allocation25_spill] sm:$0xff] }
 0x11b   : > { %v1865_v55 = vsel %vm1857_vm5, %v1856_v8, %v1547_v54  ;;  %1788 = vrot.lane.b32.xlu0 %v411_v6, %s9024_s23  ;;  %v13372_v8 = vld [vmem:[#allocation19_spill] sm:$0xff]  ;;  %v274_v54 = vld [vmem:[%s13267_s1] sm:$0xff] }
 0x11c   : > { %1790 = vrot.lane.b32.xlu1 %v547_v2, %s9024_s23  ;;  %8432 = vmatprep.subr.msk.mxu0 %vm2443_vm7, %v274_v54 }
 0x11d   : > { %v1565_v46 = vpop.permute.xlu0 %1564  ;;  %8818 = vmatprep.subr.msk.mxu1 %vm2443_vm7, %v274_v54  ;;  %8433 = vmatpush3.xpose.msk.msra.mxu0 %vm2443_vm7, %v274_v54 }
 0x11e   : > { %v10143_v39 = vpop.permute.xlu1 %1566  ;;  %v1867_v19 = vsel %vm1866_vm6, %v1858_v32, %v1565_v46  ;;  %8819 = vmatpush3.xpose.msk.msra.mxu1 %vm2443_vm7, %v274_v54 }
 0x11f   : > { %1792 = vrot.lane.b32.xlu0 %v683_v31, %s9024_s23 }
 0x120   : > { %1794 = vrot.lane.b32.xlu1 %v819_v49, %s9024_s23 }
 0x121   : > { %v1569_v50 = vpop.permute.xlu0 %1568 }
 0x122   : > { %v1571_v1 = vpop.permute.xlu1 %1570  ;;  %v10156_v34 = vsel %vm1866_vm6, %v1860_v59, %v1569_v50 }
 0x123   : > { %v10150_v11 = vsel %vm1866_vm6, %v1861_v36, %v1571_v1  ;;  %1796 = vrot.lane.b32.xlu0 %v955_v9, %s9024_s23 }
 0x124   : > { %1798 = vrot.lane.b32.xlu1 %v1091_v27, %s9024_s23 }
 0x125   : > { %v1573_v41 = vpop.permute.xlu0 %1572 }
 0x126   : > { %v1575_v24 = vpop.permute.xlu1 %1574  ;;  %v10165_v35 = vsel %vm1866_vm6, %v1862_v37, %v1573_v41 }
 0x127   : > { %v10161_v14 = vsel %vm1866_vm6, %v1863_v5, %v1575_v24  ;;  %1800 = vrot.lane.b32.xlu0 %v1227_v52, %s9024_s23 }
 0x128   : > { %1802 = vrot.lane.b32.xlu1 %v1363_v60, %s9024_s23 }
 0x129   : > { %v1577_v30 = vpop.permute.xlu0 %1576 }
 0x12a   : > { %v1579_v18 = vpop.permute.xlu1 %1578  ;;  %v10172_v43 = vsel %vm1866_vm6, %v1864_v21, %v1577_v30  ;;  %v13378_v21 = vld [vmem:[#allocation26_spill] sm:$0xff] }
 0x12b   : > { %v10169_v3 = vsel %vm1866_vm6, %v1865_v55, %v1579_v18 }
 0x12d   : > { %v1597_v29 = vpop.permute.xlu0 %1596 }
 0x12e   : > { %v1599_v33 = vpop.permute.xlu1 %1598  ;;  %v1875_v28 = vsel %vm1812_vm0, %v13372_v8, %v1597_v29 }
 0x12f   : > { %v1876_v23 = vsel %vm1812_vm0, %v13371_v0, %v1599_v33 }
 0x131   : > { %v1601_v17 = vpop.permute.xlu0 %1600 }
 0x132   : > { %v1603_v13 = vpop.permute.xlu1 %1602  ;;  %v1877_v57 = vsel %vm1812_vm0, %v13374_v4, %v1601_v17 }
 0x133   : > { %v1878_v45 = vsel %vm1812_vm0, %v13373_v10, %v1603_v13 }
 0x135   : > { %v1605_v53 = vpop.permute.xlu0 %1604 }
 0x136   : > { %v1607_v22 = vpop.permute.xlu1 %1606  ;;  %v1879_v37 = vsel %vm1812_vm0, %v13376_v44, %v1605_v53 }
 0x137   : > { %v1880_v59 = vsel %vm1812_vm0, %v13375_v63, %v1607_v22 }
 0x139   : > { %v1609_v51 = vpop.permute.xlu0 %1608 }
 0x13a   : > { %v1611_v48 = vpop.permute.xlu1 %1610  ;;  %v1881_v49 = vsel %vm1812_vm0, %v13378_v21, %v1609_v51 }
 0x13b   : > { %v1882_v12 = vsel %vm1812_vm0, %v13377_v38, %v1611_v48 }
 0x13d   : > { %v1629_v47 = vpop.permute.xlu0 %1628 }
 0x13e   : > { %v1631_v25 = vpop.permute.xlu1 %1630  ;;  %v10182_v56 = vsel %vm1821_vm1, %v1875_v28, %v1629_v47 }
 0x13f   : > { %v10179_v61 = vsel %vm1821_vm1, %v1876_v23, %v1631_v25 }
 0x141   : > { %v1633_v15 = vpop.permute.xlu0 %1632 }
 0x142   : > { %v1635_v62 = vpop.permute.xlu1 %1634  ;;  %v1885_v36 = vsel %vm1821_vm1, %v1877_v57, %v1633_v15 }
 0x143   : > { %v1886_v42 = vsel %vm1821_vm1, %v1878_v45, %v1635_v62 }
 0x145   : > { %1931 = vxpose.xlu0.b32.start.end [1/1] (short) %v1867_v19, 128  ;;  %v1637_v2 = vpop.permute.xlu0 %1636 }
 0x146   : > { %v1639_v16 = vpop.permute.xlu1 %1638  ;;  %v1887_v55 = vsel %vm1821_vm1, %v1879_v37, %v1637_v2 }
 0x147   : > { %v1888_v6 = vsel %vm1821_vm1, %v1880_v59, %v1639_v16 }
 0x149   : > { %v1641_v31 = vpop.permute.xlu0 %1640 }
 0x14a   : > { %v1643_v20 = vpop.permute.xlu1 %1642  ;;  %v1889_v27 = vsel %vm1821_vm1, %v1881_v49, %v1641_v31 }
 0x14b   : > { %v1890_v46 = vsel %vm1821_vm1, %v1882_v12, %v1643_v20  ;;  %v1859_v12 = vsel %vm1857_vm5, %v10075_v58, %v10114_v40 }
 0x14c   : > { %v1868_v49 = vsel %vm1866_vm6, %v1859_v12, %v10143_v39 }
 0x14d   : > { %v1661_v1 = vpop.permute.xlu0 %1660 }
 0x14e   : > { %v10213_v9 = vpop.permute.xlu1 %1662  ;;  %v1891_v40 = vsel %vm1830_vm2, %v10182_v56, %v1661_v1 }
 0x151   : > { %v1665_v5 = vpop.permute.xlu0 %1664 }
 0x152   : > { %v1667_v50 = vpop.permute.xlu1 %1666  ;;  %v1893_v52 = vsel %vm1830_vm2, %v1885_v36, %v1665_v5 }
 0x153   : > { %v1894_v60 = vsel %vm1830_vm2, %v1886_v42, %v1667_v50 }
 0x155   : > { %v1669_v41 = vpop.permute.xlu0 %1668 }
 0x156   : > { %v1671_v24 = vpop.permute.xlu1 %1670  ;;  %v1895_v18 = vsel %vm1830_vm2, %v1887_v55, %v1669_v41 }
 0x157   : > { %v1896_v23 = vsel %vm1830_vm2, %v1888_v6, %v1671_v24 }
 0x159   : > { %v1673_v33 = vpop.permute.xlu0 %1672 }
 0x15a   : > { %v1675_v30 = vpop.permute.xlu1 %1674  ;;  %v1897_v13 = vsel %vm1830_vm2, %v1889_v27, %v1673_v33 }
 0x15b   : > { %v1898_v29 = vsel %vm1830_vm2, %v1890_v46, %v1675_v30 }
 0x15d   : > { %v1693_v22 = vpop.permute.xlu0 %1692 }
 0x15e   : > { %v10220_v17 = vpop.permute.xlu1 %1694  ;;  %v1899_v41 = vsel %vm1839_vm3, %v1891_v40, %v1693_v22 }
 0x161   : > { %v1697_v48 = vpop.permute.xlu0 %1696 }
 0x162   : > { %v1699_v53 = vpop.permute.xlu1 %1698  ;;  %v1901_v0 = vsel %vm1839_vm3, %v1893_v52, %v1697_v48 }
 0x163   : > { %v1902_v51 = vsel %vm1839_vm3, %v1894_v60, %v1699_v53 }
 0x165   : > { %v1701_v8 = vpop.permute.xlu0 %1700 }
 0x166   : > { %v1703_v25 = vpop.permute.xlu1 %1702  ;;  %v1903_v47 = vsel %vm1839_vm3, %v1895_v18, %v1701_v8 }
 0x167   : > { %v1904_v28 = vsel %vm1839_vm3, %v1896_v23, %v1703_v25  ;;  %v1892_v25 = vsel %vm1830_vm2, %v10179_v61, %v10213_v9 }
 0x168   : > { %v1900_v8 = vsel %vm1839_vm3, %v1892_v25, %v10220_v17 }
 0x169   : > { %v1705_v45 = vpop.permute.xlu0 %1704 }
 0x16a   : > { %v1707_v10 = vpop.permute.xlu1 %1706  ;;  %v1905_v4 = vsel %vm1839_vm3, %v1897_v13, %v1705_v45 }
 0x16b   : > { %v1906_v62 = vsel %vm1839_vm3, %v1898_v29, %v1707_v10 }
 0x16d   : > { %v1725_v15 = vpop.permute.xlu0 %1724 }
 0x16e   : > { %v1727_v57 = vpop.permute.xlu1 %1726  ;;  %v1907_v18 = vsel %vm1848_vm4, %v1899_v41, %v1725_v15 }
 0x171   : > { %v1729_v36 = vpop.permute.xlu0 %1728 }
 0x172   : > { %v1731_v42 = vpop.permute.xlu1 %1730  ;;  %v1909_v59 = vsel %vm1848_vm4, %v1901_v0, %v1729_v36 }
 0x173   : > { %v1910_v63 = vsel %vm1848_vm4, %v1902_v51, %v1731_v42 }
 0x175   : > { %v1733_v19 = vpop.permute.xlu0 %1732 }
 0x176   : > { %v1735_v32 = vpop.permute.xlu1 %1734  ;;  %v1911_v44 = vsel %vm1848_vm4, %v1903_v47, %v1733_v19 }
 0x177   : > { %v1912_v16 = vsel %vm1848_vm4, %v1904_v28, %v1735_v32  ;;  %v1908_v28 = vsel %vm1848_vm4, %v1900_v8, %v1727_v57 }
 0x179   : > { %v1737_v2 = vpop.permute.xlu0 %1736 }
 0x17a   : > { %v1739_v37 = vpop.permute.xlu1 %1738  ;;  %v1913_v54 = vsel %vm1848_vm4, %v1905_v4, %v1737_v2 }
 0x17b   : > { %v1914_v6 = vsel %vm1848_vm4, %v1906_v62, %v1739_v37 }
 0x17d   : > { %v1757_v38 = vpop.permute.xlu0 %1756 }
 0x17e   : > { %v1759_v55 = vpop.permute.xlu1 %1758  ;;  %v1915_v33 = vsel %vm1857_vm5, %v1907_v18, %v1757_v38 }
 0x17f   : > { %v1916_v10 = vsel %vm1857_vm5, %v1908_v28, %v1759_v55 }
 0x181   : > { %v1761_v21 = vpop.permute.xlu0 %1760 }
 0x182   : > { %v1763_v20 = vpop.permute.xlu1 %1762  ;;  %v1917_v46 = vsel %vm1857_vm5, %v1909_v59, %v1761_v21  ;;  %1995 = vxpose.xlu0.b32.start.end [1/1] (short) %v1868_v49, 128 }
 0x183   : > { %v1918_v31 = vsel %vm1857_vm5, %v1910_v63, %v1763_v20 }
 0x185   : > { %v1765_v50 = vpop.permute.xlu0 %1764 }
 0x186   : > { %v1767_v27 = vpop.permute.xlu1 %1766  ;;  %v1919_v60 = vsel %vm1857_vm5, %v1911_v44, %v1765_v50 }
 0x187   : > { %v10243_v5 = vsel %vm1857_vm5, %v1912_v16, %v1767_v27 }
 0x189   : > { %v1769_v24 = vpop.permute.xlu0 %1768 }
 0x18a   : > { %v1771_v52 = vpop.permute.xlu1 %1770  ;;  %v1921_v39 = vsel %vm1857_vm5, %v1913_v54, %v1769_v24 }
 0x18b   : > { %v10247_v58 = vsel %vm1857_vm5, %v1914_v6, %v1771_v52 }
 0x18d   : > { %v1789_v29 = vpop.permute.xlu0 %1788 }
 0x18e   : > { %v1791_v30 = vpop.permute.xlu1 %1790  ;;  %v1923_v13 = vsel %vm1866_vm6, %v1915_v33, %v1789_v29 }
 0x18f   : > { %1963 = vxpose.xlu1.b32.start.end [1/1] (short) %v1923_v13, 128  ;;  %v1924_v62 = vsel %vm1866_vm6, %v1916_v10, %v1791_v30 }
 0x191   : > { %v1793_v48 = vpop.permute.xlu0 %1792 }
 0x192   : > { %v1795_v53 = vpop.permute.xlu1 %1794  ;;  %v1925_v56 = vsel %vm1866_vm6, %v1917_v46, %v1793_v48 }
 0x193   : > { %v10257_v51 = vsel %vm1866_vm6, %v1918_v31, %v1795_v53 }
 0x195   : > { %v1797_v1 = vpop.permute.xlu0 %1796 }
 0x196   : > { %v10261_v0 = vsel %vm1866_vm6, %v1919_v60, %v1797_v1  ;;  %v10292_v44 = vpop.permute.xlu1 %1798 }
 0x199   : > { %v1801_v22 = vpop.permute.xlu0 %1800 }
 0x19a   : > { %v10264_v23 = vsel %vm1866_vm6, %v1921_v39, %v1801_v22  ;;  %v10294_v6 = vpop.permute.xlu1 %1802 }
 0x1bf   : > { %2059 = vxpose.xlu0.b32.start.end [1/1] (short) %v10156_v34, 128 }
 0x1c5   : > { %v1947_v47 = vpop.trf.xlu0 }
 0x1c6   : > { %8434 = vmatprep.mubr.msk.f32.mxu0 %vm2443_vm7, %v1947_v47 }
 0x1c9   : > { %v1948_v45 = vpop.trf.xlu0 }
 0x1ca   : > { %8435 = vmatmul.mubr.msk.f32.vlgmr.msra.gmra.mrb[0].mxu0 %vm2443_vm7, %v1948_v45 }
 0x1cc   : > { %2027 = vxpose.xlu1.b32.start.end [1/1] (short) %v1924_v62, 128 }
 0x1cd   : > { %v1949_v4 = vpop.trf.xlu0 }
 0x1ce   : > { %8437 = vmatprep.mubr.msk.f32.mxu0 %vm2443_vm7, %v1949_v4 }
 0x1d1   : > { %v1950_v34 = vpop.trf.xlu0 }
 0x1d2   : > { %8438 = vmatmul.mubr.msk.f32.gmra.mrb[2].mxu0 %vm2443_vm7, %v1950_v34 }
 0x1d5   : > { %v1951_v61 = vpop.trf.xlu0 }
 0x1d6   : > { %8440 = vmatprep.mubr.msk.f32.mxu0 %vm2443_vm7, %v1951_v61 }
 0x1d9   : > { %v1952_v9 = vpop.trf.xlu0 }
 0x1da   : > { %8441 = vmatmul.mubr.msk.f32.gmra.mrb[4].mxu0 %vm2443_vm7, %v1952_v9 }
 0x1dd   : > { %v1953_v17 = vpop.trf.xlu0 }
 0x1de   : > { %8443 = vmatprep.mubr.msk.f32.mxu0 %vm2443_vm7, %v1953_v17 }
 0x1e1   : > { %v1954_v57 = vpop.trf.xlu0 }
 0x1e2   : > { %8444 = vmatmul.mubr.msk.f32.gmra.mrb[6].mxu0 %vm2443_vm7, %v1954_v57 }
 0x1e5   : > { %v1955_v15 = vpop.trf.xlu0 }
 0x1e6   : > { %8446 = vmatprep.mubr.msk.f32.mxu0 %vm2443_vm7, %v1955_v15 }
 0x1e9   : > { %v1956_v42 = vpop.trf.xlu0 }
 0x1ea   : > { %8447 = vmatmul.mubr.msk.f32.gmra.mrb[8].mxu0 %vm2443_vm7, %v1956_v42 }
 0x1ed   : > { %v1957_v36 = vpop.trf.xlu0 }
 0x1ee   : > { %8449 = vmatprep.mubr.msk.f32.mxu0 %vm2443_vm7, %v1957_v36 }
 0x1f1   : > { %v1958_v63 = vpop.trf.xlu0 }
 0x1f2   : > { %8450 = vmatmul.mubr.msk.f32.gmra.mrb[10].mxu0 %vm2443_vm7, %v1958_v63 }
 0x1f5   : > { %v1959_v59 = vpop.trf.xlu0 }
 0x1f6   : > { %8452 = vmatprep.mubr.msk.f32.mxu0 %vm2443_vm7, %v1959_v59 }
 0x1f9   : > { %v1960_v32 = vpop.trf.xlu0 }
 0x1fa   : > { %8453 = vmatmul.mubr.msk.f32.gmra.mrb[12].mxu0 %vm2443_vm7, %v1960_v32 }
 0x1fd   : > { %v1961_v19 = vpop.trf.xlu0  ;;  %2123 = vxpose.xlu0.b32.start.end [1/1] (short) %v10150_v11, 128 }
 0x1fe   : > { %8455 = vmatprep.mubr.msk.f32.mxu0 %vm2443_vm7, %v1961_v19 }
 0x201   : > { %v1962_v16 = vpop.trf.xlu0 }
 0x202   : > { %8456 = vmatmul.mubr.msk.f32.gmra.mrb[14].mxu0 %vm2443_vm7, %v1962_v16 }
 0x205   : > { %v2011_v37 = vpop.trf.xlu0 }
 0x209   : > { %2091 = vxpose.xlu1.b32.start.end [1/1] (short) %v1925_v56, 128  ;;  %v2012_v2 = vpop.trf.xlu0 }
 0x20d   : > { %v2013_v54 = vpop.trf.xlu0 }
 0x20f   : > { %v1979_v55 = vpop.trf.xlu1 }
 0x210   : > { %8458 = vmatprep.mubr.msk.f32.mxu0 %vm2443_vm7, %v1979_v55 }
 0x211   : > { %v2014_v38 = vpop.trf.xlu0 }
 0x213   : > { %v1980_v12 = vpop.trf.xlu1 }
 0x214   : > { %8459 = vmatmul.mubr.msk.f32.gmra.mrb[16].mxu0 %vm2443_vm7, %v1980_v12 }
 0x215   : > { %v2015_v11 = vpop.trf.xlu0 }
 0x217   : > { %v1981_v20 = vpop.trf.xlu1 }
 0x218   : > { %8461 = vmatprep.mubr.msk.f32.mxu0 %vm2443_vm7, %v1981_v20 }
 0x219   : > { %v2016_v21 = vpop.trf.xlu0 }
 0x21b   : > { %v1982_v49 = vpop.trf.xlu1 }
 0x21c   : > { %8462 = vmatmul.mubr.msk.f32.gmra.mrb[18].mxu0 %vm2443_vm7, %v1982_v49 }
 0x21d   : > { %v2017_v31 = vpop.trf.xlu0 }
 0x21f   : > { %v1983_v46 = vpop.trf.xlu1 }
 0x220   : > { %8464 = vmatprep.mubr.msk.f32.mxu0 %vm2443_vm7, %v1983_v46 }
 0x221   : > { %v2018_v27 = vpop.trf.xlu0 }
 0x223   : > { %v1984_v50 = vpop.trf.xlu1 }
 0x224   : > { %8465 = vmatmul.mubr.msk.f32.gmra.mrb[20].mxu0 %vm2443_vm7, %v1984_v50 }
 0x225   : > { %v2019_v60 = vpop.trf.xlu0 }
 0x227   : > { %v1985_v52 = vpop.trf.xlu1 }
 0x228   : > { %8467 = vmatprep.mubr.msk.f32.mxu0 %vm2443_vm7, %v1985_v52 }
 0x229   : > { %v2020_v24 = vpop.trf.xlu0 }
 0x22b   : > { %v1986_v40 = vpop.trf.xlu1 }
 0x22c   : > { %8468 = vmatmul.mubr.msk.f32.gmra.mrb[22].mxu0 %vm2443_vm7, %v1986_v40 }
 0x22d   : > { %v2021_v39 = vpop.trf.xlu0 }
 0x22f   : > { %v1987_v41 = vpop.trf.xlu1 }
 0x230   : > { %8470 = vmatprep.mubr.msk.f32.mxu0 %vm2443_vm7, %v1987_v41 }
 0x231   : > { %v2022_v18 = vpop.trf.xlu0 }
 0x233   : > { %v1988_v30 = vpop.trf.xlu1 }
 0x234   : > { %8471 = vmatmul.mubr.msk.f32.gmra.mrb[24].mxu0 %vm2443_vm7, %v1988_v30 }
 0x235   : > { %v2023_v33 = vpop.trf.xlu0 }
 0x237   : > { %v1989_v29 = vpop.trf.xlu1 }
 0x238   : > { %8473 = vmatprep.mubr.msk.f32.mxu0 %vm2443_vm7, %v1989_v29 }
 0x239   : > { %v2024_v13 = vpop.trf.xlu0 }
 0x23b   : > { %v1990_v53 = vpop.trf.xlu1 }
 0x23c   : > { %8474 = vmatmul.mubr.msk.f32.gmra.mrb[26].mxu0 %vm2443_vm7, %v1990_v53 }
 0x23d   : > { %v2025_v48 = vpop.trf.xlu0  ;;  %2187 = vxpose.xlu0.b32.start.end [1/1] (short) %v10165_v35, 128 }
 0x23f   : > { %v1991_v56 = vpop.trf.xlu1 }
 0x240   : > { %8476 = vmatprep.mubr.msk.f32.mxu0 %vm2443_vm7, %v1991_v56 }
 0x241   : > { %v2026_v1 = vpop.trf.xlu0 }
 0x243   : > { %v1992_v22 = vpop.trf.xlu1 }
 0x244   : > { %8477 = vmatmul.mubr.msk.f32.gmra.mrb[28].mxu0 %vm2443_vm7, %v1992_v22 }
 0x245   : > { %v10311_v25 = vpop.trf.xlu0 }
 0x247   : > { %v1993_v8 = vpop.trf.xlu1  ;;  %2155 = vxpose.xlu1.b32.start.end [1/1] (short) %v10257_v51, 128 }
 0x248   : > { %8479 = vmatprep.mubr.msk.f32.mxu0 %vm2443_vm7, %v1993_v8 }
 0x249   : > { %v10315_v28 = vpop.trf.xlu0 }
 0x24b   : > { %v1994_v47 = vpop.trf.xlu1 }
 0x24c   : > { %8480 = vmatmul.mubr.msk.f32.gmra.mrb[30].mxu0 %vm2443_vm7, %v1994_v47 }
 0x24d   : > { %8482 = vmatprep.mubr.msk.f32.mxu0 %vm2443_vm7, %v2011_v37  ;;  %v10319_v35 = vpop.trf.xlu0 }
 0x24f   : > { %v2043_v10 = vpop.trf.xlu1 }
 0x250   : > { %8483 = vmatmul.mubr.msk.f32.gmra.mrb[32].mxu0 %vm2443_vm7, %v2012_v2 }
 0x251   : > { %8485 = vmatprep.mubr.msk.f32.mxu0 %vm2443_vm7, %v2013_v54  ;;  %v10323_v45 = vpop.trf.xlu0 }
 0x253   : > { %v2044_v62 = vpop.trf.xlu1 }
 0x254   : > { %8486 = vmatmul.mubr.msk.f32.gmra.mrb[34].mxu0 %vm2443_vm7, %v2014_v38 }
 0x255   : > { %8488 = vmatprep.mubr.msk.f32.mxu0 %vm2443_vm7, %v2015_v11  ;;  %v10327_v51 = vpop.trf.xlu0 }
 0x257   : > { %v2045_v4 = vpop.trf.xlu1 }
 0x258   : > { %8489 = vmatmul.mubr.msk.f32.gmra.mrb[36].mxu0 %vm2443_vm7, %v2016_v21 }
 0x259   : > { %8491 = vmatprep.mubr.msk.f32.mxu0 %vm2443_vm7, %v2017_v31  ;;  %v10331_v34 = vpop.trf.xlu0 }
 0x25b   : > { %v2046_v61 = vpop.trf.xlu1 }
 0x25c   : > { %8492 = vmatmul.mubr.msk.f32.gmra.mrb[38].mxu0 %vm2443_vm7, %v2018_v27 }
 0x25d   : > { %8494 = vmatprep.mubr.msk.f32.mxu0 %vm2443_vm7, %v2019_v60  ;;  %v2081_v9 = vpop.trf.xlu0 }
 0x25f   : > { %v2047_v17 = vpop.trf.xlu1 }
 0x260   : > { %8495 = vmatmul.mubr.msk.f32.gmra.mrb[40].mxu0 %vm2443_vm7, %v2020_v24 }
 0x261   : > { %8497 = vmatprep.mubr.msk.f32.mxu0 %vm2443_vm7, %v2021_v39  ;;  %v2082_v57 = vpop.trf.xlu0 }
 0x263   : > { %v2048_v15 = vpop.trf.xlu1 }
 0x264   : > { %8498 = vmatmul.mubr.msk.f32.gmra.mrb[42].mxu0 %vm2443_vm7, %v2022_v18 }
 0x265   : > { %8500 = vmatprep.mubr.msk.f32.mxu0 %vm2443_vm7, %v2023_v33  ;;  %v2083_v42 = vpop.trf.xlu0 }
 0x267   : > { %v2049_v36 = vpop.trf.xlu1 }
 0x268   : > { %8501 = vmatmul.mubr.msk.f32.gmra.mrb[44].mxu0 %vm2443_vm7, %v2024_v13 }
 0x269   : > { %8503 = vmatprep.mubr.msk.f32.mxu0 %vm2443_vm7, %v2025_v48  ;;  %v2084_v63 = vpop.trf.xlu0 }
 0x26b   : > { %v2050_v59 = vpop.trf.xlu1 }
 0x26c   : > { %8504 = vmatmul.mubr.msk.f32.gmra.mrb[46].mxu0 %vm2443_vm7, %v2026_v1 }
 0x26d   : > { %v2085_v32 = vpop.trf.xlu0  ;;  %8506 = vmatprep.mubr.msk.f32.mxu0 %vm2443_vm7, %v2043_v10 }
 0x26f   : > { %v2051_v19 = vpop.trf.xlu1 }
 0x270   : > { %8507 = vmatmul.mubr.msk.f32.gmra.mrb[48].mxu0 %vm2443_vm7, %v2044_v62 }
 0x271   : > { %v2086_v16 = vpop.trf.xlu0  ;;  %8509 = vmatprep.mubr.msk.f32.mxu0 %vm2443_vm7, %v2045_v4 }
 0x273   : > { %v2052_v37 = vpop.trf.xlu1 }
 0x274   : > { %8510 = vmatmul.mubr.msk.f32.gmra.mrb[50].mxu0 %vm2443_vm7, %v2046_v61 }
 0x275   : > { %v2087_v2 = vpop.trf.xlu0  ;;  %8512 = vmatprep.mubr.msk.f32.mxu0 %vm2443_vm7, %v2047_v17 }
 0x277   : > { %v2053_v54 = vpop.trf.xlu1 }
 0x278   : > { %8513 = vmatmul.mubr.msk.f32.gmra.mrb[52].mxu0 %vm2443_vm7, %v2048_v15 }
 0x279   : > { %v2088_v55 = vpop.trf.xlu0  ;;  %8515 = vmatprep.mubr.msk.f32.mxu0 %vm2443_vm7, %v2049_v36 }
 0x27b   : > { %v2054_v38 = vpop.trf.xlu1 }
 0x27c   : > { %8516 = vmatmul.mubr.msk.f32.gmra.mrb[54].mxu0 %vm2443_vm7, %v2050_v59 }
 0x27d   : > { %v2089_v12 = vpop.trf.xlu0  ;;  %2251 = vxpose.xlu0.b32.start.end [1/1] (short) %v10161_v14, 128  ;;  %8518 = vmatprep.mubr.msk.f32.mxu0 %vm2443_vm7, %v2051_v19  ;;  %v1928_v19 = vsel %vm1866_vm6, %v10243_v5, %v10292_v44 }
 0x27f   : > { %v2055_v11 = vpop.trf.xlu1 }
 0x280   : > { %8519 = vmatmul.mubr.msk.f32.gmra.mrb[56].mxu0 %vm2443_vm7, %v2052_v37 }
 0x281   : > { %v2090_v20 = vpop.trf.xlu0  ;;  %8521 = vmatprep.mubr.msk.f32.mxu0 %vm2443_vm7, %v2053_v54 }
 0x283   : > { %v2056_v21 = vpop.trf.xlu1 }
 0x284   : > { %8522 = vmatmul.mubr.msk.f32.gmra.mrb[58].mxu0 %vm2443_vm7, %v2054_v38 }
 0x285   : > { %v10355_v49 = vpop.trf.xlu0  ;;  %8524 = vmatprep.mubr.msk.f32.mxu0 %vm2443_vm7, %v2055_v11 }
 0x287   : > { %v2057_v31 = vpop.trf.xlu1  ;;  %2219 = vxpose.xlu1.b32.start.end [1/1] (short) %v10261_v0, 128 }
 0x288   : > { %8525 = vmatmul.mubr.msk.f32.gmra.mrb[60].mxu0 %vm2443_vm7, %v2056_v21 }
 0x289   : > { %v10360_v14 = vpop.trf.xlu0  ;;  %8527 = vmatprep.mubr.msk.f32.mxu0 %vm2443_vm7, %v2057_v31 }
 0x28b   : > { %v2058_v46 = vpop.trf.xlu1 }
 0x28c   : > { %8528 = vmatmul.mubr.msk.f32.gmra.mrb[62].mxu0 %vm2443_vm7, %v2058_v46 }
 0x28d   : > { %8530 = vmatprep.mubr.msk.f32.mxu0 %vm2443_vm7, %v10311_v25  ;;  %v10366_v27 = vpop.trf.xlu0 }
 0x28f   : > { %v2107_v50 = vpop.trf.xlu1 }
 0x290   : > { %8531 = vmatmul.mubr.msk.f32.gmra.mrb[64].mxu0 %vm2443_vm7, %v10315_v28 }
 0x291   : > { %8533 = vmatprep.mubr.msk.f32.mxu0 %vm2443_vm7, %v10319_v35  ;;  %v10372_v0 = vpop.trf.xlu0 }
 0x293   : > { %v2108_v60 = vpop.trf.xlu1 }
 0x294   : > { %8534 = vmatmul.mubr.msk.f32.gmra.mrb[66].mxu0 %vm2443_vm7, %v10323_v45 }
 0x295   : > { %8536 = vmatprep.mubr.msk.f32.mxu0 %vm2443_vm7, %v10327_v51  ;;  %v10378_v52 = vpop.trf.xlu0 }
 0x297   : > { %v2109_v24 = vpop.trf.xlu1 }
 0x298   : > { %8537 = vmatmul.mubr.msk.f32.gmra.mrb[68].mxu0 %vm2443_vm7, %v10331_v34 }
 0x299   : > { %8539 = vmatprep.mubr.msk.f32.mxu0 %vm2443_vm7, %v2081_v9  ;;  %v10383_v40 = vpop.trf.xlu0 }
 0x29b   : > { %v2110_v39 = vpop.trf.xlu1 }
 0x29c   : > { %8540 = vmatmul.mubr.msk.f32.gmra.mrb[70].mxu0 %vm2443_vm7, %v2082_v57 }
 0x29d   : > { %v10386_v41 = vpop.f32.mrb[0].mxu0  ;;  %8542 = vmatprep.mubr.msk.f32.mxu0 %vm2443_vm7, %v2083_v42  ;;  %v10389_v18 = vpop.trf.xlu0 }
 0x29e   : > { %v10391_v30 = vpop.f32.mrb[1].mxu0 }
 0x29f   : > { %v2111_v33 = vpop.trf.xlu1 }
 0x2a0   : > { %8543 = vmatmul.mubr.msk.f32.gmra.mrb[72].mxu0 %vm2443_vm7, %v2084_v63 }
 0x2a1   : > { %8545 = vmatprep.mubr.msk.f32.mxu0 %vm2443_vm7, %v2085_v32  ;;  %v10395_v29 = vpop.trf.xlu0 }
 0x2a3   : > { %v2112_v13 = vpop.trf.xlu1 }
 0x2a4   : > { %8546 = vmatmul.mubr.msk.f32.gmra.mrb[74].mxu0 %vm2443_vm7, %v2086_v16 }
 0x2a5   : > { %v10398_v53 = vpop.f32.mrb[2].mxu0  ;;  %8548 = vmatprep.mubr.msk.f32.mxu0 %vm2443_vm7, %v2087_v2  ;;  %v10401_v48 = vpop.trf.xlu0 }
 0x2a6   : > { %v10403_v56 = vpop.f32.mrb[3].mxu0 }
 0x2a7   : > { %v2113_v1 = vpop.trf.xlu1 }
 0x2a8   : > { %8549 = vmatmul.mubr.msk.f32.gmra.mrb[76].mxu0 %vm2443_vm7, %v2088_v55 }
 0x2a9   : > { %8551 = vmatprep.mubr.msk.f32.mxu0 %vm2443_vm7, %v2089_v12  ;;  %v10407_v22 = vpop.trf.xlu0 }
 0x2ab   : > { %v2114_v25 = vpop.trf.xlu1 }
 0x2ac   : > { %8552 = vmatmul.mubr.msk.f32.gmra.mrb[78].mxu0 %vm2443_vm7, %v2090_v20 }
 0x2ad   : > { %v10410_v8 = vpop.f32.mrb[4].mxu0  ;;  %v10412_v28 = vpop.trf.xlu0  ;;  %8554 = vmatprep.mubr.msk.f32.mxu0 %vm2443_vm7, %v2107_v50 }
 0x2ae   : > { %v10415_v47 = vpop.f32.mrb[5].mxu0 }
 0x2af   : > { %v2115_v35 = vpop.trf.xlu1 }
 0x2b0   : > { %8555 = vmatmul.mubr.msk.f32.gmra.mrb[80].mxu0 %vm2443_vm7, %v2108_v60 }
 0x2b1   : > { %v10418_v10 = vpop.trf.xlu0  ;;  %8557 = vmatprep.mubr.msk.f32.mxu0 %vm2443_vm7, %v2109_v24 }
 0x2b3   : > { %v2116_v45 = vpop.trf.xlu1 }
 0x2b4   : > { %8558 = vmatmul.mubr.msk.f32.gmra.mrb[82].mxu0 %vm2443_vm7, %v2110_v39 }
 0x2b5   : > { %v10422_v62 = vpop.f32.mrb[6].mxu0  ;;  %v10424_v51 = vpop.trf.xlu0  ;;  %8560 = vmatprep.mubr.msk.f32.mxu0 %vm2443_vm7, %v2111_v33 }
 0x2b6   : > { %v10427_v4 = vpop.f32.mrb[7].mxu0 }
 0x2b7   : > { %v2117_v34 = vpop.trf.xlu1 }
 0x2b8   : > { %8561 = vmatmul.mubr.msk.f32.gmra.mrb[84].mxu0 %vm2443_vm7, %v2112_v13 }
 0x2b9   : > { %v10430_v61 = vpop.trf.xlu0  ;;  %8563 = vmatprep.mubr.msk.f32.mxu0 %vm2443_vm7, %v2113_v1 }
 0x2bb   : > { %v2118_v9 = vpop.trf.xlu1 }
 0x2bc   : > { %8564 = vmatmul.mubr.msk.f32.gmra.mrb[86].mxu0 %vm2443_vm7, %v2114_v25 }
 0x2bd   : > { %v10434_v17 = vpop.f32.mrb[8].mxu0  ;;  %v10436_v57 = vpop.trf.xlu0  ;;  %2315 = vxpose.xlu0.b32.start.end [1/1] (short) %v10172_v43, 128  ;;  %8566 = vmatprep.mubr.msk.f32.mxu0 %vm2443_vm7, %v2115_v35 }
 0x2be   : > { %v10440_v15 = vpop.f32.mrb[9].mxu0 }
 0x2bf   : > { %v2119_v42 = vpop.trf.xlu1 }
 0x2c0   : > { %8567 = vmatmul.mubr.msk.f32.gmra.mrb[88].mxu0 %vm2443_vm7, %v2116_v45 }
 0x2c1   : > { %v10443_v36 = vpop.trf.xlu0  ;;  %8569 = vmatprep.mubr.msk.f32.mxu0 %vm2443_vm7, %v2117_v34 }
 0x2c3   : > { %v2120_v63 = vpop.trf.xlu1 }
 0x2c4   : > { %8570 = vmatmul.mubr.msk.f32.gmra.mrb[90].mxu0 %vm2443_vm7, %v2118_v9 }
 0x2c5   : > { %v10447_v59 = vpop.f32.mrb[10].mxu0  ;;  %v2203_v32 = vpop.trf.xlu0  ;;  %8572 = vmatprep.mubr.msk.f32.mxu0 %vm2443_vm7, %v2119_v42 }
 0x2c6   : > { %v10450_v43 = vpop.f32.mrb[11].mxu0  ;;  %8626 = vmatprep.mubr.msk.f32.mxu1 %vm2443_vm7, %v2203_v32 }
 0x2c7   : > { %v2121_v16 = vpop.trf.xlu1  ;;  %2283 = vxpose.xlu1.b32.start.end [1/1] (short) %v1928_v19, 128 }
 0x2c8   : > { %8573 = vmatmul.mubr.msk.f32.gmra.mrb[92].mxu0 %vm2443_vm7, %v2120_v63 }
 0x2c9   : > { %v2204_v37 = vpop.trf.xlu0  ;;  %8575 = vmatprep.mubr.msk.f32.mxu0 %vm2443_vm7, %v2121_v16 }
 0x2ca   : > { %8627 = vmatmul.mubr.msk.f32.vlgmr.msra.gmra.mrb[0].mxu1 %vm2443_vm7, %v2204_v37 }
 0x2cb   : > { %v2122_v2 = vpop.trf.xlu1 }
 0x2cc   : > { %8576 = vmatmul.mubr.msk.f32.gmra.mrb[94].mxu0 %vm2443_vm7, %v2122_v2 }
 0x2cd   : > { %v10460_v54 = vpop.f32.mrb[12].mxu0  ;;  %8578 = vmatprep.mubr.msk.f32.mxu0 %vm2443_vm7, %v10355_v49  ;;  %v2205_v55 = vpop.trf.xlu0 }
 0x2ce   : > { %v10464_v38 = vpop.f32.mrb[13].mxu0  ;;  %8629 = vmatprep.mubr.msk.f32.mxu1 %vm2443_vm7, %v2205_v55 }
 0x2cf   : > { %v2171_v5 = vpop.trf.xlu1 }
 0x2d0   : > { %8579 = vmatmul.mubr.msk.f32.gmra.mrb[96].mxu0 %vm2443_vm7, %v10360_v14 }
 0x2d1   : > { %8581 = vmatprep.mubr.msk.f32.mxu0 %vm2443_vm7, %v10366_v27  ;;  %v2206_v44 = vpop.trf.xlu0 }
 0x2d2   : > { %8630 = vmatmul.mubr.msk.f32.gmra.mrb[2].mxu1 %vm2443_vm7, %v2206_v44 }
 0x2d3   : > { %v2172_v12 = vpop.trf.xlu1 }
 0x2d4   : > { %8582 = vmatmul.mubr.msk.f32.gmra.mrb[98].mxu0 %vm2443_vm7, %v10372_v0 }
 0x2d5   : > { %v10474_v11 = vpop.f32.mrb[14].mxu0  ;;  %8584 = vmatprep.mubr.msk.f32.mxu0 %vm2443_vm7, %v10378_v52  ;;  %v2207_v20 = vpop.trf.xlu0 }
 0x2d6   : > { %v10478_v21 = vpop.f32.mrb[15].mxu0  ;;  %8632 = vmatprep.mubr.msk.f32.mxu1 %vm2443_vm7, %v2207_v20 }
 0x2d7   : > { %v2173_v49 = vpop.trf.xlu1 }
 0x2d8   : > { %8585 = vmatmul.mubr.msk.f32.gmra.mrb[100].mxu0 %vm2443_vm7, %v10383_v40 }
 0x2d9   : > { %8587 = vmatprep.mubr.msk.f32.mxu0 %vm2443_vm7, %v10389_v18  ;;  %v2208_v31 = vpop.trf.xlu0 }
 0x2da   : > { %8633 = vmatmul.mubr.msk.f32.gmra.mrb[4].mxu1 %vm2443_vm7, %v2208_v31 }
 0x2db   : > { %v2174_v14 = vpop.trf.xlu1 }
 0x2dc   : > { %8588 = vmatmul.mubr.msk.f32.gmra.mrb[102].mxu0 %vm2443_vm7, %v10395_v29 }
 0x2dd   : > { %8590 = vmatprep.mubr.msk.f32.mxu0 %vm2443_vm7, %v10401_v48  ;;  %v2209_v46 = vpop.trf.xlu0 }
 0x2de   : > { %8635 = vmatprep.mubr.msk.f32.mxu1 %vm2443_vm7, %v2209_v46 }
 0x2df   : > { %v2175_v27 = vpop.trf.xlu1 }
 0x2e0   : > { %8591 = vmatmul.mubr.msk.f32.gmra.mrb[104].mxu0 %vm2443_vm7, %v10407_v22 }
 0x2e1   : > { %8593 = vmatprep.mubr.msk.f32.mxu0 %vm2443_vm7, %v10412_v28  ;;  %v2210_v50 = vpop.trf.xlu0 }
 0x2e2   : > { %8636 = vmatmul.mubr.msk.f32.gmra.mrb[6].mxu1 %vm2443_vm7, %v2210_v50 }
 0x2e3   : > { %v2176_v0 = vpop.trf.xlu1 }
 0x2e4   : > { %8594 = vmatmul.mubr.msk.f32.gmra.mrb[106].mxu0 %vm2443_vm7, %v10418_v10 }
 0x2e5   : > { %8596 = vmatprep.mubr.msk.f32.mxu0 %vm2443_vm7, %v10424_v51  ;;  %v2211_v60 = vpop.trf.xlu0 }
 0x2e6   : > { %8638 = vmatprep.mubr.msk.f32.mxu1 %vm2443_vm7, %v2211_v60 }
 0x2e7   : > { %v2177_v52 = vpop.trf.xlu1  ;;  %v10501_v24 = vpop.f32.mrb[16].mxu0 }
 0x2e8   : > { %8597 = vmatmul.mubr.msk.f32.gmra.mrb[108].mxu0 %vm2443_vm7, %v10430_v61  ;;  %v10505_v40 = vpop.f32.mrb[17].mxu0 }
 0x2e9   : > { %8599 = vmatprep.mubr.msk.f32.mxu0 %vm2443_vm7, %v10436_v57  ;;  %v2212_v39 = vpop.trf.xlu0 }
 0x2ea   : > { %8639 = vmatmul.mubr.msk.f32.gmra.mrb[8].mxu1 %vm2443_vm7, %v2212_v39 }
 0x2eb   : > { %v2178_v18 = vpop.trf.xlu1 }
 0x2ec   : > { %8600 = vmatmul.mubr.msk.f32.gmra.mrb[110].mxu0 %vm2443_vm7, %v10443_v36 }
 0x2ed   : > { %v2213_v33 = vpop.trf.xlu0  ;;  %8602 = vmatprep.mubr.msk.f32.mxu0 %vm2443_vm7, %v2171_v5 }
 0x2ee   : > { %8641 = vmatprep.mubr.msk.f32.mxu1 %vm2443_vm7, %v2213_v33 }
 0x2ef   : > { %v2179_v29 = vpop.trf.xlu1  ;;  %v10514_v13 = vpop.f32.mrb[18].mxu0 }
 0x2f0   : > { %v10516_v48 = vpop.f32.mrb[19].mxu0  ;;  %8603 = vmatmul.mubr.msk.f32.gmra.mrb[112].mxu0 %vm2443_vm7, %v2172_v12 }
 0x2f1   : > { %v2214_v1 = vpop.trf.xlu0  ;;  %8605 = vmatprep.mubr.msk.f32.mxu0 %vm2443_vm7, %v2173_v49 }
 0x2f2   : > { %8642 = vmatmul.mubr.msk.f32.gmra.mrb[10].mxu1 %vm2443_vm7, %v2214_v1 }
 0x2f3   : > { %v2180_v22 = vpop.trf.xlu1 }
 0x2f4   : > { %8606 = vmatmul.mubr.msk.f32.gmra.mrb[114].mxu0 %vm2443_vm7, %v2174_v14 }
 0x2f5   : > { %v2215_v25 = vpop.trf.xlu0  ;;  %8608 = vmatprep.mubr.msk.f32.mxu0 %vm2443_vm7, %v2175_v27 }
 0x2f6   : > { %8644 = vmatprep.mubr.msk.f32.mxu1 %vm2443_vm7, %v2215_v25 }
 0x2f7   : > { %v2181_v28 = vpop.trf.xlu1  ;;  %v10524_v35 = vpop.f32.mrb[20].mxu0 }
 0x2f8   : > { %v10526_v10 = vpop.f32.mrb[21].mxu0  ;;  %8609 = vmatmul.mubr.msk.f32.gmra.mrb[116].mxu0 %vm2443_vm7, %v2176_v0 }
 0x2f9   : > { %v2216_v45 = vpop.trf.xlu0  ;;  %8611 = vmatprep.mubr.msk.f32.mxu0 %vm2443_vm7, %v2177_v52 }
 0x2fa   : > { %8645 = vmatmul.mubr.msk.f32.gmra.mrb[12].mxu1 %vm2443_vm7, %v2216_v45 }
 0x2fb   : > { %v2182_v51 = vpop.trf.xlu1 }
 0x2fc   : > { %8612 = vmatmul.mubr.msk.f32.gmra.mrb[118].mxu0 %vm2443_vm7, %v2178_v18 }
 0x2fd   : > { %v2217_v34 = vpop.trf.xlu0  ;;  %2379 = vxpose.xlu0.b32.start.end [1/1] (short) %v10169_v3, 128  ;;  %8614 = vmatprep.mubr.msk.f32.mxu0 %vm2443_vm7, %v2179_v29 }
 0x2fe   : > { %8647 = vmatprep.mubr.msk.f32.mxu1 %vm2443_vm7, %v2217_v34 }
 0x2ff   : > { %v2183_v61 = vpop.trf.xlu1  ;;  %v10535_v9 = vpop.f32.mrb[22].mxu0 }
 0x300   : > { %v10537_v57 = vpop.f32.mrb[23].mxu0  ;;  %8615 = vmatmul.mubr.msk.f32.gmra.mrb[120].mxu0 %vm2443_vm7, %v2180_v22 }
 0x301   : > { %v2218_v42 = vpop.trf.xlu0  ;;  %8617 = vmatprep.mubr.msk.f32.mxu0 %vm2443_vm7, %v2181_v28 }
 0x302   : > { %8648 = vmatmul.mubr.msk.f32.gmra.mrb[14].mxu1 %vm2443_vm7, %v2218_v42 }
 0x303   : > { %v2184_v36 = vpop.trf.xlu1 }
 0x304   : > { %8618 = vmatmul.mubr.msk.f32.gmra.mrb[122].mxu0 %vm2443_vm7, %v2182_v51 }
 0x305   : > { %8620 = vmatprep.mubr.msk.f32.mxu0 %vm2443_vm7, %v2183_v61  ;;  %v10544_v3 = vpop.trf.xlu0 }
 0x307   : > { %v2185_v63 = vpop.trf.xlu1  ;;  %2347 = vxpose.xlu1.b32.start.end [1/1] (short) %v10264_v23, 128  ;;  %v10547_v32 = vpop.f32.mrb[24].mxu0 }
 0x308   : > { %v10549_v19 = vpop.f32.mrb[25].mxu0  ;;  %8621 = vmatmul.mubr.msk.f32.gmra.mrb[124].mxu0 %vm2443_vm7, %v2184_v36 }
 0x309   : > { %8623 = vmatprep.mubr.msk.f32.mxu0 %vm2443_vm7, %v2185_v63  ;;  %v10553_v16 = vpop.trf.xlu0 }
 0x30b   : > { %v2186_v37 = vpop.trf.xlu1 }
 0x30c   : > { %8624 = vmatmul.mubr.msk.f32.gmra.mrb[126].mxu0 %vm2443_vm7, %v2186_v37 }
 0x30d   : > { %v10556_v2 = vpop.trf.xlu0 }
 0x30f   : > { %v2235_v55 = vpop.trf.xlu1  ;;  %v10558_v5 = vpop.f32.mrb[26].mxu0 }
 0x310   : > { %13379 = vst [vmem:[#allocation17_spill] sm:$0xff] %v10558_v5  ;;  %v10560_v44 = vpop.f32.mrb[27].mxu0  ;;  %8650 = vmatprep.mubr.msk.f32.mxu1 %vm2443_vm7, %v2235_v55 }
 0x311   : > { %v10563_v23 = vpop.trf.xlu0 }
 0x313   : > { %v2236_v12 = vpop.trf.xlu1 }
 0x314   : > { %8651 = vmatmul.mubr.msk.f32.gmra.mrb[16].mxu1 %vm2443_vm7, %v2236_v12 }
 0x315   : > { %v10566_v20 = vpop.trf.xlu0 }
 0x317   : > { %v2237_v49 = vpop.trf.xlu1  ;;  %v10568_v31 = vpop.f32.mrb[28].mxu0 }
 0x318   : > { %13380 = vst [vmem:[#allocation13_spill] sm:$0xff] %v10568_v31  ;;  %v10570_v14 = vpop.f32.mrb[29].mxu0  ;;  %8653 = vmatprep.mubr.msk.f32.mxu1 %vm2443_vm7, %v2237_v49 }
 0x319   : > { %13381 = vst [vmem:[#allocation10_spill] sm:$0xff] %v10570_v14  ;;  %v10573_v46 = vpop.trf.xlu0 }
 0x31b   : > { %v2238_v27 = vpop.trf.xlu1 }
 0x31c   : > { %8654 = vmatmul.mubr.msk.f32.gmra.mrb[18].mxu1 %vm2443_vm7, %v2238_v27 }
 0x31d   : > { %v10576_v50 = vpop.trf.xlu0 }
 0x31f   : > { %v2239_v0 = vpop.trf.xlu1  ;;  %v10578_v60 = vpop.f32.mrb[30].mxu0 }
 0x320   : > { %13382 = vst [vmem:[#allocation16_spill] sm:$0xff] %v10578_v60  ;;  %v10580_v52 = vpop.f32.mrb[31].mxu0  ;;  %8656 = vmatprep.mubr.msk.f32.mxu1 %vm2443_vm7, %v2239_v0 }
 0x321   : > { %13383 = vst [vmem:[#allocation11_spill] sm:$0xff] %v10580_v52  ;;  %v10583_v39 = vpop.trf.xlu0 }
 0x323   : > { %v2240_v18 = vpop.trf.xlu1  ;;  %v10585_v33 = vpop.f32.mrb[32].mxu0 }
 0x324   : > { %v10587_v29 = vpop.f32.mrb[33].mxu0  ;;  %8657 = vmatmul.mubr.msk.f32.gmra.mrb[20].mxu1 %vm2443_vm7, %v2240_v18 }
 0x325   : > { %v10590_v1 = vpop.trf.xlu0 }
 0x327   : > { %v2241_v22 = vpop.trf.xlu1  ;;  %v10592_v25 = vpop.f32.mrb[34].mxu0 }
 0x328   : > { %v10594_v28 = vpop.f32.mrb[35].mxu0  ;;  %8659 = vmatprep.mubr.msk.f32.mxu1 %vm2443_vm7, %v2241_v22 }
 0x329   : > { %v10597_v45 = vpop.trf.xlu0 }
 0x32b   : > { %v2242_v51 = vpop.trf.xlu1  ;;  %v10599_v34 = vpop.f32.mrb[36].mxu0 }
 0x32c   : > { %v10601_v61 = vpop.f32.mrb[37].mxu0  ;;  %8660 = vmatmul.mubr.msk.f32.gmra.mrb[22].mxu1 %vm2443_vm7, %v2242_v51 }
 0x32d   : > { %v10604_v42 = vpop.trf.xlu0 }
 0x32f   : > { %v2243_v36 = vpop.trf.xlu1  ;;  %v10606_v63 = vpop.f32.mrb[38].mxu0 }
 0x330   : > { %v10608_v37 = vpop.f32.mrb[39].mxu0  ;;  %8662 = vmatprep.mubr.msk.f32.mxu1 %vm2443_vm7, %v2243_v36 }
 0x331   : > { %v10611_v55 = vpop.trf.xlu0 }
 0x333   : > { %v2244_v12 = vpop.trf.xlu1  ;;  %v10613_v49 = vpop.f32.mrb[40].mxu0 }
 0x334   : > { %v10615_v27 = vpop.f32.mrb[41].mxu0  ;;  %8663 = vmatmul.mubr.msk.f32.gmra.mrb[24].mxu1 %vm2443_vm7, %v2244_v12 }
 0x335   : > { %v10618_v0 = vpop.trf.xlu0 }
 0x337   : > { %v2245_v18 = vpop.trf.xlu1  ;;  %v10620_v22 = vpop.f32.mrb[42].mxu0 }
 0x338   : > { %v10622_v51 = vpop.f32.mrb[43].mxu0  ;;  %8665 = vmatprep.mubr.msk.f32.mxu1 %vm2443_vm7, %v2245_v18 }
 0x339   : > { %v10625_v26 = vpop.trf.xlu0 }
 0x33a   : > { %4560 = vxpose.xlu0.b32.start [1/16] (narrow) %v10391_v30, 8 }
 0x33b   : > { %v2246_v36 = vpop.trf.xlu1  ;;  %v10628_v7 = vpop.f32.mrb[44].mxu0 }
 0x33c   : > { %13384 = vst [vmem:[#allocation24_spill] sm:$0xff] %v10628_v7  ;;  %v10630_v60 = vpop.f32.mrb[45].mxu0  ;;  %8666 = vmatmul.mubr.msk.f32.gmra.mrb[26].mxu1 %vm2443_vm7, %v2246_v36 }
 0x33d   : > { %v10633_v12 = vpop.trf.xlu0 }
 0x33e   : > { %4561 = vxpose.xlu0.b32.cont [2/16] (narrow) %v10386_v41, 8  ;;  %v1930_v41 = vsel %vm1866_vm6, %v10247_v58, %v10294_v6 }
 0x33f   : > { %v2247_v52 = vpop.trf.xlu1  ;;  %v10636_v31 = vpop.f32.mrb[46].mxu0 }
 0x340   : > { %13385 = vst [vmem:[#allocation14_spill] sm:$0xff] %v10636_v31  ;;  %v10638_v14 = vpop.f32.mrb[47].mxu0  ;;  %8668 = vmatprep.mubr.msk.f32.mxu1 %vm2443_vm7, %v2247_v52 }
 0x341   : > { %v10641_v18 = vpop.trf.xlu0 }
 0x342   : > { %4562 = vxpose.xlu0.b32.cont [3/16] (narrow) %v10403_v56, 8 }
 0x343   : > { %v2248_v30 = vpop.trf.xlu1  ;;  %v10644_v5 = vpop.f32.mrb[48].mxu0 }
 0x344   : > { %13386 = vst [vmem:[#allocation12_spill] sm:$0xff] %v10644_v5  ;;  %v10646_v7 = vpop.f32.mrb[49].mxu0  ;;  %8669 = vmatmul.mubr.msk.f32.gmra.mrb[28].mxu1 %vm2443_vm7, %v2248_v30 }
 0x345   : > { %13387 = vst [vmem:[#allocation15_spill] sm:$0xff] %v10646_v7  ;;  %v10649_v36 = vpop.trf.xlu0 }
 0x346   : > { %4563 = vxpose.xlu0.b32.cont [4/16] (narrow) %v10398_v53, 8 }
 0x347   : > { %v2249_v52 = vpop.trf.xlu1  ;;  %2411 = vxpose.xlu1.b32.start.end [1/1] (short) %v1930_v41, 128  ;;  %v10655_v31 = vpop.f32.mrb[50].mxu0 }
 0x348   : > { %v10657_v56 = vpop.f32.mrb[51].mxu0  ;;  %8671 = vmatprep.mubr.msk.f32.mxu1 %vm2443_vm7, %v2249_v52 }
 0x349   : > { %v10660_v5 = vpop.trf.xlu0 }
 0x34a   : > { %4564 = vxpose.xlu0.b32.cont [5/16] (narrow) %v10415_v47, 8 }
 0x34b   : > { %v10663_v30 = vpop.f32.mrb[52].mxu0  ;;  %v2250_v7 = vpop.trf.xlu1 }
 0x34c   : > { %13388 = vst [vmem:[#allocation18_spill] sm:$0xff] %v10663_v30  ;;  %v10665_v53 = vpop.f32.mrb[53].mxu0  ;;  %8672 = vmatmul.mubr.msk.f32.gmra.mrb[30].mxu1 %vm2443_vm7, %v2250_v7 }
 0x34d   : > { %8674 = vmatprep.mubr.msk.f32.mxu1 %vm2443_vm7, %v10544_v3  ;;  %v10670_v58 = vpop.trf.xlu0 }
 0x34e   : > { %4565 = vxpose.xlu0.b32.cont [6/16] (narrow) %v10410_v8, 8 }
 0x34f   : > { %v10673_v6 = vpop.f32.mrb[54].mxu0  ;;  %v2299_v41 = vpop.trf.xlu1 }
 0x350   : > { %v10675_v52 = vpop.f32.mrb[55].mxu0  ;;  %8675 = vmatmul.mubr.msk.f32.gmra.mrb[32].mxu1 %vm2443_vm7, %v10553_v16 }
 0x351   : > { %8677 = vmatprep.mubr.msk.f32.mxu1 %vm2443_vm7, %v10556_v2  ;;  %v10682_v7 = vpop.trf.xlu0 }
 0x352   : > { %4566 = vxpose.xlu0.b32.cont [7/16] (narrow) %v10427_v4, 8 }
 0x353   : > { %v10684_v47 = vpop.f32.mrb[56].mxu0  ;;  %v2300_v3 = vpop.trf.xlu1 }
 0x354   : > { %13389 = vst [vmem:[#allocation19_spill] sm:$0xff] %v10684_v47  ;;  %v10686_v30 = vpop.f32.mrb[57].mxu0  ;;  %8678 = vmatmul.mubr.msk.f32.gmra.mrb[34].mxu1 %vm2443_vm7, %v10563_v23 }
 0x355   : > { %8680 = vmatprep.mubr.msk.f32.mxu1 %vm2443_vm7, %v10566_v20  ;;  %v10699_v4 = vpop.trf.xlu0 }
 0x356   : > { %4567 = vxpose.xlu0.b32.cont [8/16] (narrow) %v10422_v62, 8 }
 0x357   : > { %v10693_v8 = vpop.f32.mrb[58].mxu0  ;;  %v2301_v16 = vpop.trf.xlu1 }
 0x358   : > { %13390 = vst [vmem:[#allocation20_spill] sm:$0xff] %v10693_v8  ;;  %v10695_v2 = vpop.f32.mrb[59].mxu0  ;;  %8681 = vmatmul.mubr.msk.f32.gmra.mrb[36].mxu1 %vm2443_vm7, %v10573_v46 }
 0x359   : > { %13391 = vst [vmem:[#allocation21_spill] sm:$0xff] %v10695_v2  ;;  %8683 = vmatprep.mubr.msk.f32.mxu1 %vm2443_vm7, %v10576_v50  ;;  %v10713_v62 = vpop.trf.xlu0 }
 0x35a   : > { %4568 = vxpose.xlu0.b32.cont [9/16] (narrow) %v10440_v15, 8 }
 0x35b   : > { %v10704_v23 = vpop.f32.mrb[60].mxu0  ;;  %v2302_v20 = vpop.trf.xlu1 }
 0x35c   : > { %13392 = vst [vmem:[#allocation22_spill] sm:$0xff] %v10704_v23  ;;  %v10706_v47 = vpop.f32.mrb[61].mxu0  ;;  %8684 = vmatmul.mubr.msk.f32.gmra.mrb[38].mxu1 %vm2443_vm7, %v10583_v39 }
 0x35d   : > { %13393 = vst [vmem:[#allocation23_spill] sm:$0xff] %v10706_v47  ;;  %8686 = vmatprep.mubr.msk.f32.mxu1 %vm2443_vm7, %v10590_v1 }
 0x35e   : > { %4569 = vxpose.xlu0.b32.cont [10/16] (narrow) %v10434_v17, 8  ;;  %v10730_v17 = vpop.trf.xlu0 }
 0x35f   : > { %v10715_v46 = vpop.f32.mrb[62].mxu0  ;;  %v2303_v50 = vpop.trf.xlu1 }
 0x360   : > { %13394 = vst [vmem:[#allocation25_spill] sm:$0xff] %v10715_v46  ;;  %v10717_v8 = vpop.f32.mrb[63].mxu0  ;;  %8687 = vmatmul.mubr.msk.f32.gmra.mrb[40].mxu1 %vm2443_vm7, %v10597_v45 }
 0x361   : > { %13395 = vst [vmem:[#allocation26_spill] sm:$0xff] %v10717_v8  ;;  %8689 = vmatprep.mubr.msk.f32.mxu1 %vm2443_vm7, %v10604_v42 }
 0x362   : > { %4570 = vxpose.xlu0.b32.cont [11/16] (narrow) %v10450_v43, 8  ;;  %v10744_v43 = vpop.trf.xlu0 }
 0x363   : > { %v10724_v15 = vpop.f32.mrb[64].mxu0  ;;  %v2304_v39 = vpop.trf.xlu1 }
 0x364   : > { %v10726_v1 = vpop.f32.mrb[65].mxu0  ;;  %8690 = vmatmul.mubr.msk.f32.gmra.mrb[42].mxu1 %vm2443_vm7, %v10611_v55 }
 0x365   : > { %8692 = vmatprep.mubr.msk.f32.mxu1 %vm2443_vm7, %v10618_v0 }
 0x366   : > { %4571 = vxpose.xlu0.b32.cont [12/16] (narrow) %v10447_v59, 8 }
 0x367   : > { %v10735_v45 = vpop.f32.mrb[66].mxu0  ;;  %v2305_v42 = vpop.trf.xlu1 }
 0x368   : > { %v10737_v46 = vpop.f32.mrb[67].mxu0  ;;  %8693 = vmatmul.mubr.msk.f32.gmra.mrb[44].mxu1 %vm2443_vm7, %v10625_v26 }
 0x369   : > { %8695 = vmatprep.mubr.msk.f32.mxu1 %vm2443_vm7, %v10633_v12 }
 0x36a   : > { %4572 = vxpose.xlu0.b32.cont [13/16] (narrow) %v10464_v38, 8  ;;  %v10759_v38 = vpop.trf.xlu0 }
 0x36b   : > { %v10746_v55 = vpop.f32.mrb[68].mxu0  ;;  %v2306_v0 = vpop.trf.xlu1 }
 0x36c   : > { %v10748_v8 = vpop.f32.mrb[69].mxu0  ;;  %8696 = vmatmul.mubr.msk.f32.gmra.mrb[46].mxu1 %vm2443_vm7, %v10641_v18 }
 0x36d   : > { %8698 = vmatprep.mubr.msk.f32.mxu1 %vm2443_vm7, %v2299_v41 }
 0x36e   : > { %4573 = vxpose.xlu0.b32.cont [14/16] (narrow) %v10460_v54, 8  ;;  %v10770_v54 = vpop.trf.xlu0 }
 0x36f   : > { %v10754_v26 = vpop.f32.mrb[70].mxu0  ;;  %v2307_v59 = vpop.trf.xlu1 }
 0x370   : > { %v10756_v12 = vpop.f32.mrb[71].mxu0  ;;  %8699 = vmatmul.mubr.msk.f32.gmra.mrb[48].mxu1 %vm2443_vm7, %v2300_v3 }
 0x371   : > { %8701 = vmatprep.mubr.msk.f32.mxu1 %vm2443_vm7, %v2301_v16 }
 0x372   : > { %4574 = vxpose.xlu0.b32.cont [15/16] (narrow) %v10478_v21, 8 }
 0x373   : > { %v10763_v23 = vpop.f32.mrb[72].mxu0  ;;  %v2308_v18 = vpop.trf.xlu1 }
 0x374   : > { %v10765_v47 = vpop.f32.mrb[73].mxu0  ;;  %8702 = vmatmul.mubr.msk.f32.gmra.mrb[50].mxu1 %vm2443_vm7, %v2302_v20 }
 0x375   : > { %8704 = vmatprep.mubr.msk.f32.mxu1 %vm2443_vm7, %v2303_v50 }
 0x376   : > { %4575 = vxpose.xlu0.b32.end [16/16] (narrow) %v10474_v11, 8  ;;  %v10784_v11 = vpop.trf.xlu0 }
 0x377   : > { %v10772_v41 = vpop.f32.mrb[74].mxu0  ;;  %v2309_v3 = vpop.trf.xlu1 }
 0x378   : > { %13396 = vst [vmem:[#allocation27_spill] sm:$0xff] %v10772_v41  ;;  %v10774_v2 = vpop.f32.mrb[75].mxu0  ;;  %8705 = vmatmul.mubr.msk.f32.gmra.mrb[52].mxu1 %vm2443_vm7, %v2304_v39 }
 0x379   : > { %8707 = vmatprep.mubr.msk.f32.mxu1 %vm2443_vm7, %v2305_v42 }
 0x37a   : > { %4624 = vxpose.xlu0.b32.start [1/16] (narrow) %v10587_v29, 8  ;;  %v10795_v29 = vpop.trf.xlu0 }
 0x37b   : > { %v10779_v21 = vpop.f32.mrb[76].mxu0  ;;  %v2310_v16 = vpop.trf.xlu1 }
 0x37c   : > { %v10781_v20 = vpop.f32.mrb[77].mxu0  ;;  %8708 = vmatmul.mubr.msk.f32.gmra.mrb[54].mxu1 %vm2443_vm7, %v2306_v0 }
 0x37d   : > { %8710 = vmatprep.mubr.msk.f32.mxu1 %vm2443_vm7, %v2307_v59 }
 0x37e   : > { %4625 = vxpose.xlu0.b32.cont [2/16] (narrow) %v10585_v33, 8 }
 0x37f   : > { %v10788_v50 = vpop.f32.mrb[78].mxu0  ;;  %v2311_v39 = vpop.trf.xlu1 }
 0x380   : > { %v10790_v41 = vpop.f32.mrb[79].mxu0  ;;  %8711 = vmatmul.mubr.msk.f32.gmra.mrb[56].mxu1 %vm2443_vm7, %v2308_v18 }
 0x381   : > { %8713 = vmatprep.mubr.msk.f32.mxu1 %vm2443_vm7, %v2309_v3  ;;  %v2343_v3 = vpop.trf.xlu0 }
 0x382   : > { %4626 = vxpose.xlu0.b32.cont [3/16] (narrow) %v10594_v28, 8 }
 0x383   : > { %v10797_v42 = vpop.f32.mrb[80].mxu0  ;;  %v2312_v0 = vpop.trf.xlu1 }
 0x384   : > { %4592 = vxpose.xlu1.b32.start [1/16] (narrow) %v10505_v40, 8  ;;  %v10800_v59 = vpop.f32.mrb[81].mxu0  ;;  %8714 = vmatmul.mubr.msk.f32.gmra.mrb[58].mxu1 %vm2443_vm7, %v2310_v16 }
 0x385   : > { %8716 = vmatprep.mubr.msk.f32.mxu1 %vm2443_vm7, %v2311_v39 }
 0x386   : > { %4627 = vxpose.xlu0.b32.cont [4/16] (narrow) %v10592_v25, 8 }
 0x387   : > { %v10805_v33 = vpop.f32.mrb[82].mxu0  ;;  %v2313_v18 = vpop.trf.xlu1 }
 0x388   : > { %4593 = vxpose.xlu1.b32.cont [2/16] (narrow) %v10501_v24, 8  ;;  %v10808_v28 = vpop.f32.mrb[83].mxu0  ;;  %8717 = vmatmul.mubr.msk.f32.gmra.mrb[60].mxu1 %vm2443_vm7, %v2312_v0  ;;  %v2344_v24 = vpop.trf.xlu0 }
 0x389   : > { %8719 = vmatprep.mubr.msk.f32.mxu1 %vm2443_vm7, %v2313_v18 }
 0x38a   : > { %4628 = vxpose.xlu0.b32.cont [5/16] (narrow) %v10601_v61, 8 }
 0x38b   : > { %v10813_v40 = vpop.f32.mrb[84].mxu0  ;;  %v2314_v16 = vpop.trf.xlu1 }
 0x38c   : > { %4594 = vxpose.xlu1.b32.cont [3/16] (narrow) %v10516_v48, 8  ;;  %v10816_v25 = vpop.f32.mrb[85].mxu0  ;;  %8720 = vmatmul.mubr.msk.f32.gmra.mrb[62].mxu1 %vm2443_vm7, %v2314_v16 }
 0x38d   : > { %8722 = vmatprep.mubr.msk.f32.mxu1 %vm2443_vm7, %v10649_v36 }
 0x38e   : > { %4629 = vxpose.xlu0.b32.cont [6/16] (narrow) %v10599_v34, 8 }
 0x38f   : > { %v10822_v39 = vpop.f32.mrb[86].mxu0  ;;  %v10824_v0 = vpop.trf.xlu1 }
 0x390   : > { %4595 = vxpose.xlu1.b32.cont [4/16] (narrow) %v10514_v13, 8  ;;  %v10827_v61 = vpop.f32.mrb[87].mxu0  ;;  %8723 = vmatmul.mubr.msk.f32.gmra.mrb[64].mxu1 %vm2443_vm7, %v10660_v5  ;;  %v2345_v13 = vpop.trf.xlu0 }
 0x391   : > { %8725 = vmatprep.mubr.msk.f32.mxu1 %vm2443_vm7, %v10670_v58 }
 0x392   : > { %4630 = vxpose.xlu0.b32.cont [7/16] (narrow) %v10608_v37, 8 }
 0x393   : > { %v10834_v48 = vpop.f32.mrb[88].mxu0  ;;  %v10836_v34 = vpop.trf.xlu1 }
 0x394   : > { %4596 = vxpose.xlu1.b32.cont [5/16] (narrow) %v10526_v10, 8  ;;  %v10839_v36 = vpop.f32.mrb[89].mxu0  ;;  %8726 = vmatmul.mubr.msk.f32.gmra.mrb[66].mxu1 %vm2443_vm7, %v10682_v7  ;;  %v2346_v10 = vpop.trf.xlu0 }
 0x395   : > { %8728 = vmatprep.mubr.msk.f32.mxu1 %vm2443_vm7, %v10699_v4 }
 0x396   : > { %4631 = vxpose.xlu0.b32.cont [8/16] (narrow) %v10606_v63, 8 }
 0x397   : > { %v10846_v5 = vpop.f32.mrb[90].mxu0  ;;  %v2365_v37 = vpop.trf.xlu1 }
 0x398   : > { %13397 = vst [vmem:[#allocation28_spill] sm:$0xff] %v10846_v5  ;;  %4597 = vxpose.xlu1.b32.cont [6/16] (narrow) %v10524_v35, 8  ;;  %v10849_v58 = vpop.f32.mrb[91].mxu0  ;;  %8729 = vmatmul.mubr.msk.f32.gmra.mrb[68].mxu1 %vm2443_vm7, %v10713_v62 }
 0x399   : > { %13398 = vst [vmem:[#allocation29_spill] sm:$0xff] %v10849_v58  ;;  %8731 = vmatprep.mubr.msk.f32.mxu1 %vm2443_vm7, %v10730_v17 }
 0x39a   : > { %4632 = vxpose.xlu0.b32.cont [9/16] (narrow) %v10615_v27, 8  ;;  %v10870_v27 = vpop.trf.xlu0 }
 0x39b   : > { %v10856_v7 = vpop.f32.mrb[92].mxu0  ;;  %v2366_v4 = vpop.trf.xlu1 }
 0x39c   : > { %13399 = vst [vmem:[#allocation30_spill] sm:$0xff] %v10856_v7  ;;  %4598 = vxpose.xlu1.b32.cont [7/16] (narrow) %v10537_v57, 8  ;;  %v10859_v63 = vpop.f32.mrb[93].mxu0  ;;  %8732 = vmatmul.mubr.msk.f32.gmra.mrb[70].mxu1 %vm2443_vm7, %v10744_v43 }
 0x39d   : > { %13400 = vst [vmem:[#allocation31_spill] sm:$0xff] %v10859_v63  ;;  %v10863_v35 = vpop.f32.mrb[0].mxu1  ;;  %8734 = vmatprep.mubr.msk.f32.mxu1 %vm2443_vm7, %v10759_v38  ;;  %v13415_v63 = vld [vmem:[#allocation13_spill] sm:$0xff] }
 0x39e   : > { %13401 = vst [vmem:[#allocation32_spill] sm:$0xff] %v10863_v35  ;;  %v10867_v62 = vpop.f32.mrb[1].mxu1  ;;  %4633 = vxpose.xlu0.b32.cont [10/16] (narrow) %v10613_v49, 8  ;;  %v10882_v43 = vpop.trf.xlu0 }
 0x39f   : > { %13402 = vst [vmem:[#allocation33_spill] sm:$0xff] %v10867_v62  ;;  %v10872_v17 = vpop.f32.mrb[94].mxu0  ;;  %v2367_v18 = vpop.trf.xlu1 }
 0x3a0   : > { %13403 = vst [vmem:[#allocation34_spill] sm:$0xff] %v10872_v17  ;;  %4599 = vxpose.xlu1.b32.cont [8/16] (narrow) %v10535_v9, 8  ;;  %v10875_v57 = vpop.f32.mrb[95].mxu0  ;;  %8735 = vmatmul.mubr.msk.f32.gmra.mrb[72].mxu1 %vm2443_vm7, %v10770_v54 }
 0x3a1   : > { %13404 = vst [vmem:[#allocation35_spill] sm:$0xff] %v10875_v57  ;;  %8737 = vmatprep.mubr.msk.f32.mxu1 %vm2443_vm7, %v10784_v11  ;;  %v13410_v57 = vld [vmem:[#allocation17_spill] sm:$0xff] }
 0x3a2   : > { %4634 = vxpose.xlu0.b32.cont [11/16] (narrow) %v10622_v51, 8  ;;  %v10897_v51 = vpop.trf.xlu0 }
 0x3a3   : > { %v10884_v49 = vpop.f32.mrb[96].mxu0  ;;  %v2368_v38 = vpop.trf.xlu1 }
 0x3a4   : > { %4600 = vxpose.xlu1.b32.cont [9/16] (narrow) %v10549_v19, 8  ;;  %v10887_v16 = vpop.f32.mrb[97].mxu0  ;;  %8738 = vmatmul.mubr.msk.f32.gmra.mrb[74].mxu1 %vm2443_vm7, %v10795_v29 }
 0x3a5   : > { %v10891_v9 = vpop.f32.mrb[2].mxu1  ;;  %8740 = vmatprep.mubr.msk.f32.mxu1 %vm2443_vm7, %v2343_v3 }
 0x3a6   : > { %13405 = vst [vmem:[#allocation36_spill] sm:$0xff] %v10891_v9  ;;  %v10894_v54 = vpop.f32.mrb[3].mxu1  ;;  %4635 = vxpose.xlu0.b32.cont [12/16] (narrow) %v10620_v22, 8  ;;  %v10907_v29 = vpop.trf.xlu0 }
 0x3a7   : > { %13406 = vst [vmem:[#allocation37_spill] sm:$0xff] %v10894_v54  ;;  %v10899_v11 = vpop.f32.mrb[98].mxu0  ;;  %v2369_v17 = vpop.trf.xlu1 }
 0x3a8   : > { %4601 = vxpose.xlu1.b32.cont [10/16] (narrow) %v10547_v32, 8  ;;  %v10902_v19 = vpop.f32.mrb[99].mxu0  ;;  %8741 = vmatmul.mubr.msk.f32.gmra.mrb[76].mxu1 %vm2443_vm7, %v2344_v24 }
 0x3a9   : > { %8743 = vmatprep.mubr.msk.f32.mxu1 %vm2443_vm7, %v2345_v13  ;;  %v13409_v13 = vld [vmem:[#allocation24_spill] sm:$0xff] }
 0x3aa   : > { %4636 = vxpose.xlu0.b32.cont [13/16] (narrow) %v10630_v60, 8  ;;  %v10922_v60 = vpop.trf.xlu0 }
 0x3ab   : > { %v10909_v3 = vpop.f32.mrb[100].mxu0  ;;  %v2370_v22 = vpop.trf.xlu1 }
 0x3ac   : > { %4602 = vxpose.xlu1.b32.cont [11/16] (narrow) %v10560_v44, 8  ;;  %v10912_v9 = vpop.f32.mrb[101].mxu0  ;;  %8744 = vmatmul.mubr.msk.f32.gmra.mrb[78].mxu1 %vm2443_vm7, %v2346_v10 }
 0x3ad   : > { %v10915_v32 = vpop.f32.mrb[4].mxu1  ;;  %8746 = vmatprep.mubr.msk.f32.mxu1 %vm2443_vm7, %v10824_v0 }
 0x3ae   : > { %13407 = vst [vmem:[#allocation38_spill] sm:$0xff] %v10915_v32  ;;  %v10919_v24 = vpop.f32.mrb[5].mxu1  ;;  %4637 = vxpose.xlu0.b32.cont [14/16] (narrow) %v13409_v13, 8  ;;  %v10933_v0 = vpop.trf.xlu0  ;;  %v13411_v32 = vld [vmem:[#allocation10_spill] sm:$0xff] }
 0x3af   : > { %13408 = vst [vmem:[#allocation39_spill] sm:$0xff] %v10919_v24  ;;  %v10924_v54 = vpop.f32.mrb[102].mxu0  ;;  %v2371_v35 = vpop.trf.xlu1 }
 0x3b0   : > { %4603 = vxpose.xlu1.b32.cont [12/16] (narrow) %v13410_v57, 8  ;;  %v10927_v44 = vpop.f32.mrb[103].mxu0  ;;  %8747 = vmatmul.mubr.msk.f32.gmra.mrb[80].mxu1 %vm2443_vm7, %v10836_v34 }
 0x3b1   : > { %8749 = vmatprep.mubr.msk.f32.mxu1 %vm2443_vm7, %v2365_v37  ;;  %v13414_v37 = vld [vmem:[#allocation14_spill] sm:$0xff] }
 0x3b2   : > { %4638 = vxpose.xlu0.b32.cont [15/16] (narrow) %v10638_v14, 8  ;;  %v10947_v14 = vpop.trf.xlu0 }
 0x3b3   : > { %v10935_v10 = vpop.f32.mrb[104].mxu0  ;;  %v2372_v13 = vpop.trf.xlu1 }
 0x3b4   : > { %4604 = vxpose.xlu1.b32.cont [13/16] (narrow) %v13411_v32, 8  ;;  %v10938_v24 = vpop.f32.mrb[105].mxu0  ;;  %8750 = vmatmul.mubr.msk.f32.gmra.mrb[82].mxu1 %vm2443_vm7, %v2366_v4 }
 0x3b5   : > { %v10941_v57 = vpop.f32.mrb[6].mxu1  ;;  %8752 = vmatprep.mubr.msk.f32.mxu1 %vm2443_vm7, %v2367_v18 }
 0x3b6   : > { %13412 = vst [vmem:[#allocation24_spill] sm:$0xff] %v10941_v57  ;;  %v10944_v34 = vpop.f32.mrb[7].mxu1  ;;  %4639 = vxpose.xlu0.b32.end [16/16] (narrow) %v13414_v37, 8  ;;  %v10957_v4 = vpop.trf.xlu0  ;;  %v13417_v57 = vld [vmem:[#allocation11_spill] sm:$0xff] }
 0x3b7   : > { %13413 = vst [vmem:[#allocation17_spill] sm:$0xff] %v10944_v34  ;;  %v10949_v62 = vpop.f32.mrb[106].mxu0  ;;  %v2373_v7 = vpop.trf.xlu1 }
 0x3b8   : > { %4605 = vxpose.xlu1.b32.cont [14/16] (narrow) %v13415_v63, 8  ;;  %v10952_v32 = vpop.f32.mrb[107].mxu0  ;;  %8753 = vmatmul.mubr.msk.f32.gmra.mrb[84].mxu1 %vm2443_vm7, %v2368_v38 }
 0x3b9   : > { %8755 = vmatprep.mubr.msk.f32.mxu1 %vm2443_vm7, %v2369_v17 }
 0x3ba   : > { %4688 = vxpose.xlu0.b32.start [1/16] (narrow) %v10726_v1, 8  ;;  %v2403_v1 = vpop.trf.xlu0 }
 0x3bb   : > { %v10959_v18 = vpop.f32.mrb[108].mxu0  ;;  %v2374_v37 = vpop.trf.xlu1 }
 0x3bc   : > { %13416 = vst [vmem:[#allocation10_spill] sm:$0xff] %v10959_v18  ;;  %4606 = vxpose.xlu1.b32.cont [15/16] (narrow) %v13417_v57, 8  ;;  %v10962_v34 = vpop.f32.mrb[109].mxu0  ;;  %8756 = vmatmul.mubr.msk.f32.gmra.mrb[86].mxu1 %vm2443_vm7, %v2370_v22  ;;  %v13420_v18 = vld [vmem:[#allocation16_spill] sm:$0xff]  ;;  %v13422_v57 = vld [vmem:[#allocation15_spill] sm:$0xff] }
 0x3bd   : > { %v10965_v63 = vpop.f32.mrb[8].mxu1  ;;  %8758 = vmatprep.mubr.msk.f32.mxu1 %vm2443_vm7, %v2371_v35 }
 0x3be   : > { %13418 = vst [vmem:[#allocation14_spill] sm:$0xff] %v10965_v63  ;;  %v10968_v38 = vpop.f32.mrb[9].mxu1  ;;  %4689 = vxpose.xlu0.b32.cont [2/16] (narrow) %v10724_v15, 8  ;;  %v2404_v63 = vpop.trf.xlu0 }
 0x3bf   : > { %13419 = vst [vmem:[#allocation13_spill] sm:$0xff] %v10968_v38  ;;  %v10971_v17 = vpop.f32.mrb[110].mxu0  ;;  %v2375_v5 = vpop.trf.xlu1 }
 0x3c0   : > { %4607 = vxpose.xlu1.b32.end [16/16] (narrow) %v13420_v18, 8  ;;  %v10974_v58 = vpop.f32.mrb[111].mxu0  ;;  %8759 = vmatmul.mubr.msk.f32.gmra.mrb[88].mxu1 %vm2443_vm7, %v2372_v13  ;;  %v13424_v13 = vld [vmem:[#allocation12_spill] sm:$0xff] }
 0x3c1   : > { %8761 = vmatprep.mubr.msk.f32.mxu1 %vm2443_vm7, %v2373_v7 }
 0x3c2   : > { %4690 = vxpose.xlu0.b32.cont [3/16] (narrow) %v10737_v46, 8 }
 0x3c3   : > { %v10979_v22 = vpop.f32.mrb[112].mxu0  ;;  %v2376_v35 = vpop.trf.xlu1 }
 0x3c4   : > { %13421 = vst [vmem:[#allocation11_spill] sm:$0xff] %v10979_v22  ;;  %4656 = vxpose.xlu1.b32.start [1/16] (narrow) %v13422_v57, 8  ;;  %v10982_v15 = vpop.f32.mrb[113].mxu0  ;;  %8762 = vmatmul.mubr.msk.f32.gmra.mrb[90].mxu1 %vm2443_vm7, %v2374_v37  ;;  %v2405_v37 = vpop.trf.xlu0 }
 0x3c5   : > { %v10985_v38 = vpop.f32.mrb[10].mxu1  ;;  %8764 = vmatprep.mubr.msk.f32.mxu1 %vm2443_vm7, %v2375_v5 }
 0x3c6   : > { %13423 = vst [vmem:[#allocation16_spill] sm:$0xff] %v10985_v38  ;;  %v10988_v18 = vpop.f32.mrb[11].mxu1  ;;  %4691 = vxpose.xlu0.b32.cont [4/16] (narrow) %v10735_v45, 8 }
 0x3c7   : > { %v10991_v7 = vpop.f32.mrb[114].mxu0  ;;  %v2377_v46 = vpop.trf.xlu1 }
 0x3c8   : > { %4657 = vxpose.xlu1.b32.cont [2/16] (narrow) %v13424_v13, 8  ;;  %v10994_v22 = vpop.f32.mrb[115].mxu0  ;;  %8765 = vmatmul.mubr.msk.f32.gmra.mrb[92].mxu1 %vm2443_vm7, %v2376_v35  ;;  %v13425_v13 = vld [vmem:[#allocation18_spill] sm:$0xff] }
 0x3c9   : > { %8767 = vmatprep.mubr.msk.f32.mxu1 %vm2443_vm7, %v2377_v46 }
 0x3ca   : > { %4692 = vxpose.xlu0.b32.cont [5/16] (narrow) %v10748_v8, 8 }
 0x3cb   : > { %v10999_v57 = vpop.f32.mrb[116].mxu0  ;;  %v2378_v5 = vpop.trf.xlu1 }
 0x3cc   : > { %4658 = vxpose.xlu1.b32.cont [3/16] (narrow) %v10657_v56, 8  ;;  %v11002_v45 = vpop.f32.mrb[117].mxu0  ;;  %8768 = vmatmul.mubr.msk.f32.gmra.mrb[94].mxu1 %vm2443_vm7, %v2378_v5  ;;  %v2406_v56 = vpop.trf.xlu0  ;;  %v13430_v5 = vld [vmem:[#allocation23_spill] sm:$0xff] }
 0x3cd   : > { %v11005_v38 = vpop.f32.mrb[12].mxu1  ;;  %8770 = vmatprep.mubr.msk.f32.mxu1 %vm2443_vm7, %v10870_v27 }
 0x3ce   : > { %v11009_v35 = vpop.f32.mrb[13].mxu1  ;;  %4693 = vxpose.xlu0.b32.cont [6/16] (narrow) %v10746_v55, 8 }
 0x3cf   : > { %v11012_v8 = vpop.f32.mrb[118].mxu0 }
 0x3d0   : > { %4659 = vxpose.xlu1.b32.cont [4/16] (narrow) %v10655_v31, 8  ;;  %v11015_v46 = vpop.f32.mrb[119].mxu0  ;;  %8771 = vmatmul.mubr.msk.f32.gmra.mrb[96].mxu1 %vm2443_vm7, %v10882_v43 }
 0x3d1   : > { %8773 = vmatprep.mubr.msk.f32.mxu1 %vm2443_vm7, %v10897_v51 }
 0x3d2   : > { %4694 = vxpose.xlu0.b32.cont [7/16] (narrow) %v10756_v12, 8  ;;  %v2407_v12 = vpop.trf.xlu0 }
 0x3d3   : > { %v11022_v27 = vpop.f32.mrb[120].mxu0 }
 0x3d4   : > { %4660 = vxpose.xlu1.b32.cont [5/16] (narrow) %v10665_v53, 8  ;;  %v11025_v55 = vpop.f32.mrb[121].mxu0  ;;  %8774 = vmatmul.mubr.msk.f32.gmra.mrb[98].mxu1 %vm2443_vm7, %v10907_v29 }
 0x3d5   : > { %v11029_v31 = vpop.f32.mrb[14].mxu1  ;;  %8776 = vmatprep.mubr.msk.f32.mxu1 %vm2443_vm7, %v10922_v60 }
 0x3d6   : > { %4695 = vxpose.xlu0.b32.cont [8/16] (narrow) %v10754_v26, 8  ;;  %v11034_v43 = vpop.f32.mrb[15].mxu1  ;;  %v2408_v60 = vpop.trf.xlu0 }
 0x3d7   : > { %v11036_v51 = vpop.f32.mrb[122].mxu0 }
 0x3d8   : > { %4661 = vxpose.xlu1.b32.cont [6/16] (narrow) %v13425_v13, 8  ;;  %v11039_v53 = vpop.f32.mrb[123].mxu0  ;;  %8777 = vmatmul.mubr.msk.f32.gmra.mrb[100].mxu1 %vm2443_vm7, %v10933_v0 }
 0x3d9   : > { %8779 = vmatprep.mubr.msk.f32.mxu1 %vm2443_vm7, %v10947_v14 }
 0x3da   : > { %4696 = vxpose.xlu0.b32.cont [9/16] (narrow) %v10765_v47, 8  ;;  %v13426_v47 = vld [vmem:[#allocation27_spill] sm:$0xff] }
 0x3db   : > { %v11046_v29 = vpop.f32.mrb[124].mxu0 }
 0x3dc   : > { %4662 = vxpose.xlu1.b32.cont [7/16] (narrow) %v10675_v52, 8  ;;  %v11049_v26 = vpop.f32.mrb[125].mxu0  ;;  %8780 = vmatmul.mubr.msk.f32.gmra.mrb[102].mxu1 %vm2443_vm7, %v10957_v4  ;;  %v2409_v52 = vpop.trf.xlu0 }
 0x3dd   : > { %8782 = vmatprep.mubr.msk.f32.mxu1 %vm2443_vm7, %v2403_v1  ;;  %v13429_v1 = vld [vmem:[#allocation20_spill] sm:$0xff] }
 0x3de   : > { %4697 = vxpose.xlu0.b32.cont [10/16] (narrow) %v10763_v23, 8 }
 0x3df   : > { %v11055_v0 = vpop.f32.mrb[126].mxu0 }
 0x3e0   : > { %4663 = vxpose.xlu1.b32.cont [8/16] (narrow) %v10673_v6, 8  ;;  %v11058_v14 = vpop.f32.mrb[127].mxu0  ;;  %8783 = vmatmul.mubr.msk.f32.gmra.mrb[104].mxu1 %vm2443_vm7, %v2404_v63  ;;  %v13427_v6 = vld [vmem:[#allocation19_spill] sm:$0xff] }
 0x3e1   : > { %8785 = vmatprep.mubr.msk.f32.mxu1 %vm2443_vm7, %v2405_v37 }
 0x3e2   : > { %4698 = vxpose.xlu0.b32.cont [11/16] (narrow) %v10774_v2, 8  ;;  %v2410_v2 = vpop.trf.xlu0 }
 0x3e4   : > { %4664 = vxpose.xlu1.b32.cont [9/16] (narrow) %v10686_v30, 8  ;;  %8786 = vmatmul.mubr.msk.f32.gmra.mrb[106].mxu1 %vm2443_vm7, %v2406_v56  ;;  %v13428_v30 = vld [vmem:[#allocation21_spill] sm:$0xff] }
 0x3e5   : > { %8788 = vmatprep.mubr.msk.f32.mxu1 %vm2443_vm7, %v2407_v12 }
 0x3e6   : > { %4699 = vxpose.xlu0.b32.cont [12/16] (narrow) %v13426_v47, 8 }
 0x3e7   : > { %v11067_v23 = vpop.f32.mrb[16].mxu1 }
 0x3e8   : > { %4665 = vxpose.xlu1.b32.cont [10/16] (narrow) %v13427_v6, 8  ;;  %v11070_v4 = vpop.f32.mrb[17].mxu1  ;;  %8789 = vmatmul.mubr.msk.f32.gmra.mrb[108].mxu1 %vm2443_vm7, %v2408_v60  ;;  %v13433_v60 = vld [vmem:[#allocation25_spill] sm:$0xff] }
 0x3e9   : > { %8791 = vmatprep.mubr.msk.f32.mxu1 %vm2443_vm7, %v2409_v52 }
 0x3ea   : > { %4700 = vxpose.xlu0.b32.cont [13/16] (narrow) %v10781_v20, 8  ;;  %v13431_v20 = vld [vmem:[#allocation22_spill] sm:$0xff] }
 0x3ec   : > { %4666 = vxpose.xlu1.b32.cont [11/16] (narrow) %v13428_v30, 8  ;;  %8792 = vmatmul.mubr.msk.f32.gmra.mrb[110].mxu1 %vm2443_vm7, %v2410_v2 }
 0x3ee   : > { %4701 = vxpose.xlu0.b32.cont [14/16] (narrow) %v10779_v21, 8  ;;  %v13432_v21 = vld [vmem:[#allocation26_spill] sm:$0xff] }
 0x3ef   : > { %v11078_v63 = vpop.f32.mrb[18].mxu1 }
 0x3f0   : > { %4667 = vxpose.xlu1.b32.cont [12/16] (narrow) %v13429_v1, 8  ;;  %v11081_v37 = vpop.f32.mrb[19].mxu1 }
 0x3f2   : > { %4702 = vxpose.xlu0.b32.cont [15/16] (narrow) %v10790_v41, 8 }
 0x3f4   : > { %4668 = vxpose.xlu1.b32.cont [13/16] (narrow) %v13430_v5, 8 }
 0x3f6   : > { %4703 = vxpose.xlu0.b32.end [16/16] (narrow) %v10788_v50, 8  ;;  %v2427_v50 = vpop.trf.xlu1 }
 0x3f7   : > { %v11086_v56 = vpop.f32.mrb[20].mxu1  ;;  %8794 = vmatprep.mubr.msk.f32.mxu1 %vm2443_vm7, %v2427_v50 }
 0x3f8   : > { %4669 = vxpose.xlu1.b32.cont [14/16] (narrow) %v13431_v20, 8  ;;  %v11089_v12 = vpop.f32.mrb[21].mxu1 }
 0x3fa   : > { %4752 = vxpose.xlu0.b32.start [1/16] (narrow) %v10887_v16, 8  ;;  %v2428_v52 = vpop.trf.xlu1 }
 0x3fb   : > { %8795 = vmatmul.mubr.msk.f32.gmra.mrb[112].mxu1 %vm2443_vm7, %v2428_v52 }
 0x3fc   : > { %4670 = vxpose.xlu1.b32.cont [15/16] (narrow) %v13432_v21, 8  ;;  %v13437_v21 = vld [vmem:[#allocation31_spill] sm:$0xff] }
 0x3fe   : > { %4753 = vxpose.xlu0.b32.cont [2/16] (narrow) %v10884_v49, 8 }
 0x3ff   : > { %v11094_v13 = vpop.f32.mrb[22].mxu1 }
 0x400   : > { %4671 = vxpose.xlu1.b32.end [16/16] (narrow) %v13433_v60, 8  ;;  %v11097_v41 = vpop.f32.mrb[23].mxu1 }
 0x402   : > { %4754 = vxpose.xlu0.b32.cont [3/16] (narrow) %v10902_v19, 8  ;;  %v2429_v19 = vpop.trf.xlu1 }
 0x403   : > { %8797 = vmatprep.mubr.msk.f32.mxu1 %vm2443_vm7, %v2429_v19  ;;  %v13438_v19 = vld [vmem:[#allocation30_spill] sm:$0xff] }
 0x404   : > { %4720 = vxpose.xlu1.b32.start [1/16] (narrow) %v10800_v59, 8 }
 0x406   : > { %4755 = vxpose.xlu0.b32.cont [4/16] (narrow) %v10899_v11, 8 }
 0x407   : > { %v11103_v16 = vpop.f32.mrb[24].mxu1 }
 0x408   : > { %4721 = vxpose.xlu1.b32.cont [2/16] (narrow) %v10797_v42, 8  ;;  %v11106_v49 = vpop.f32.mrb[25].mxu1  ;;  %v2430_v42 = vpop.trf.xlu1 }
 0x409   : > { %8798 = vmatmul.mubr.msk.f32.gmra.mrb[114].mxu1 %vm2443_vm7, %v2430_v42 }
 0x40a   : > { %4756 = vxpose.xlu0.b32.cont [5/16] (narrow) %v10912_v9, 8 }
 0x40c   : > { %4722 = vxpose.xlu1.b32.cont [3/16] (narrow) %v10808_v28, 8  ;;  %v2431_v9 = vpop.trf.xlu1 }
 0x40d   : > { %8800 = vmatprep.mubr.msk.f32.mxu1 %vm2443_vm7, %v2431_v9 }
 0x40e   : > { %4757 = vxpose.xlu0.b32.cont [6/16] (narrow) %v10909_v3, 8 }
 0x40f   : > { %v11113_v59 = vpop.f32.mrb[26].mxu1 }
 0x410   : > { %4723 = vxpose.xlu1.b32.cont [4/16] (narrow) %v10805_v33, 8  ;;  %v11116_v11 = vpop.f32.mrb[27].mxu1  ;;  %v2432_v33 = vpop.trf.xlu1 }
 0x411   : > { %8801 = vmatmul.mubr.msk.f32.gmra.mrb[116].mxu1 %vm2443_vm7, %v2432_v33 }
 0x412   : > { %4758 = vxpose.xlu0.b32.cont [7/16] (narrow) %v10927_v44, 8 }
 0x414   : > { %4724 = vxpose.xlu1.b32.cont [5/16] (narrow) %v10816_v25, 8  ;;  %v2433_v44 = vpop.trf.xlu1 }
 0x415   : > { %8803 = vmatprep.mubr.msk.f32.mxu1 %vm2443_vm7, %v2433_v44  ;;  %v13440_v44 = vld [vmem:[#allocation35_spill] sm:$0xff] }
 0x416   : > { %4759 = vxpose.xlu0.b32.cont [8/16] (narrow) %v10924_v54, 8 }
 0x417   : > { %v11123_v28 = vpop.f32.mrb[28].mxu1 }
 0x418   : > { %4725 = vxpose.xlu1.b32.cont [6/16] (narrow) %v10813_v40, 8  ;;  %v11126_v3 = vpop.f32.mrb[29].mxu1  ;;  %v2434_v40 = vpop.trf.xlu1 }
 0x419   : > { %8804 = vmatmul.mubr.msk.f32.gmra.mrb[118].mxu1 %vm2443_vm7, %v2434_v40 }
 0x41a   : > { %4760 = vxpose.xlu0.b32.cont [9/16] (narrow) %v10938_v24, 8 }
 0x41c   : > { %4726 = vxpose.xlu1.b32.cont [7/16] (narrow) %v10827_v61, 8  ;;  %v2435_v24 = vpop.trf.xlu1 }
 0x41d   : > { %8806 = vmatprep.mubr.msk.f32.mxu1 %vm2443_vm7, %v2435_v24 }
 0x41e   : > { %4761 = vxpose.xlu0.b32.cont [10/16] (narrow) %v10935_v10, 8 }
 0x41f   : > { %v11133_v25 = vpop.f32.mrb[30].mxu1 }
 0x420   : > { %4727 = vxpose.xlu1.b32.cont [8/16] (narrow) %v10822_v39, 8  ;;  %v11136_v54 = vpop.f32.mrb[31].mxu1  ;;  %v2436_v6 = vpop.trf.xlu1 }
 0x421   : > { %8807 = vmatmul.mubr.msk.f32.gmra.mrb[120].mxu1 %vm2443_vm7, %v2436_v6 }
 0x422   : > { %4762 = vxpose.xlu0.b32.cont [11/16] (narrow) %v10952_v32, 8 }
 0x423   : > { %v11140_v47 = vpop.f32.mrb[32].mxu1 }
 0x424   : > { %4728 = vxpose.xlu1.b32.cont [9/16] (narrow) %v10839_v36, 8  ;;  %v11143_v61 = vpop.f32.mrb[33].mxu1  ;;  %v13434_v36 = vld [vmem:[#allocation29_spill] sm:$0xff]  ;;  %v2437_v30 = vpop.trf.xlu1 }
 0x425   : > { %8809 = vmatprep.mubr.msk.f32.mxu1 %vm2443_vm7, %v2437_v30 }
 0x426   : > { %4763 = vxpose.xlu0.b32.cont [12/16] (narrow) %v10949_v62, 8  ;;  %v13435_v62 = vld [vmem:[#allocation10_spill] sm:$0xff] }
 0x427   : > { %v11147_v10 = vpop.f32.mrb[34].mxu1 }
 0x428   : > { %4729 = vxpose.xlu1.b32.cont [10/16] (narrow) %v10834_v48, 8  ;;  %v11150_v39 = vpop.f32.mrb[35].mxu1  ;;  %v13436_v48 = vld [vmem:[#allocation28_spill] sm:$0xff]  ;;  %v2438_v20 = vpop.trf.xlu1 }
 0x429   : > { %8810 = vmatmul.mubr.msk.f32.gmra.mrb[122].mxu1 %vm2443_vm7, %v2438_v20 }
 0x42a   : > { %4764 = vxpose.xlu0.b32.cont [13/16] (narrow) %v10962_v34, 8 }
 0x42b   : > { %v11154_v32 = vpop.f32.mrb[36].mxu1 }
 0x42c   : > { %4730 = vxpose.xlu1.b32.cont [11/16] (narrow) %v13434_v36, 8  ;;  %v11157_v2 = vpop.f32.mrb[37].mxu1  ;;  %v2439_v50 = vpop.trf.xlu1  ;;  %v13442_v36 = vld [vmem:[#allocation34_spill] sm:$0xff] }
 0x42d   : > { %8812 = vmatprep.mubr.msk.f32.mxu1 %vm2443_vm7, %v2439_v50  ;;  %v13444_v50 = vld [vmem:[#allocation36_spill] sm:$0xff] }
 0x42e   : > { %4765 = vxpose.xlu0.b32.cont [14/16] (narrow) %v13435_v62, 8 }
 0x42f   : > { %v11161_v1 = vpop.f32.mrb[38].mxu1 }
 0x430   : > { %4731 = vxpose.xlu1.b32.cont [12/16] (narrow) %v13436_v48, 8  ;;  %v11164_v5 = vpop.f32.mrb[39].mxu1  ;;  %v2440_v9 = vpop.trf.xlu1  ;;  %v13443_v48 = vld [vmem:[#allocation37_spill] sm:$0xff] }
 0x431   : > { %8813 = vmatmul.mubr.msk.f32.gmra.mrb[124].mxu1 %vm2443_vm7, %v2440_v9  ;;  %v13445_v9 = vld [vmem:[#allocation11_spill] sm:$0xff] }
 0x432   : > { %4766 = vxpose.xlu0.b32.cont [15/16] (narrow) %v10974_v58, 8  ;;  %v13439_v58 = vld [vmem:[#allocation33_spill] sm:$0xff] }
 0x433   : > { %v11168_v34 = vpop.f32.mrb[40].mxu1 }
 0x434   : > { %4732 = vxpose.xlu1.b32.cont [13/16] (narrow) %v13437_v21, 8  ;;  %v11171_v60 = vpop.f32.mrb[41].mxu1  ;;  %v2441_v24 = vpop.trf.xlu1 }
 0x435   : > { %8815 = vmatprep.mubr.msk.f32.mxu1 %vm2443_vm7, %v2441_v24 }
 0x436   : > { %4767 = vxpose.xlu0.b32.end [16/16] (narrow) %v10971_v17, 8  ;;  %v13441_v17 = vld [vmem:[#allocation32_spill] sm:$0xff] }
 0x437   : > { %v11175_v52 = vpop.f32.mrb[42].mxu1 }
 0x438   : > { %4733 = vxpose.xlu1.b32.cont [14/16] (narrow) %v13438_v19, 8  ;;  %v11178_v42 = vpop.f32.mrb[43].mxu1  ;;  %v2442_v62 = vpop.trf.xlu1 }
 0x439   : > { %8816 = vmatmul.mubr.msk.f32.gmra.mrb[126].mxu1 %vm2443_vm7, %v2442_v62 }
 0x43a   : > { %4816 = vxpose.xlu0.b32.start [1/16] (narrow) %v13439_v58, 8 }
 0x43b   : > { %v11182_v33 = vpop.f32.mrb[44].mxu1 }
 0x43c   : > { %4734 = vxpose.xlu1.b32.cont [15/16] (narrow) %v13440_v44, 8  ;;  %v11185_v40 = vpop.f32.mrb[45].mxu1  ;;  %v13446_v44 = vld [vmem:[#allocation39_spill] sm:$0xff] }
 0x43e   : > { %4817 = vxpose.xlu0.b32.cont [2/16] (narrow) %v13441_v17, 8 }
 0x43f   : > { %v11189_v6 = vpop.f32.mrb[46].mxu1 }
 0x440   : > { %4735 = vxpose.xlu1.b32.end [16/16] (narrow) %v13442_v36, 8  ;;  %v11192_v30 = vpop.f32.mrb[47].mxu1  ;;  %v13447_v36 = vld [vmem:[#allocation38_spill] sm:$0xff] }
 0x442   : > { %4818 = vxpose.xlu0.b32.cont [3/16] (narrow) %v13443_v48, 8  ;;  %v13449_v48 = vld [vmem:[#allocation17_spill] sm:$0xff] }
 0x443   : > { %v11196_v20 = vpop.f32.mrb[48].mxu1 }
 0x444   : > { %4784 = vxpose.xlu1.b32.start [1/16] (narrow) %v10982_v15, 8  ;;  %v11199_v21 = vpop.f32.mrb[49].mxu1 }
 0x446   : > { %4819 = vxpose.xlu0.b32.cont [4/16] (narrow) %v13444_v50, 8 }
 0x447   : > { %v11202_v19 = vpop.f32.mrb[50].mxu1 }
 0x448   : > { %4785 = vxpose.xlu1.b32.cont [2/16] (narrow) %v13445_v9, 8  ;;  %v11205_v58 = vpop.f32.mrb[51].mxu1 }
 0x44a   : > { %4820 = vxpose.xlu0.b32.cont [5/16] (narrow) %v13446_v44, 8  ;;  %v13451_v44 = vld [vmem:[#allocation24_spill] sm:$0xff] }
 0x44b   : > { %v11208_v24 = vpop.f32.mrb[52].mxu1 }
 0x44c   : > { %4786 = vxpose.xlu1.b32.cont [3/16] (narrow) %v10994_v22, 8  ;;  %v11211_v17 = vpop.f32.mrb[53].mxu1 }
 0x44e   : > { %4821 = vxpose.xlu0.b32.cont [6/16] (narrow) %v13447_v36, 8 }
 0x44f   : > { %v11214_v15 = vpop.f32.mrb[54].mxu1 }
 0x450   : > { %13448 = vst [vmem:[#allocation15_spill] sm:$0xff] %v11214_v15  ;;  %4787 = vxpose.xlu1.b32.cont [4/16] (narrow) %v10991_v7, 8  ;;  %v11217_v62 = vpop.f32.mrb[55].mxu1  ;;  %v13452_v15 = vld [vmem:[#allocation13_spill] sm:$0xff] }
 0x452   : > { %4822 = vxpose.xlu0.b32.cont [7/16] (narrow) %v13449_v48, 8 }
 0x453   : > { %v11220_v50 = vpop.f32.mrb[56].mxu1 }
 0x454   : > { %13450 = vst [vmem:[#allocation12_spill] sm:$0xff] %v11220_v50  ;;  %4788 = vxpose.xlu1.b32.cont [5/16] (narrow) %v11002_v45, 8  ;;  %v11223_v9 = vpop.f32.mrb[57].mxu1  ;;  %v13454_v50 = vld [vmem:[#allocation14_spill] sm:$0xff] }
 0x456   : > { %4823 = vxpose.xlu0.b32.cont [8/16] (narrow) %v13451_v44, 8 }
 0x457   : > { %v11226_v22 = vpop.f32.mrb[58].mxu1 }
 0x458   : > { %4789 = vxpose.xlu1.b32.cont [6/16] (narrow) %v10999_v57, 8  ;;  %v11229_v36 = vpop.f32.mrb[59].mxu1 }
 0x45a   : > { %4824 = vxpose.xlu0.b32.cont [9/16] (narrow) %v13452_v15, 8 }
 0x45b   : > { %v11232_v7 = vpop.f32.mrb[60].mxu1 }
 0x45c   : > { %13453 = vst [vmem:[#allocation18_spill] sm:$0xff] %v11232_v7  ;;  %4790 = vxpose.xlu1.b32.cont [7/16] (narrow) %v11015_v46, 8  ;;  %v11235_v48 = vpop.f32.mrb[61].mxu1  ;;  %v13455_v7 = vld [vmem:[#allocation16_spill] sm:$0xff] }
 0x45e   : > { %4825 = vxpose.xlu0.b32.cont [10/16] (narrow) %v13454_v50, 8 }
 0x45f   : > { %v11238_v45 = vpop.f32.mrb[62].mxu1 }
 0x460   : > { %4791 = vxpose.xlu1.b32.cont [8/16] (narrow) %v11012_v8, 8  ;;  %v11241_v44 = vpop.f32.mrb[63].mxu1 }
 0x462   : > { %4826 = vxpose.xlu0.b32.cont [11/16] (narrow) %v10988_v18, 8 }
 0x463   : > { %v11244_v57 = vpop.f32.mrb[64].mxu1 }
 0x464   : > { %4792 = vxpose.xlu1.b32.cont [9/16] (narrow) %v11025_v55, 8  ;;  %v11247_v15 = vpop.f32.mrb[65].mxu1 }
 0x466   : > { %4827 = vxpose.xlu0.b32.cont [12/16] (narrow) %v13455_v7, 8 }
 0x467   : > { %v11250_v46 = vpop.f32.mrb[66].mxu1 }
 0x468   : > { %4793 = vxpose.xlu1.b32.cont [10/16] (narrow) %v11022_v27, 8  ;;  %v11253_v50 = vpop.f32.mrb[67].mxu1 }
 0x46a   : > { %4828 = vxpose.xlu0.b32.cont [13/16] (narrow) %v11009_v35, 8 }
 0x46b   : > { %v11256_v8 = vpop.f32.mrb[68].mxu1 }
 0x46c   : > { %4794 = vxpose.xlu1.b32.cont [11/16] (narrow) %v11039_v53, 8  ;;  %v11259_v18 = vpop.f32.mrb[69].mxu1 }
 0x46e   : > { %4829 = vxpose.xlu0.b32.cont [14/16] (narrow) %v11005_v38, 8 }
 0x46f   : > { %v11262_v55 = vpop.f32.mrb[70].mxu1 }
 0x470   : > { %4795 = vxpose.xlu1.b32.cont [12/16] (narrow) %v11036_v51, 8  ;;  %v11265_v7 = vpop.f32.mrb[71].mxu1 }
 0x472   : > { %4830 = vxpose.xlu0.b32.cont [15/16] (narrow) %v11034_v43, 8 }
 0x473   : > { %v11268_v27 = vpop.f32.mrb[72].mxu1 }
 0x474   : > { %4796 = vxpose.xlu1.b32.cont [13/16] (narrow) %v11049_v26, 8  ;;  %v11271_v35 = vpop.f32.mrb[73].mxu1 }
 0x476   : > { %4831 = vxpose.xlu0.b32.end [16/16] (narrow) %v11029_v31, 8 }
 0x477   : > { %v11274_v53 = vpop.f32.mrb[74].mxu1 }
 0x478   : > { %4797 = vxpose.xlu1.b32.cont [14/16] (narrow) %v11046_v29, 8  ;;  %v11277_v38 = vpop.f32.mrb[75].mxu1 }
 0x47a   : > { %4880 = vxpose.xlu0.b32.start [1/16] (narrow) %v11143_v61, 8 }
 0x47b   : > { %v11280_v51 = vpop.f32.mrb[76].mxu1 }
 0x47c   : > { %4798 = vxpose.xlu1.b32.cont [15/16] (narrow) %v11058_v14, 8  ;;  %v11283_v43 = vpop.f32.mrb[77].mxu1 }
 0x47e   : > { %4881 = vxpose.xlu0.b32.cont [2/16] (narrow) %v11140_v47, 8 }
 0x47f   : > { %v11286_v26 = vpop.f32.mrb[78].mxu1 }
 0x480   : > { %4799 = vxpose.xlu1.b32.end [16/16] (narrow) %v11055_v0, 8  ;;  %v11289_v31 = vpop.f32.mrb[79].mxu1 }
 0x482   : > { %4882 = vxpose.xlu0.b32.cont [3/16] (narrow) %v11150_v39, 8 }
 0x483   : > { %v11292_v29 = vpop.f32.mrb[80].mxu1 }
 0x484   : > { %4848 = vxpose.xlu1.b32.start [1/16] (narrow) %v11070_v4, 8  ;;  %v11295_v61 = vpop.f32.mrb[81].mxu1 }
 0x486   : > { %4883 = vxpose.xlu0.b32.cont [4/16] (narrow) %v11147_v10, 8 }
 0x487   : > { %v11298_v14 = vpop.f32.mrb[82].mxu1 }
 0x488   : > { %4849 = vxpose.xlu1.b32.cont [2/16] (narrow) %v11067_v23, 8  ;;  %v11301_v47 = vpop.f32.mrb[83].mxu1 }
 0x48a   : > { %4884 = vxpose.xlu0.b32.cont [5/16] (narrow) %v11157_v2, 8 }
 0x48b   : > { %v11304_v0 = vpop.f32.mrb[84].mxu1 }
 0x48c   : > { %4850 = vxpose.xlu1.b32.cont [3/16] (narrow) %v11081_v37, 8  ;;  %v11307_v39 = vpop.f32.mrb[85].mxu1 }
 0x48e   : > { %4885 = vxpose.xlu0.b32.cont [6/16] (narrow) %v11154_v32, 8 }
 0x48f   : > { %v11310_v4 = vpop.f32.mrb[86].mxu1 }
 0x490   : > { %4851 = vxpose.xlu1.b32.cont [4/16] (narrow) %v11078_v63, 8  ;;  %v11313_v10 = vpop.f32.mrb[87].mxu1 }
 0x492   : > { %4886 = vxpose.xlu0.b32.cont [7/16] (narrow) %v11164_v5, 8 }
 0x493   : > { %v11316_v23 = vpop.f32.mrb[88].mxu1 }
 0x494   : > { %4852 = vxpose.xlu1.b32.cont [5/16] (narrow) %v11089_v12, 8  ;;  %v11319_v2 = vpop.f32.mrb[89].mxu1 }
 0x496   : > { %4887 = vxpose.xlu0.b32.cont [8/16] (narrow) %v11161_v1, 8 }
 0x497   : > { %v11322_v37 = vpop.f32.mrb[90].mxu1 }
 0x498   : > { %4853 = vxpose.xlu1.b32.cont [6/16] (narrow) %v11086_v56, 8  ;;  %v11325_v32 = vpop.f32.mrb[91].mxu1 }
 0x49a   : > { %4888 = vxpose.xlu0.b32.cont [9/16] (narrow) %v11171_v60, 8 }
 0x49b   : > { %v11328_v63 = vpop.f32.mrb[92].mxu1 }
 0x49c   : > { %4854 = vxpose.xlu1.b32.cont [7/16] (narrow) %v11097_v41, 8  ;;  %v11331_v5 = vpop.f32.mrb[93].mxu1 }
 0x49e   : > { %4889 = vxpose.xlu0.b32.cont [10/16] (narrow) %v11168_v34, 8 }
 0x49f   : > { %v11334_v12 = vpop.f32.mrb[94].mxu1 }
 0x4a0   : > { %4855 = vxpose.xlu1.b32.cont [8/16] (narrow) %v11094_v13, 8  ;;  %v11337_v1 = vpop.f32.mrb[95].mxu1 }
 0x4a2   : > { %4890 = vxpose.xlu0.b32.cont [11/16] (narrow) %v11178_v42, 8 }
 0x4a3   : > { %v11340_v56 = vpop.f32.mrb[96].mxu1 }
 0x4a4   : > { %4856 = vxpose.xlu1.b32.cont [9/16] (narrow) %v11106_v49, 8  ;;  %v11343_v60 = vpop.f32.mrb[97].mxu1 }
 0x4a6   : > { %4891 = vxpose.xlu0.b32.cont [12/16] (narrow) %v11175_v52, 8 }
 0x4a7   : > { %v11346_v41 = vpop.f32.mrb[98].mxu1 }
 0x4a8   : > { %4857 = vxpose.xlu1.b32.cont [10/16] (narrow) %v11103_v16, 8  ;;  %v11349_v34 = vpop.f32.mrb[99].mxu1 }
 0x4aa   : > { %4892 = vxpose.xlu0.b32.cont [13/16] (narrow) %v11185_v40, 8 }
 0x4ab   : > { %v11352_v13 = vpop.f32.mrb[100].mxu1 }
 0x4ac   : > { %4858 = vxpose.xlu1.b32.cont [11/16] (narrow) %v11116_v11, 8  ;;  %v11355_v42 = vpop.f32.mrb[101].mxu1 }
 0x4ae   : > { %4893 = vxpose.xlu0.b32.cont [14/16] (narrow) %v11182_v33, 8 }
 0x4af   : > { %v11358_v49 = vpop.f32.mrb[102].mxu1 }
 0x4b0   : > { %4859 = vxpose.xlu1.b32.cont [12/16] (narrow) %v11113_v59, 8  ;;  %v11361_v52 = vpop.f32.mrb[103].mxu1 }
 0x4b2   : > { %4894 = vxpose.xlu0.b32.cont [15/16] (narrow) %v11192_v30, 8 }
 0x4b3   : > { %v11364_v16 = vpop.f32.mrb[104].mxu1 }
 0x4b4   : > { %4860 = vxpose.xlu1.b32.cont [13/16] (narrow) %v11126_v3, 8  ;;  %v11367_v40 = vpop.f32.mrb[105].mxu1 }
 0x4b6   : > { %4895 = vxpose.xlu0.b32.end [16/16] (narrow) %v11189_v6, 8 }
 0x4b7   : > { %v11370_v11 = vpop.f32.mrb[106].mxu1 }
 0x4b8   : > { %4861 = vxpose.xlu1.b32.cont [14/16] (narrow) %v11123_v28, 8  ;;  %v11373_v33 = vpop.f32.mrb[107].mxu1 }
 0x4ba   : > { %4944 = vxpose.xlu0.b32.start [1/16] (narrow) %v11247_v15, 8 }
 0x4bb   : > { %v11376_v59 = vpop.f32.mrb[108].mxu1 }
 0x4bc   : > { %4862 = vxpose.xlu1.b32.cont [15/16] (narrow) %v11136_v54, 8  ;;  %v11379_v30 = vpop.f32.mrb[109].mxu1  ;;  %v13456_v54 = vld [vmem:[#allocation15_spill] sm:$0xff] }
 0x4be   : > { %4945 = vxpose.xlu0.b32.cont [2/16] (narrow) %v11244_v57, 8 }
 0x4bf   : > { %v11382_v3 = vpop.f32.mrb[110].mxu1 }
 0x4c0   : > { %4863 = vxpose.xlu1.b32.end [16/16] (narrow) %v11133_v25, 8  ;;  %v11385_v6 = vpop.f32.mrb[111].mxu1 }
 0x4c2   : > { %4946 = vxpose.xlu0.b32.cont [3/16] (narrow) %v11253_v50, 8  ;;  %v275_v50 = vld [vmem:[%s13268_s2] sm:$0xff] }
 0x4c4   : > { %4912 = vxpose.xlu1.b32.start [1/16] (narrow) %v11199_v21, 8 }
 0x4c6   : > { %4947 = vxpose.xlu0.b32.cont [4/16] (narrow) %v11250_v46, 8 }
 0x4c8   : > { %4913 = vxpose.xlu1.b32.cont [2/16] (narrow) %v11196_v20, 8 }
 0x4ca   : > { %4948 = vxpose.xlu0.b32.cont [5/16] (narrow) %v11259_v18, 8  ;;  %v4576_v18 = vpop.trf.xlu0 }
 0x4cc   : > { %4914 = vxpose.xlu1.b32.cont [3/16] (narrow) %v11205_v58, 8 }
 0x4ce   : > { %4949 = vxpose.xlu0.b32.cont [6/16] (narrow) %v11256_v8, 8  ;;  %v11401_v28 = vpop.f32.mrb[112].mxu1  ;;  %v9025_v8 = vmov 0  }
 0x4cf   : > { %v4481_v25 = vpop.f32.mrb[113].mxu1 }
 0x4d0   : > { %4915 = vxpose.xlu1.b32.cont [4/16] (narrow) %v11202_v19, 8  ;;  %v13457_v19 = vld [vmem:[#allocation12_spill] sm:$0xff] }
 0x4d2   : > { %4950 = vxpose.xlu0.b32.cont [7/16] (narrow) %v11265_v7, 8 }
 0x4d4   : > { %4916 = vxpose.xlu1.b32.cont [5/16] (narrow) %v11211_v17, 8 }
 0x4d6   : > { %4951 = vxpose.xlu0.b32.cont [8/16] (narrow) %v11262_v55, 8  ;;  %v4640_v55 = vpop.trf.xlu0 }
 0x4d8   : > { %4917 = vxpose.xlu1.b32.cont [6/16] (narrow) %v11208_v24, 8 }
 0x4da   : > { %4952 = vxpose.xlu0.b32.cont [9/16] (narrow) %v11271_v35, 8  ;;  %v4704_v7 = vpop.trf.xlu0 }
 0x4dc   : > { %4918 = vxpose.xlu1.b32.cont [7/16] (narrow) %v11217_v62, 8  ;;  %v8799_v20 = vpop.f32.mrb[114].mxu1 }
 0x4dd   : > { %v4491_v21 = vpop.f32.mrb[115].mxu1 }
 0x4de   : > { %4953 = vxpose.xlu0.b32.cont [10/16] (narrow) %v11268_v27, 8  ;;  %v4768_v27 = vpop.trf.xlu0 }
 0x4e0   : > { %4919 = vxpose.xlu1.b32.cont [8/16] (narrow) %v13456_v54, 8 }
 0x4e2   : > { %4954 = vxpose.xlu0.b32.cont [11/16] (narrow) %v11277_v38, 8  ;;  %v4832_v35 = vpop.trf.xlu0 }
 0x4e4   : > { %4920 = vxpose.xlu1.b32.cont [9/16] (narrow) %v11223_v9, 8  ;;  %v8802_v58 = vpop.f32.mrb[116].mxu1  ;;  %v13458_v9 = vld [vmem:[#allocation18_spill] sm:$0xff] }
 0x4e5   : > { %v4501_v24 = vpop.f32.mrb[117].mxu1 }
 0x4e6   : > { %4955 = vxpose.xlu0.b32.cont [12/16] (narrow) %v11274_v53, 8 }
 0x4e8   : > { %4921 = vxpose.xlu1.b32.cont [10/16] (narrow) %v13457_v19, 8 }
 0x4ea   : > { %4956 = vxpose.xlu0.b32.cont [13/16] (narrow) %v11283_v43, 8 }
 0x4ec   : > { %4922 = vxpose.xlu1.b32.cont [11/16] (narrow) %v11229_v36, 8  ;;  %v8805_v17 = vpop.f32.mrb[118].mxu1 }
 0x4ed   : > { %v4511_v62 = vpop.f32.mrb[119].mxu1 }
 0x4ee   : > { %4957 = vxpose.xlu0.b32.cont [14/16] (narrow) %v11280_v51, 8 }
 0x4f0   : > { %4923 = vxpose.xlu1.b32.cont [12/16] (narrow) %v11226_v22, 8 }
 0x4f2   : > { %4958 = vxpose.xlu0.b32.cont [15/16] (narrow) %v11289_v31, 8 }
 0x4f4   : > { %4924 = vxpose.xlu1.b32.cont [13/16] (narrow) %v11235_v48, 8  ;;  %v8808_v36 = vpop.f32.mrb[120].mxu1 }
 0x4f5   : > { %v4521_v57 = vpop.f32.mrb[121].mxu1 }
 0x4f6   : > { %4959 = vxpose.xlu0.b32.end [16/16] (narrow) %v11286_v26, 8 }
 0x4f8   : > { %4925 = vxpose.xlu1.b32.cont [14/16] (narrow) %v13458_v9, 8 }
 0x4fa   : > { %5008 = vxpose.xlu0.b32.start [1/16] (narrow) %v11343_v60, 8  ;;  %v4896_v53 = vpop.trf.xlu0 }
 0x4fc   : > { %4926 = vxpose.xlu1.b32.cont [15/16] (narrow) %v11241_v44, 8  ;;  %v8811_v22 = vpop.f32.mrb[122].mxu1 }
 0x4fd   : > { %v4531_v48 = vpop.f32.mrb[123].mxu1 }
 0x4fe   : > { %5009 = vxpose.xlu0.b32.cont [2/16] (narrow) %v11340_v56, 8 }
 0x500   : > { %4927 = vxpose.xlu1.b32.end [16/16] (narrow) %v11238_v45, 8 }
 0x502   : > { %5010 = vxpose.xlu0.b32.cont [3/16] (narrow) %v11349_v34, 8 }
 0x504   : > { %4976 = vxpose.xlu1.b32.start [1/16] (narrow) %v11295_v61, 8  ;;  %v8814_v44 = vpop.f32.mrb[124].mxu1 }
 0x505   : > { %v4541_v15 = vpop.f32.mrb[125].mxu1 }
 0x506   : > { %5011 = vxpose.xlu0.b32.cont [4/16] (narrow) %v11346_v41, 8 }
 0x508   : > { %4977 = vxpose.xlu1.b32.cont [2/16] (narrow) %v11292_v29, 8 }
 0x50a   : > { %5012 = vxpose.xlu0.b32.cont [5/16] (narrow) %v11355_v42, 8 }
 0x50c   : > { %4978 = vxpose.xlu1.b32.cont [3/16] (narrow) %v11301_v47, 8  ;;  %v8817_v45 = vpop.f32.mrb[126].mxu1 }
 0x50d   : > { %v4551_v46 = vpop.f32.mrb[127].mxu1 }
 0x50e   : > { %5013 = vxpose.xlu0.b32.cont [6/16] (narrow) %v11352_v13, 8 }
 0x510   : > { %4979 = vxpose.xlu1.b32.cont [4/16] (narrow) %v11298_v14, 8 }
 0x512   : > { %5014 = vxpose.xlu0.b32.cont [7/16] (narrow) %v11361_v52, 8 }
 0x514   : > { %4980 = vxpose.xlu1.b32.cont [5/16] (narrow) %v11307_v39, 8 }
 0x516   : > { %5015 = vxpose.xlu0.b32.cont [8/16] (narrow) %v11358_v49, 8  ;;  %v4608_v49 = vpop.trf.xlu1 }
 0x518   : > { %4981 = vxpose.xlu1.b32.cont [6/16] (narrow) %v11304_v0, 8 }
 0x51a   : > { %5016 = vxpose.xlu0.b32.cont [9/16] (narrow) %v11367_v40, 8  ;;  %v4672_v52 = vpop.trf.xlu1 }
 0x51c   : > { %4982 = vxpose.xlu1.b32.cont [7/16] (narrow) %v11313_v10, 8 }
 0x51e   : > { %5017 = vxpose.xlu0.b32.cont [10/16] (narrow) %v11364_v16, 8  ;;  %v4736_v16 = vpop.trf.xlu1 }
 0x520   : > { %4983 = vxpose.xlu1.b32.cont [8/16] (narrow) %v11310_v4, 8 }
 0x522   : > { %5018 = vxpose.xlu0.b32.cont [11/16] (narrow) %v11373_v33, 8  ;;  %v4800_v40 = vpop.trf.xlu1 }
 0x524   : > { %4984 = vxpose.xlu1.b32.cont [9/16] (narrow) %v11319_v2, 8 }
 0x526   : > { %5019 = vxpose.xlu0.b32.cont [12/16] (narrow) %v11370_v11, 8  ;;  %v4864_v11 = vpop.trf.xlu1 }
 0x528   : > { %4985 = vxpose.xlu1.b32.cont [10/16] (narrow) %v11316_v23, 8 }
 0x52a   : > { %5020 = vxpose.xlu0.b32.cont [13/16] (narrow) %v11379_v30, 8 }
 0x52c   : > { %4986 = vxpose.xlu1.b32.cont [11/16] (narrow) %v11325_v32, 8 }
 0x52e   : > { %5021 = vxpose.xlu0.b32.cont [14/16] (narrow) %v11376_v59, 8 }
 0x530   : > { %4987 = vxpose.xlu1.b32.cont [12/16] (narrow) %v11322_v37, 8 }
 0x532   : > { %5022 = vxpose.xlu0.b32.cont [15/16] (narrow) %v11385_v6, 8 }
 0x534   : > { %4988 = vxpose.xlu1.b32.cont [13/16] (narrow) %v11331_v5, 8 }
 0x536   : > { %5023 = vxpose.xlu0.b32.end [16/16] (narrow) %v11382_v3, 8 }
 0x538   : > { %4989 = vxpose.xlu1.b32.cont [14/16] (narrow) %v11328_v63, 8 }
 0x53a   : > { %v4960_v38 = vpop.trf.xlu0 }
 0x53c   : > { %4990 = vxpose.xlu1.b32.cont [15/16] (narrow) %v11337_v1, 8 }
 0x540   : > { %4991 = vxpose.xlu1.b32.end [16/16] (narrow) %v11334_v12, 8 }
 0x544   : > { %5040 = vxpose.xlu1.b32.start [1/16] (narrow) %v4481_v25, 8  ;;  %v4928_v33 = vpop.trf.xlu1 }
 0x548   : > { %5041 = vxpose.xlu1.b32.cont [2/16] (narrow) %v11401_v28, 8 }
 0x54c   : > { %5042 = vxpose.xlu1.b32.cont [3/16] (narrow) %v4491_v21, 8 }
 0x550   : > { %5043 = vxpose.xlu1.b32.cont [4/16] (narrow) %v8799_v20, 8 }
 0x554   : > { %5044 = vxpose.xlu1.b32.cont [5/16] (narrow) %v4501_v24, 8 }
 0x558   : > { %5045 = vxpose.xlu1.b32.cont [6/16] (narrow) %v8802_v58, 8 }
 0x55c   : > { %5046 = vxpose.xlu1.b32.cont [7/16] (narrow) %v4511_v62, 8 }
 0x55f   : > { %8897 = vset.pattern.permute.xlu0 %v9025_v8 }
 0x560   : > { %5074 = vperm.xlu0 %8897, %v275_v50   ;;  %5047 = vxpose.xlu1.b32.cont [8/16] (narrow) %v8805_v17, 8 }
 0x564   : > { %5048 = vxpose.xlu1.b32.cont [9/16] (narrow) %v4521_v57, 8 }
 0x568   : > { %5049 = vxpose.xlu1.b32.cont [10/16] (narrow) %v8808_v36, 8 }
 0x56c   : > { %5050 = vxpose.xlu1.b32.cont [11/16] (narrow) %v4531_v48, 8 }
 0x570   : > { %5051 = vxpose.xlu1.b32.cont [12/16] (narrow) %v8811_v22, 8 }
 0x574   : > { %5052 = vxpose.xlu1.b32.cont [13/16] (narrow) %v4541_v15, 8 }
 0x578   : > { %5053 = vxpose.xlu1.b32.cont [14/16] (narrow) %v8814_v44, 8 }
 0x57a   : > { %v5024_v51 = vpop.trf.xlu0 }
 0x57c   : > { %5054 = vxpose.xlu1.b32.cont [15/16] (narrow) %v4551_v46, 8 }
 0x580   : > { %5055 = vxpose.xlu1.b32.end [16/16] (narrow) %v8817_v45, 8 }
 0x584   : > { %v4992_v3 = vpop.trf.xlu1 }
 0x5c4   : > { %v5056_v20 = vpop.trf.xlu1 }
 0x5df   : > { %v11455_v43 = vpop.permute.xlu0 %5074 }
 0x5e0   : > { %v5079_v26 = vadd.f32 %v11455_v43, %v4640_v55  ;;  %v5077_v31 = vadd.f32 %v11455_v43, %v4576_v18  ;;  %v5083_v29 = vadd.f32 %v11455_v43, %v4768_v27  ;;  %v5081_v61 = vadd.f32 %v11455_v43, %v4704_v7 }
 0x5e1   : > { %v5087_v0 = vadd.f32 %v11455_v43, %v4896_v53  ;;  %v5085_v39 = vadd.f32 %v11455_v43, %v4832_v35  ;;  %v5091_v37 = vadd.f32 %v11455_v43, %v5024_v51  ;;  %v5089_v32 = vadd.f32 %v11455_v43, %v4960_v38 }
 0x5e2   : > { %vm5095_vm8 = vcmp.gt.f32.partialorder %v5079_v26, 0.0  ;;  %v5111_v14 = vmul.f32 0.01, %v5079_v26  ;;  %vm5093_vm9 = vcmp.gt.f32.partialorder %v5077_v31, 0.0  ;;  %v5109_v47 = vmul.f32 0.01, %v5077_v31 }
 0x5e3   : > { %v5115_v23 = vmul.f32 0.01, %v5083_v29  ;;  %v5113_v2 = vmul.f32 0.01, %v5081_v61  ;;  %vm5099_vm10 = vcmp.gt.f32.partialorder %v5083_v29, 0.0  ;;  %vm5097_vm11 = vcmp.gt.f32.partialorder %v5081_v61, 0.0 }
 0x5e4   : > { %v11463_v4 = vsel %vm5095_vm8, %v5079_v26, %v5111_v14  ;;  %v11465_v10 = vsel %vm5093_vm9, %v5077_v31, %v5109_v47  ;;  %v5119_v12 = vmul.f32 0.01, %v5087_v0  ;;  %v5117_v1 = vmul.f32 0.01, %v5085_v39 }
 0x5e5   : > { %5151 = vrot.lane.b32.xlu0 %v11463_v4, %s9024_s23  ;;  %5149 = vrot.lane.b32.xlu1 %v11465_v10, %s9024_s23  ;;  %v11473_v63 = vsel %vm5099_vm10, %v5083_v29, %v5115_v23  ;;  %v11475_v5 = vsel %vm5097_vm11, %v5081_v61, %v5113_v2  ;;  %vm5103_vm12 = vcmp.gt.f32.partialorder %v5087_v0, 0.0  ;;  %vm5101_vm13 = vcmp.gt.f32.partialorder %v5085_v39, 0.0 }
 0x5e6   : > { %v11481_v56 = vsel %vm5103_vm12, %v5087_v0, %v5119_v12  ;;  %v11483_v60 = vsel %vm5101_vm13, %v5085_v39, %v5117_v1  ;;  %v5123_v41 = vmul.f32 0.01, %v5091_v37  ;;  %v5121_v34 = vmul.f32 0.01, %v5089_v32 }
 0x5e7   : > { %vm5107_vm14 = vcmp.gt.f32.partialorder %v5091_v37, 0.0  ;;  %vm5105_vm15 = vcmp.gt.f32.partialorder %v5089_v32, 0.0  ;;  %v5080_v59 = vadd.f32 %v11455_v43, %v4672_v52  ;;  %v5078_v30 = vadd.f32 %v11455_v43, %v4608_v49 }
 0x5e8   : > { %v11489_v13 = vsel %vm5107_vm14, %v5091_v37, %v5123_v41  ;;  %v11491_v42 = vsel %vm5105_vm15, %v5089_v32, %v5121_v34  ;;  %v5084_v6 = vadd.f32 %v11455_v43, %v4800_v40  ;;  %v5082_v54 = vadd.f32 %v11455_v43, %v4736_v16 }
 0x5e9   : > { %5155 = vrot.lane.b32.xlu0 %v11473_v63, %s9024_s23  ;;  %5153 = vrot.lane.b32.xlu1 %v11475_v5, %s9024_s23  ;;  %v5112_v28 = vmul.f32 0.01, %v5080_v59  ;;  %v5110_v25 = vmul.f32 0.01, %v5078_v30  ;;  %vm5096_vm1 = vcmp.gt.f32.partialorder %v5080_v59, 0.0  ;;  %vm5094_vm2 = vcmp.gt.f32.partialorder %v5078_v30, 0.0 }
 0x5ea   : > { %vm5100_vm3 = vcmp.gt.f32.partialorder %v5084_v6, 0.0  ;;  %v5116_v21 = vmul.f32 0.01, %v5084_v6  ;;  %v5088_v19 = vadd.f32 %v11455_v43, %v4928_v33  ;;  %v5114_v17 = vmul.f32 0.01, %v5082_v54 }
 0x5eb   : > { %v11598_v58 = vsel %vm5096_vm1, %v5080_v59, %v5112_v28  ;;  %v11600_v24 = vsel %vm5094_vm2, %v5078_v30, %v5110_v25  ;;  %v5086_v62 = vadd.f32 %v11455_v43, %v4864_v11  ;;  %vm5098_vm4 = vcmp.gt.f32.partialorder %v5082_v54, 0.0 }
 0x5ec   : > { %13459 = vst [vmem:[#allocation27_spill] sm:$0xff] %v11598_v58  ;;  %13460 = vst [vmem:[#allocation19_spill] sm:$0xff] %v11600_v24  ;;  %v11611_v57 = vsel %vm5100_vm3, %v5084_v6, %v5116_v21  ;;  %v5120_v22 = vmul.f32 0.01, %v5088_v19  ;;  %v11613_v48 = vsel %vm5098_vm4, %v5082_v54, %v5114_v17  ;;  %v5092_v15 = vadd.f32 %v11455_v43, %v5056_v20  ;;  %v13463_v54 = vld [vmem:[#allocation8_spill] sm:$0xff] }
 0x5ed   : > { %5159 = vrot.lane.b32.xlu0 %v11481_v56, %s9024_s23  ;;  %5157 = vrot.lane.b32.xlu1 %v11483_v60, %s9024_s23  ;;  %13461 = vst [vmem:[#allocation21_spill] sm:$0xff] %v11611_v57  ;;  %13462 = vst [vmem:[#allocation20_spill] sm:$0xff] %v11613_v48  ;;  %v5118_v44 = vmul.f32 0.01, %v5086_v62  ;;  %v5090_v45 = vadd.f32 %v11455_v43, %v4992_v3  ;;  %vm5104_vm5 = vcmp.gt.f32.partialorder %v5088_v19, 0.0  ;;  %vm5102_vm6 = vcmp.gt.f32.partialorder %v5086_v62, 0.0 }
 0x5ee   : > { %v11625_v8 = vsel %vm5104_vm5, %v5088_v19, %v5120_v22  ;;  %v5124_v55 = vmul.f32 0.01, %v5092_v15  ;;  %vm5108_vm7 = vcmp.gt.f32.partialorder %v5092_v15, 0.0 }
 0x5ef   : > { %v11627_v18 = vsel %vm5102_vm6, %v5086_v62, %v5118_v44  ;;  %v5122_v7 = vmul.f32 0.01, %v5090_v45  ;;  %vm5106_vm8 = vcmp.gt.f32.partialorder %v5090_v45, 0.0 }
 0x5f0   : > { %v11637_v53 = vsel %vm5108_vm7, %v5092_v15, %v5124_v55 }
 0x5f1   : > { %5163 = vrot.lane.b32.xlu0 %v11489_v13, %s9024_s23  ;;  %5161 = vrot.lane.b32.xlu1 %v11491_v42, %s9024_s23  ;;  %v11639_v38 = vsel %vm5106_vm8, %v5090_v45, %v5122_v7 }
 0x5f5   : > { %5175 = vrot.lane.b32.xlu0 %v11463_v4, %s9023_s22  ;;  %5173 = vrot.lane.b32.xlu1 %v11465_v10, %s9023_s22 }
 0x5f9   : > { %5179 = vrot.lane.b32.xlu0 %v11473_v63, %s9023_s22  ;;  %5177 = vrot.lane.b32.xlu1 %v11475_v5, %s9023_s22 }
 0x5fd   : > { %5183 = vrot.lane.b32.xlu0 %v11481_v56, %s9023_s22  ;;  %5181 = vrot.lane.b32.xlu1 %v11483_v60, %s9023_s22 }
 0x601   : > { %5187 = vrot.lane.b32.xlu0 %v11489_v13, %s9023_s22  ;;  %5185 = vrot.lane.b32.xlu1 %v11491_v42, %s9023_s22 }
 0x605   : > { %5199 = vrot.lane.b32.xlu0 %v11463_v4, %s9022_s10  ;;  %5197 = vrot.lane.b32.xlu1 %v11465_v10, %s9022_s10 }
 0x609   : > { %5203 = vrot.lane.b32.xlu0 %v11473_v63, %s9022_s10  ;;  %5201 = vrot.lane.b32.xlu1 %v11475_v5, %s9022_s10 }
 0x60d   : > { %5207 = vrot.lane.b32.xlu0 %v11481_v56, %s9022_s10  ;;  %5205 = vrot.lane.b32.xlu1 %v11483_v60, %s9022_s10 }
 0x611   : > { %5211 = vrot.lane.b32.xlu0 %v11489_v13, %s9022_s10  ;;  %5209 = vrot.lane.b32.xlu1 %v11491_v42, %s9022_s10 }
 0x615   : > { %5223 = vrot.lane.b32.xlu0 %v11463_v4, %s9021_s9  ;;  %5221 = vrot.lane.b32.xlu1 %v11465_v10, %s9021_s9 }
 0x619   : > { %5227 = vrot.lane.b32.xlu0 %v11473_v63, %s9021_s9  ;;  %5225 = vrot.lane.b32.xlu1 %v11475_v5, %s9021_s9 }
 0x61d   : > { %5231 = vrot.lane.b32.xlu0 %v11481_v56, %s9021_s9  ;;  %5229 = vrot.lane.b32.xlu1 %v11483_v60, %s9021_s9 }
 0x621   : > { %5235 = vrot.lane.b32.xlu0 %v11489_v13, %s9021_s9  ;;  %5233 = vrot.lane.b32.xlu1 %v11491_v42, %s9021_s9 }
 0x625   : > { %5247 = vrot.lane.b32.xlu0 %v11463_v4, %s9020_s8  ;;  %5245 = vrot.lane.b32.xlu1 %v11465_v10, %s9020_s8 }
 0x629   : > { %5251 = vrot.lane.b32.xlu0 %v11473_v63, %s9020_s8  ;;  %5249 = vrot.lane.b32.xlu1 %v11475_v5, %s9020_s8 }
 0x62d   : > { %5255 = vrot.lane.b32.xlu0 %v11481_v56, %s9020_s8  ;;  %5253 = vrot.lane.b32.xlu1 %v11483_v60, %s9020_s8 }
 0x631   : > { %5259 = vrot.lane.b32.xlu0 %v11489_v13, %s9020_s8  ;;  %5257 = vrot.lane.b32.xlu1 %v11491_v42, %s9020_s8 }
 0x635   : > { %5271 = vrot.lane.b32.xlu0 %v11463_v4, %s9017_s24  ;;  %5269 = vrot.lane.b32.xlu1 %v11465_v10, %s9017_s24 }
 0x639   : > { %5275 = vrot.lane.b32.xlu0 %v11473_v63, %s9017_s24  ;;  %5273 = vrot.lane.b32.xlu1 %v11475_v5, %s9017_s24 }
 0x63d   : > { %5279 = vrot.lane.b32.xlu0 %v11481_v56, %s9017_s24  ;;  %5277 = vrot.lane.b32.xlu1 %v11483_v60, %s9017_s24 }
 0x641   : > { %5283 = vrot.lane.b32.xlu0 %v11489_v13, %s9017_s24  ;;  %5281 = vrot.lane.b32.xlu1 %v11491_v42, %s9017_s24 }
 0x645   : > { %5295 = vrot.lane.b32.xlu0 %v11463_v4, %s9019_s6  ;;  %5293 = vrot.lane.b32.xlu1 %v11465_v10, %s9019_s6 }
 0x649   : > { %5299 = vrot.lane.b32.xlu0 %v11473_v63, %s9019_s6  ;;  %5297 = vrot.lane.b32.xlu1 %v11475_v5, %s9019_s6 }
 0x64d   : > { %5303 = vrot.lane.b32.xlu0 %v11481_v56, %s9019_s6  ;;  %5301 = vrot.lane.b32.xlu1 %v11483_v60, %s9019_s6 }
 0x651   : > { %5307 = vrot.lane.b32.xlu0 %v11489_v13, %s9019_s6  ;;  %5305 = vrot.lane.b32.xlu1 %v11491_v42, %s9019_s6 }
 0x655   : > { %5327 = vrot.lane.b32.xlu0 %v11598_v58, %s9024_s23  ;;  %5325 = vrot.lane.b32.xlu1 %v11600_v24, %s9024_s23 }
 0x657   : > { %v11607_v9 = vpop.permute.xlu0 %5151  ;;  %v11609_v36 = vpop.permute.xlu1 %5149 }
 0x659   : > { %5331 = vrot.lane.b32.xlu0 %v11611_v57, %s9024_s23  ;;  %5329 = vrot.lane.b32.xlu1 %v11613_v48, %s9024_s23 }
 0x65b   : > { %v11621_v46 = vpop.permute.xlu0 %5155  ;;  %v11623_v50 = vpop.permute.xlu1 %5153 }
 0x65d   : > { %5335 = vrot.lane.b32.xlu0 %v11625_v8, %s9024_s23  ;;  %5333 = vrot.lane.b32.xlu1 %v11627_v18, %s9024_s23 }
 0x65f   : > { %v11633_v27 = vpop.permute.xlu0 %5159  ;;  %v11635_v35 = vpop.permute.xlu1 %5157 }
 0x661   : > { %5339 = vrot.lane.b32.xlu0 %v11637_v53, %s9024_s23  ;;  %5337 = vrot.lane.b32.xlu1 %v11639_v38, %s9024_s23 }
 0x663   : > { %v5164_v51 = vpop.permute.xlu0 %5163  ;;  %v5162_v43 = vpop.permute.xlu1 %5161 }
 0x665   : > { %5351 = vrot.lane.b32.xlu0 %v11598_v58, %s9023_s22  ;;  %5349 = vrot.lane.b32.xlu1 %v11600_v24, %s9023_s22 }
 0x667   : > { %v11649_v26 = vpop.permute.xlu0 %5175  ;;  %v11651_v31 = vpop.permute.xlu1 %5173 }
 0x669   : > { %5355 = vrot.lane.b32.xlu0 %v11611_v57, %s9023_s22  ;;  %5353 = vrot.lane.b32.xlu1 %v11613_v48, %s9023_s22 }
 0x66b   : > { %v11657_v29 = vpop.permute.xlu0 %5179  ;;  %v11659_v61 = vpop.permute.xlu1 %5177 }
 0x66d   : > { %5359 = vrot.lane.b32.xlu0 %v11625_v8, %s9023_s22  ;;  %5357 = vrot.lane.b32.xlu1 %v11627_v18, %s9023_s22 }
 0x66f   : > { %v11665_v14 = vpop.permute.xlu0 %5183  ;;  %v11667_v47 = vpop.permute.xlu1 %5181 }
 0x671   : > { %5363 = vrot.lane.b32.xlu0 %v11637_v53, %s9023_s22  ;;  %5361 = vrot.lane.b32.xlu1 %v11639_v38, %s9023_s22 }
 0x673   : > { %v5188_v0 = vpop.permute.xlu0 %5187  ;;  %v5186_v39 = vpop.permute.xlu1 %5185 }
 0x674   : > { %v7397_v16 = vcombine.low %v11489_v13, %v5188_v0  ;;  %v7398_v40 = vcombine.high %v11489_v13, %v5188_v0  ;;  %v7125_v11 = vcombine.low %v11491_v42, %v5186_v39  ;;  %v7126_v33 = vcombine.high %v11491_v42, %v5186_v39 }
 0x675   : > { %5375 = vrot.lane.b32.xlu0 %v11598_v58, %s9022_s10  ;;  %5373 = vrot.lane.b32.xlu1 %v11600_v24, %s9022_s10  ;;  %v6310_v39 = vcombine.high %v11473_v63, %v11657_v29 }
 0x676   : > { %v11722_v13 = vrot.slane %v7397_v16, %v13463_v54  ;;  %v11725_v20 = vrot.slane %v7398_v40, %v13463_v54  ;;  %v11744_v62 = vrot.slane %v7125_v11, %v13463_v54  ;;  %v11747_v22 = vrot.slane %v7126_v33, %v13463_v54 }
 0x677   : > { %v11677_v23 = vpop.permute.xlu0 %5199  ;;  %v11679_v2 = vpop.permute.xlu1 %5197  ;;  %v5765_v33 = vcombine.low %v11463_v4, %v11649_v26 }
 0x678   : > { %13466 = vst [vmem:[#allocation26_spill] sm:$0xff] %v11744_v62  ;;  %13467 = vst [vmem:[#allocation25_spill] sm:$0xff] %v11747_v22 }
 0x679   : > { %5379 = vrot.lane.b32.xlu0 %v11611_v57, %s9022_s10  ;;  %5377 = vrot.lane.b32.xlu1 %v11613_v48, %s9022_s10 }
 0x67b   : > { %v11685_v37 = vpop.permute.xlu0 %5203  ;;  %v11687_v32 = vpop.permute.xlu1 %5201 }
 0x67d   : > { %5383 = vrot.lane.b32.xlu0 %v11625_v8, %s9022_s10  ;;  %5381 = vrot.lane.b32.xlu1 %v11627_v18, %s9022_s10 }
 0x67f   : > { %v11693_v12 = vpop.permute.xlu0 %5207  ;;  %v11695_v1 = vpop.permute.xlu1 %5205 }
 0x681   : > { %5387 = vrot.lane.b32.xlu0 %v11637_v53, %s9022_s10  ;;  %5385 = vrot.lane.b32.xlu1 %v11639_v38, %s9022_s10 }
 0x683   : > { %v5212_v41 = vpop.permute.xlu0 %5211  ;;  %v5210_v34 = vpop.permute.xlu1 %5209 }
 0x684   : > { %v7413_v3 = vcombine.low %v5164_v51, %v5212_v41  ;;  %v7414_v6 = vcombine.high %v5164_v51, %v5212_v41  ;;  %v7141_v28 = vcombine.low %v5162_v43, %v5210_v34  ;;  %v7142_v25 = vcombine.high %v5162_v43, %v5210_v34 }
 0x685   : > { %5399 = vrot.lane.b32.xlu0 %v11598_v58, %s9021_s9  ;;  %5397 = vrot.lane.b32.xlu1 %v11600_v24, %s9021_s9  ;;  %v6309_v41 = vcombine.low %v11473_v63, %v11657_v29  ;;  %v6037_v43 = vcombine.low %v11475_v5, %v11659_v61  ;;  %v6038_v51 = vcombine.high %v11475_v5, %v11659_v61 }
 0x686   : > { %v11730_v21 = vrot.slane %v7413_v3, %v13463_v54  ;;  %v11733_v42 = vrot.slane %v7414_v6, %v13463_v54  ;;  %v11736_v19 = vrot.slane %v7141_v28, %v13463_v54  ;;  %v11739_v17 = vrot.slane %v7142_v25, %v13463_v54 }
 0x687   : > { %v11705_v49 = vpop.permute.xlu0 %5223  ;;  %v11707_v52 = vpop.permute.xlu1 %5221  ;;  %v5766_v3 = vcombine.high %v11463_v4, %v11649_v26  ;;  %v5493_v6 = vcombine.low %v11465_v10, %v11651_v31  ;;  %v5781_v28 = vcombine.low %v11607_v9, %v11677_v23  ;;  %v5494_v25 = vcombine.high %v11465_v10, %v11651_v31 }
 0x688   : > { %13464 = vst [vmem:[#allocation23_spill] sm:$0xff] %v11736_v19  ;;  %13465 = vst [vmem:[#allocation22_spill] sm:$0xff] %v11739_v17  ;;  %v5782_v4 = vcombine.high %v11607_v9, %v11677_v23  ;;  %v6853_v10 = vcombine.low %v11481_v56, %v11665_v14  ;;  %v5509_v31 = vcombine.low %v11609_v36, %v11679_v2 }
 0x689   : > { %5403 = vrot.lane.b32.xlu0 %v11611_v57, %s9021_s9  ;;  %5401 = vrot.lane.b32.xlu1 %v11613_v48, %s9021_s9  ;;  %v6854_v63 = vcombine.high %v11481_v56, %v11665_v14  ;;  %v6581_v9 = vcombine.low %v11483_v60, %v11667_v47  ;;  %v6582_v29 = vcombine.high %v11483_v60, %v11667_v47 }
 0x68a   : > { %v5510_v23 = vcombine.high %v11609_v36, %v11679_v2  ;;  %v5773_v5 = vrot.slane %v5765_v33, %v13463_v54  ;;  %v5780_v61 = vrot.slane %v5766_v3, %v13463_v54  ;;  %v5501_v7 = vrot.slane %v5493_v6, %v13463_v54 }
 0x68b   : > { %v11717_v59 = vpop.permute.xlu0 %5227  ;;  %v11719_v30 = vpop.permute.xlu1 %5225  ;;  %v5789_v56 = vrot.slane %v5781_v28, %v13463_v54  ;;  %v5508_v14 = vrot.slane %v5494_v25, %v13463_v54  ;;  %v11835_v60 = vrot.slane %v6309_v41, %v13463_v54  ;;  %v11838_v36 = vrot.slane %v6310_v39, %v13463_v54 }
 0x68c   : > { %v5796_v47 = vrot.slane %v5782_v4, %v13463_v54  ;;  %v11846_v3 = vrot.slane %v6037_v43, %v13463_v54  ;;  %v11849_v6 = vrot.slane %v6038_v51, %v13463_v54  ;;  %v11852_v28 = vrot.slane %v6853_v10, %v13463_v54 }
 0x68d   : > { %5407 = vrot.lane.b32.xlu0 %v11625_v8, %s9021_s9  ;;  %5405 = vrot.lane.b32.xlu1 %v11627_v18, %s9021_s9  ;;  %v5517_v41 = vrot.slane %v5509_v31, %v13463_v54  ;;  %v11856_v39 = vrot.slane %v6854_v63, %v13463_v54  ;;  %v11859_v25 = vrot.slane %v6581_v9, %v13463_v54 }
 0x68e   : > { %v11862_v4 = vrot.slane %v6582_v29, %v13463_v54  ;;  %v5524_v43 = vrot.slane %v5510_v23, %v13463_v54  ;;  %v5829_v51 = vcombine.low %v5773_v5, %v5789_v56  ;;  %v5830_v55 = vcombine.high %v5773_v5, %v5789_v56 }
 0x68f   : > { %v11749_v44 = vpop.permute.xlu0 %5231  ;;  %v11751_v15 = vpop.permute.xlu1 %5229  ;;  %v6325_v10 = vcombine.low %v11621_v46, %v11685_v37  ;;  %v6326_v31 = vcombine.high %v11621_v46, %v11685_v37  ;;  %v5845_v63 = vcombine.low %v5780_v61, %v5796_v47  ;;  %v5846_v9 = vcombine.high %v5780_v61, %v5796_v47 }
 0x690   : > { %v6053_v29 = vcombine.low %v11623_v50, %v11687_v32  ;;  %v6054_v23 = vcombine.high %v11623_v50, %v11687_v32  ;;  %v5557_v56 = vcombine.low %v5501_v7, %v5517_v41  ;;  %v5558_v17 = vcombine.high %v5501_v7, %v5517_v41  ;;  %v13472_v32 = vld [vmem:[#allocation9_spill] sm:$0xff] }
 0x691   : > { %5411 = vrot.lane.b32.xlu0 %v11637_v53, %s9021_s9  ;;  %5409 = vrot.lane.b32.xlu1 %v11639_v38, %s9021_s9  ;;  %v6869_v46 = vcombine.low %v11633_v27, %v11693_v12  ;;  %v6870_v37 = vcombine.high %v11633_v27, %v11693_v12  ;;  %v5573_v22 = vcombine.low %v5508_v14, %v5524_v43  ;;  %s9026_s9 = smov [#allocation5]  }
 0x692   : > { %v5574_v61 = vcombine.high %v5508_v14, %v5524_v43  ;;  %v6597_v47 = vcombine.low %v11635_v35, %v11695_v1  ;;  %v6598_v50 = vcombine.high %v11635_v35, %v11695_v1  ;;  %v11892_v19 = vrot.slane %v5829_v51, %v13472_v32  ;;  %s8932_s10 = sshll.u32 %s9026_s9, 4  ;;  %s8933_s10 = int_to_ptr.vmem [resolvable:$false] %s8932_s10 }
 0x693   : > { %v11773_v34 = vpop.permute.xlu0 %5235  ;;  %v11775_v16 = vpop.permute.xlu1 %5233  ;;  %v11895_v7 = vrot.slane %v5830_v55, %v13472_v32  ;;  %v6333_v41 = vrot.slane %v6325_v10, %v13463_v54  ;;  %v6340_v27 = vrot.slane %v6326_v31, %v13463_v54  ;;  %v11902_v12 = vrot.slane %v5845_v63, %v13472_v32  ;;  %s8934_s22 = scalar_lea.vmem %s8933_s10, 32768  ;;  %p8935_p6 = scmp.lt.s32.totalorder %s13193_s19, %s8933_s10 }
 0x694   : > { %v11905_v35 = vrot.slane %v5846_v9, %v13472_v32  ;;  %v6061_v1 = vrot.slane %v6053_v29, %v13463_v54  ;;  %v6068_v14 = vrot.slane %v6054_v23, %v13463_v54  ;;  %v11914_v51 = vrot.slane %v5557_v56, %v13472_v32 }
 0x695   : > { %5423 = vrot.lane.b32.xlu0 %v11598_v58, %s9020_s8  ;;  %5421 = vrot.lane.b32.xlu1 %v11600_v24, %s9020_s8  ;;  %v11917_v10 = vrot.slane %v5558_v17, %v13472_v32  ;;  %v6877_v31 = vrot.slane %v6869_v46, %v13463_v54  ;;  %v6884_v63 = vrot.slane %v6870_v37, %v13463_v54 }
 0x696   : > { %v11922_v9 = vrot.slane %v5573_v22, %v13472_v32  ;;  %v11925_v29 = vrot.slane %v5574_v61, %v13472_v32  ;;  %v6605_v23 = vrot.slane %v6597_v47, %v13463_v54  ;;  %v6612_v62 = vrot.slane %v6598_v50, %v13463_v54 }
 0x697   : > { %v11781_v40 = vpop.permute.xlu0 %5247  ;;  %v11783_v11 = vpop.permute.xlu1 %5245  ;;  %v6373_v17 = vcombine.low %v11835_v60, %v6333_v41  ;;  %v6374_v56 = vcombine.high %v11835_v60, %v6333_v41  ;;  %v6389_v46 = vcombine.low %v11838_v36, %v6340_v27  ;;  %v6390_v37 = vcombine.high %v11838_v36, %v6340_v27 }
 0x698   : > { %v6101_v22 = vcombine.low %v11846_v3, %v6061_v1  ;;  %v6102_v61 = vcombine.high %v11846_v3, %v6061_v1  ;;  %v6117_v47 = vcombine.low %v11849_v6, %v6068_v14  ;;  %v6118_v50 = vcombine.high %v11849_v6, %v6068_v14 }
 0x699   : > { %5427 = vrot.lane.b32.xlu0 %v11611_v57, %s9020_s8  ;;  %5425 = vrot.lane.b32.xlu1 %v11613_v48, %s9020_s8  ;;  %v6918_v60 = vcombine.high %v11852_v28, %v6877_v31  ;;  %v6933_v41 = vcombine.low %v11856_v39, %v6884_v63  ;;  %v6934_v36 = vcombine.high %v11856_v39, %v6884_v63 }
 0x69a   : > { %v6645_v27 = vcombine.low %v11859_v25, %v6605_v23  ;;  %v6661_v3 = vcombine.low %v11862_v4, %v6612_v62  ;;  %v6662_v1 = vcombine.high %v11862_v4, %v6612_v62  ;;  %v11952_v6 = vrot.slane %v6373_v17, %v13472_v32 }
 0x69b   : > { %v11805_v26 = vpop.permute.xlu0 %5251  ;;  %v11807_v0 = vpop.permute.xlu1 %5249  ;;  %v11958_v14 = vrot.slane %v6389_v46, %v13472_v32  ;;  %v11961_v39 = vrot.slane %v6390_v37, %v13472_v32  ;;  %v11966_v62 = vrot.slane %v6101_v22, %v13472_v32  ;;  %v11972_v4 = vrot.slane %v6117_v47, %v13472_v32 }
 0x69c   : > { %v11984_v46 = vrot.slane %v6933_v41, %v13472_v32  ;;  %v11987_v37 = vrot.slane %v6934_v36, %v13472_v32  ;;  %v11990_v22 = vrot.slane %v6645_v27, %v13472_v32  ;;  %v11996_v47 = vrot.slane %v6661_v3, %v13472_v32 }
 0x69d   : > { %5431 = vrot.lane.b32.xlu0 %v11625_v8, %s9020_s8  ;;  %5429 = vrot.lane.b32.xlu1 %v11627_v18, %s9020_s8 }
 0x69e   : > { %13473 = vst [vmem:[#allocation30_spill] sm:$0xff] %v11996_v47 }
 0x69f   : > { %v11841_v2 = vpop.permute.xlu0 %5255  ;;  %v11843_v33 = vpop.permute.xlu1 %5253 }
 0x6a0   : > { %13468 = vst [vmem:[#allocation29_spill] sm:$0xff] %v11841_v2  ;;  %13469 = vst [vmem:[#allocation10_spill] sm:$0xff] %v11843_v33  ;;  %v6917_v33 = vcombine.low %v11852_v28, %v6877_v31  ;;  %v6646_v2 = vcombine.high %v11859_v25, %v6605_v23  ;;  %v11955_v28 = vrot.slane %v6374_v56, %v13472_v32 }
 0x6a1   : > { %5435 = vrot.lane.b32.xlu0 %v11637_v53, %s9020_s8  ;;  %5433 = vrot.lane.b32.xlu1 %v11639_v38, %s9020_s8  ;;  %v11969_v25 = vrot.slane %v6102_v61, %v13472_v32  ;;  %v11975_v31 = vrot.slane %v6118_v50, %v13472_v32  ;;  %v11981_v56 = vrot.slane %v6918_v60, %v13472_v32  ;;  %s8928_s8 = scalar_lea.vmem %s13193_s19, 16384 }
 0x6a2   : > { %v11978_v17 = vrot.slane %v6917_v33, %v13472_v32  ;;  %v11993_v61 = vrot.slane %v6646_v2, %v13472_v32  ;;  %v11999_v33 = vrot.slane %v6662_v1, %v13472_v32  ;;  %p8929_p8 = scmp.ne.s32.totalorder %s13193_s19, %s8928_s8  ;;  %p8936_p13 = scmp.lt.s32.totalorder %s8934_s22, %s8928_s8 }
 0x6a3   : > { %v11877_v45 = vpop.permute.xlu0 %5259  ;;  %v11879_v5 = vpop.permute.xlu1 %5257 }
 0x6a4   : > { %13470 = vst [vmem:[#allocation28_spill] sm:$0xff] %v11877_v45  ;;  %13471 = vst [vmem:[#allocation31_spill] sm:$0xff] %v11879_v5  ;;  %p8930_p11 = pnand %p8929_p8, %p13547_p9  ;;  %p8937_p2 = por %p8936_p13, %p8935_p6 }
 0x6a5   : > { %5447 = vrot.lane.b32.xlu0 %v11598_v58, %s9017_s24  ;;  %5445 = vrot.lane.b32.xlu1 %v11600_v24, %s9017_s24  ;;  %13474 = vst [vmem:[#allocation33_spill] sm:$0xff] %v11999_v33 }
 0x6a6   : > { %p8931_p0 = pneg %p8930_p11 }
 0x6a7   : > { %v11909_v43 = vpop.permute.xlu0 %5271  ;;  %v11911_v55 = vpop.permute.xlu1 %5269 }
 0x6a8   : > { %v5797_v50 = vcombine.low %v11705_v49, %v11909_v43  ;;  %v5798_v60 = vcombine.high %v11705_v49, %v11909_v43  ;;  %v5525_v41 = vcombine.low %v11707_v52, %v11911_v55  ;;  %v5526_v2 = vcombine.high %v11707_v52, %v11911_v55  ;;  %p8938_p5 = pnand %p8937_p2, %p8931_p0 }
 0x6a9   : > { %5451 = vrot.lane.b32.xlu0 %v11611_v57, %s9017_s24  ;;  %5449 = vrot.lane.b32.xlu1 %v11613_v48, %s9017_s24  ;;  %v13475_v43 = vcombine.low %v11722_v13, %v11730_v21  ;;  %v13477_v55 = vcombine.high %v11722_v13, %v11730_v21 }
 0x6ab   : > { %v5276_v5 = vpop.permute.xlu0 %5275  ;;  %v5274_v45 = vpop.permute.xlu1 %5273  ;;  %v12025_v52 = vrot.slane %v13475_v43, %v13472_v32  ;;  %v12031_v47 = vrot.slane %v13477_v55, %v13472_v32  ;;  %v5805_v55 = vrot.slane %v5797_v50, %v13463_v54 }
 0x6ac   : > { %v6341_v36 = vcombine.low %v11717_v59, %v5276_v5  ;;  %v6342_v27 = vcombine.high %v11717_v59, %v5276_v5  ;;  %v6069_v3 = vcombine.low %v11719_v30, %v5274_v45  ;;  %v6070_v1 = vcombine.high %v11719_v30, %v5274_v45 }
 0x6ad   : > { %5455 = vrot.lane.b32.xlu0 %v11625_v8, %s9017_s24  ;;  %5453 = vrot.lane.b32.xlu1 %v11627_v18, %s9017_s24  ;;  %13476 = vst [vmem:[#allocation35_spill] sm:$0xff] %v12025_v52  ;;  %13478 = vst [vmem:[#allocation32_spill] sm:$0xff] %v12031_v47  ;;  %v13479_v59 = vcombine.low %v11725_v20, %v11733_v42  ;;  %v13481_v45 = vcombine.high %v11725_v20, %v11733_v42 }
 0x6ae   : > { %v5540_v20 = vrot.slane %v5526_v2, %v13463_v54  ;;  %v12058_v42 = vrot.slane %v6341_v36, %v13463_v54 }
 0x6af   : > { %v5280_v63 = vpop.permute.xlu0 %5279  ;;  %v5278_v23 = vpop.permute.xlu1 %5277  ;;  %v12037_v30 = vrot.slane %v13479_v59, %v13472_v32  ;;  %v12043_v5 = vrot.slane %v13481_v45, %v13472_v32  ;;  %v5812_v59 = vrot.slane %v5798_v60, %v13463_v54 }
 0x6b0   : > { %v6885_v43 = vcombine.low %v11749_v44, %v5280_v63  ;;  %v6886_v52 = vcombine.high %v11749_v44, %v5280_v63  ;;  %v6613_v13 = vcombine.low %v11751_v15, %v5278_v23  ;;  %v6614_v21 = vcombine.high %v11751_v15, %v5278_v23 }
 0x6b1   : > { %5459 = vrot.lane.b32.xlu0 %v11637_v53, %s9017_s24  ;;  %5457 = vrot.lane.b32.xlu1 %v11639_v38, %s9017_s24  ;;  %13480 = vst [vmem:[#allocation34_spill] sm:$0xff] %v12037_v30  ;;  %13482 = vst [vmem:[#allocation37_spill] sm:$0xff] %v12043_v5  ;;  %v5533_v30 = vrot.slane %v5525_v41, %v13463_v54  ;;  %v12061_v44 = vrot.slane %v6342_v27, %v13463_v54  ;;  %s13191_s24 = scalar_lea.hbm %s13269_s3, %s8174_s18 }
 0x6b2   : > { %v12064_v15 = vrot.slane %v6069_v3, %v13463_v54  ;;  %v12067_v63 = vrot.slane %v6070_v1, %v13463_v54  ;;  %v12074_v45 = vrot.slane %v6885_v43, %v13463_v54  ;;  %v12077_v27 = vrot.slane %v6886_v52, %v13463_v54 }
 0x6b3   : > { %v12017_v33 = vpop.permute.xlu0 %5283  ;;  %v12019_v49 = vpop.permute.xlu1 %5281  ;;  %v12080_v3 = vrot.slane %v6613_v13, %v13463_v54  ;;  %v12083_v1 = vrot.slane %v6614_v21, %v13463_v54 }
 0x6b5   : > { %5471 = vrot.lane.b32.xlu0 %v11598_v58, %s9019_s6  ;;  %5469 = vrot.lane.b32.xlu1 %v11600_v24, %s9019_s6 }
 0x6b7   : > { %v5296_v23 = vpop.permute.xlu0 %5295  ;;  %v5294_v50 = vpop.permute.xlu1 %5293 }
 0x6b8   : > { %v5813_v60 = vcombine.low %v11781_v40, %v5296_v23  ;;  %v5814_v41 = vcombine.high %v11781_v40, %v5296_v23  ;;  %v5541_v2 = vcombine.low %v11783_v11, %v5294_v50  ;;  %v5542_v36 = vcombine.high %v11783_v11, %v5294_v50 }
 0x6b9   : > { %5475 = vrot.lane.b32.xlu0 %v11611_v57, %s9019_s6  ;;  %5473 = vrot.lane.b32.xlu1 %v11613_v48, %s9019_s6 }
 0x6ba   : > { %v5821_v40 = vrot.slane %v5813_v60, %v13463_v54  ;;  %v5828_v11 = vrot.slane %v5814_v41, %v13463_v54  ;;  %v5549_v43 = vrot.slane %v5541_v2, %v13463_v54  ;;  %v5556_v23 = vrot.slane %v5542_v36, %v13463_v54 }
 0x6bb   : > { %v12101_v60 = vpop.permute.xlu0 %5299  ;;  %v12103_v41 = vpop.permute.xlu1 %5297 }
 0x6bc   : > { %v5861_v2 = vcombine.low %v5805_v55, %v5821_v40  ;;  %v5862_v36 = vcombine.high %v5805_v55, %v5821_v40  ;;  %v5877_v48 = vcombine.low %v5812_v59, %v5828_v11  ;;  %v5878_v57 = vcombine.high %v5812_v59, %v5828_v11 }
 0x6bd   : > { %v5589_v24 = vcombine.low %v5533_v30, %v5549_v43  ;;  %v5590_v52 = vcombine.high %v5533_v30, %v5549_v43  ;;  %v5605_v58 = vcombine.low %v5540_v20, %v5556_v23  ;;  %v5606_v5 = vcombine.high %v5540_v20, %v5556_v23  ;;  %5479 = vrot.lane.b32.xlu0 %v11625_v8, %s9019_s6 }
 0x6be   : > { %v5869_v21 = vrot.slane %v5861_v2, %v13472_v32  ;;  %v5876_v50 = vrot.slane %v5862_v36, %v13472_v32  ;;  %v5885_v13 = vrot.slane %v5877_v48, %v13472_v32  ;;  %v5892_v47 = vrot.slane %v5878_v57, %v13472_v32  ;;  %5477 = vrot.lane.b32.xlu1 %v11627_v18, %s9019_s6 }
 0x6bf   : > { %v5597_v55 = vrot.slane %v5589_v24, %v13472_v32  ;;  %v5604_v30 = vrot.slane %v5590_v52, %v13472_v32  ;;  %v5613_v59 = vrot.slane %v5605_v58, %v13472_v32  ;;  %v5620_v20 = vrot.slane %v5606_v5, %v13472_v32  ;;  %v5304_v40 = vpop.permute.xlu0 %5303  ;;  %v5302_v11 = vpop.permute.xlu1 %5301 }
 0x6c0   : > { %v5893_v43 = vcombine.low %v11892_v19, %v5869_v21  ;;  %v5894_v48 = vcombine.high %v11892_v19, %v5869_v21  ;;  %v5895_v57 = vcombine.low %v11895_v7, %v5876_v50  ;;  %v5896_v23 = vcombine.high %v11895_v7, %v5876_v50 }
 0x6c1   : > { %v5897_v2 = vcombine.low %v11902_v12, %v5885_v13  ;;  %v5898_v24 = vcombine.high %v11902_v12, %v5885_v13  ;;  %v5899_v52 = vcombine.low %v11905_v35, %v5892_v47  ;;  %v5900_v58 = vcombine.high %v11905_v35, %v5892_v47  ;;  %5483 = vrot.lane.b32.xlu0 %v11637_v53, %s9019_s6 }
 0x6c2   : > { %7671 = vst.msk [vmem:[%s12130_s7 + $0x10] sm:$0xff] %vm1812_vm0, %v5893_v43  ;;  %7687 = vst.msk [vmem:[%s12130_s7 + $0x90] sm:$0xff] %vm1812_vm0, %v5894_v48  ;;  %v5621_v19 = vcombine.low %v11914_v51, %v5597_v55  ;;  %v5622_v7 = vcombine.high %v11914_v51, %v5597_v55  ;;  %v5623_v12 = vcombine.low %v11917_v10, %v5604_v30  ;;  %5481 = vrot.lane.b32.xlu1 %v11639_v38, %s9019_s6  ;;  %v13483_v55 = vld [vmem:[#allocation29_spill] sm:$0xff]  ;;  %s7798_s6 = scalar_lea.sflag [#allocation4], %s9161_s11 }
 0x6c3   : > { %7703 = vst.msk [vmem:[%s12130_s7 + $0x110] sm:$0xff] %vm1812_vm0, %v5895_v57  ;;  %7719 = vst.msk [vmem:[%s12130_s7 + $0x190] sm:$0xff] %vm1812_vm0, %v5896_v23  ;;  %v5624_v35 = vcombine.high %v11917_v10, %v5604_v30  ;;  %v5625_v51 = vcombine.low %v11922_v9, %v5613_v59  ;;  %v5626_v47 = vcombine.high %v11922_v9, %v5613_v59  ;;  %v12158_v13 = vpop.permute.xlu0 %5307  ;;  %v12160_v21 = vpop.permute.xlu1 %5305 }
 0x6c4   : > { %7735 = vst.msk [vmem:[%s12130_s7 + $0x210] sm:$0xff] %vm1812_vm0, %v5897_v2  ;;  %7751 = vst.msk [vmem:[%s12130_s7 + $0x290] sm:$0xff] %vm1812_vm0, %v5898_v24  ;;  %v5627_v10 = vcombine.low %v11925_v29, %v5620_v20  ;;  %v5628_v5 = vcombine.high %v11925_v29, %v5620_v20  ;;  %v6357_v9 = vcombine.low %v11805_v26, %v12101_v60  ;;  %v13484_v20 = vld [vmem:[#allocation10_spill] sm:$0xff] }
 0x6c5   : > { %7767 = vst.msk [vmem:[%s12130_s7 + $0x310] sm:$0xff] %vm1812_vm0, %v5899_v52  ;;  %7783 = vst.msk [vmem:[%s12130_s7 + $0x390] sm:$0xff] %vm1812_vm0, %v5900_v58  ;;  %v6358_v50 = vcombine.high %v11805_v26, %v12101_v60  ;;  %v6085_v29 = vcombine.low %v11807_v0, %v12103_v41  ;;  %v6086_v36 = vcombine.high %v11807_v0, %v12103_v41 }
 0x6c6   : > { %7669 = vst.msk [vmem:[%s12130_s7] sm:$0xff] %vm1812_vm0, %v5621_v19  ;;  %7685 = vst.msk [vmem:[%s12130_s7 + $0x80] sm:$0xff] %vm1812_vm0, %v5622_v7  ;;  %v6901_v30 = vcombine.low %v13483_v55, %v5304_v40  ;;  %v6902_v59 = vcombine.high %v13483_v55, %v5304_v40  ;;  %v6629_v26 = vcombine.low %v13484_v20, %v5302_v11 }
 0x6c7   : > { %7701 = vst.msk [vmem:[%s12130_s7 + $0x100] sm:$0xff] %vm1812_vm0, %v5623_v12  ;;  %7717 = vst.msk [vmem:[%s12130_s7 + $0x180] sm:$0xff] %vm1812_vm0, %v5624_v35  ;;  %v6630_v60 = vcombine.high %v13484_v20, %v5302_v11  ;;  %v6365_v43 = vrot.slane %v6357_v9, %v13463_v54  ;;  %v6372_v0 = vrot.slane %v6358_v50, %v13463_v54  ;;  %v12206_v11 = vpop.permute.xlu0 %5327  ;;  %v12208_v24 = vpop.permute.xlu1 %5325 }
 0x6c8   : > { %7733 = vst.msk [vmem:[%s12130_s7 + $0x200] sm:$0xff] %vm1812_vm0, %v5625_v51  ;;  %7749 = vst.msk [vmem:[%s12130_s7 + $0x280] sm:$0xff] %vm1812_vm0, %v5626_v47  ;;  %v6093_v41 = vrot.slane %v6085_v29, %v13463_v54  ;;  %v6100_v48 = vrot.slane %v6086_v36, %v13463_v54  ;;  %v12195_v57 = vrot.slane %v6901_v30, %v13463_v54 }
 0x6c9   : > { %7765 = vst.msk [vmem:[%s12130_s7 + $0x300] sm:$0xff] %vm1812_vm0, %v5627_v10  ;;  %7781 = vst.msk [vmem:[%s12130_s7 + $0x380] sm:$0xff] %vm1812_vm0, %v5628_v5  ;;  %v12198_v23 = vrot.slane %v6902_v59, %v13463_v54  ;;  %v12201_v40 = vrot.slane %v6629_v26, %v13463_v54  ;;  %v12204_v2 = vrot.slane %v6630_v60, %v13463_v54 }
 0x6ca   : > { %v6405_v52 = vcombine.low %v12058_v42, %v6365_v43  ;;  %v6406_v58 = vcombine.high %v12058_v42, %v6365_v43  ;;  %v6421_v19 = vcombine.low %v12061_v44, %v6372_v0  ;;  %v6422_v7 = vcombine.high %v12061_v44, %v6372_v0 }
 0x6cb   : > { %v6133_v12 = vcombine.low %v12064_v15, %v6093_v41  ;;  %v6134_v35 = vcombine.high %v12064_v15, %v6093_v41  ;;  %v6149_v51 = vcombine.low %v12067_v63, %v6100_v48  ;;  %v6150_v47 = vcombine.high %v12067_v63, %v6100_v48  ;;  %v12226_v29 = vpop.permute.xlu0 %5331  ;;  %v12228_v36 = vpop.permute.xlu1 %5329 }
 0x6cc   : > { %v6413_v10 = vrot.slane %v6405_v52, %v13472_v32  ;;  %v6420_v5 = vrot.slane %v6406_v58, %v13472_v32  ;;  %v6429_v9 = vrot.slane %v6421_v19, %v13472_v32  ;;  %v6436_v42 = vrot.slane %v6422_v7, %v13472_v32 }
 0x6cd   : > { %v6141_v44 = vrot.slane %v6133_v12, %v13472_v32  ;;  %v6148_v50 = vrot.slane %v6134_v35, %v13472_v32  ;;  %v6157_v15 = vrot.slane %v6149_v51, %v13472_v32  ;;  %v6164_v63 = vrot.slane %v6150_v47, %v13472_v32 }
 0x6ce   : > { %v6437_v55 = vcombine.low %v11952_v6, %v6413_v10  ;;  %v6438_v30 = vcombine.high %v11952_v6, %v6413_v10  ;;  %v6439_v59 = vcombine.low %v11955_v28, %v6420_v5  ;;  %v6440_v20 = vcombine.high %v11955_v28, %v6420_v5 }
 0x6cf   : > { %v6441_v26 = vcombine.low %v11958_v14, %v6429_v9  ;;  %v6442_v60 = vcombine.high %v11958_v14, %v6429_v9  ;;  %v6443_v43 = vcombine.low %v11961_v39, %v6436_v42  ;;  %v6444_v0 = vcombine.high %v11961_v39, %v6436_v42  ;;  %v12262_v52 = vpop.permute.xlu0 %5335  ;;  %v12264_v58 = vpop.permute.xlu1 %5333 }
 0x6d0   : > { %7675 = vst.msk [vmem:[%s12130_s7 + $0x30] sm:$0xff] %vm1812_vm0, %v6437_v55  ;;  %7691 = vst.msk [vmem:[%s12130_s7 + $0xb0] sm:$0xff] %vm1812_vm0, %v6438_v30  ;;  %v6165_v6 = vcombine.low %v11966_v62, %v6141_v44  ;;  %v6166_v28 = vcombine.high %v11966_v62, %v6141_v44  ;;  %v6167_v14 = vcombine.low %v11969_v25, %v6148_v50 }
 0x6d1   : > { %7707 = vst.msk [vmem:[%s12130_s7 + $0x130] sm:$0xff] %vm1812_vm0, %v6439_v59  ;;  %7723 = vst.msk [vmem:[%s12130_s7 + $0x1b0] sm:$0xff] %vm1812_vm0, %v6440_v20  ;;  %v6168_v39 = vcombine.high %v11969_v25, %v6148_v50  ;;  %v6169_v41 = vcombine.low %v11972_v4, %v6157_v15  ;;  %v6170_v62 = vcombine.high %v11972_v4, %v6157_v15  ;;  %v13485_v59 = vld [vmem:[#allocation30_spill] sm:$0xff] }
 0x6d2   : > { %7739 = vst.msk [vmem:[%s12130_s7 + $0x230] sm:$0xff] %vm1812_vm0, %v6441_v26  ;;  %7755 = vst.msk [vmem:[%s12130_s7 + $0x2b0] sm:$0xff] %vm1812_vm0, %v6442_v60  ;;  %v6171_v48 = vcombine.low %v11975_v31, %v6164_v63  ;;  %v6172_v25 = vcombine.high %v11975_v31, %v6164_v63  ;;  %v6949_v4 = vcombine.low %v12074_v45, %v12195_v57  ;;  %v13486_v60 = vld [vmem:[#allocation33_spill] sm:$0xff] }
 0x6d3   : > { %7771 = vst.msk [vmem:[%s12130_s7 + $0x330] sm:$0xff] %vm1812_vm0, %v6443_v43  ;;  %7787 = vst.msk [vmem:[%s12130_s7 + $0x3b0] sm:$0xff] %vm1812_vm0, %v6444_v0  ;;  %v6950_v19 = vcombine.high %v12074_v45, %v12195_v57  ;;  %v6965_v31 = vcombine.low %v12077_v27, %v12198_v23  ;;  %v6966_v7 = vcombine.high %v12077_v27, %v12198_v23  ;;  %v12308_v5 = vpop.permute.xlu1 %5337 }
 0x6d4   : > { %7673 = vst.msk [vmem:[%s12130_s7 + $0x20] sm:$0xff] %vm1812_vm0, %v6165_v6  ;;  %7689 = vst.msk [vmem:[%s12130_s7 + $0xa0] sm:$0xff] %vm1812_vm0, %v6166_v28  ;;  %v6677_v12 = vcombine.low %v12080_v3, %v12201_v40  ;;  %v6678_v45 = vcombine.high %v12080_v3, %v12201_v40  ;;  %v6693_v57 = vcombine.low %v12083_v1, %v12204_v2  ;;  %v13487_v6 = vld [vmem:[#allocation28_spill] sm:$0xff] }
 0x6d5   : > { %7705 = vst.msk [vmem:[%s12130_s7 + $0x120] sm:$0xff] %vm1812_vm0, %v6167_v14  ;;  %7721 = vst.msk [vmem:[%s12130_s7 + $0x1a0] sm:$0xff] %vm1812_vm0, %v6168_v39  ;;  %v6694_v27 = vcombine.high %v12083_v1, %v12204_v2  ;;  %v6957_v23 = vrot.slane %v6949_v4, %v13472_v32  ;;  %v6964_v35 = vrot.slane %v6950_v19, %v13472_v32  ;;  %v12306_v2 = vpop.permute.xlu0 %5339  ;;  %v13488_v39 = vld [vmem:[#allocation31_spill] sm:$0xff] }
 0x6d6   : > { %7737 = vst.msk [vmem:[%s12130_s7 + $0x220] sm:$0xff] %vm1812_vm0, %v6169_v41  ;;  %7753 = vst.msk [vmem:[%s12130_s7 + $0x2a0] sm:$0xff] %vm1812_vm0, %v6170_v62  ;;  %v6973_v51 = vrot.slane %v6965_v31, %v13472_v32  ;;  %v6980_v47 = vrot.slane %v6966_v7, %v13472_v32  ;;  %v6685_v10 = vrot.slane %v6677_v12, %v13472_v32 }
 0x6d7   : > { %7769 = vst.msk [vmem:[%s12130_s7 + $0x320] sm:$0xff] %vm1812_vm0, %v6171_v48  ;;  %7785 = vst.msk [vmem:[%s12130_s7 + $0x3a0] sm:$0xff] %vm1812_vm0, %v6172_v25  ;;  %v6692_v3 = vrot.slane %v6678_v45, %v13472_v32  ;;  %v6701_v40 = vrot.slane %v6693_v57, %v13472_v32  ;;  %v6708_v1 = vrot.slane %v6694_v27, %v13472_v32  ;;  %v13489_v48 = vld [vmem:[#allocation26_spill] sm:$0xff]  ;;  %v13490_v25 = vld [vmem:[#allocation23_spill] sm:$0xff] }
 0x6d8   : > { %v6981_v9 = vcombine.low %v11978_v17, %v6957_v23  ;;  %v6982_v42 = vcombine.high %v11978_v17, %v6957_v23  ;;  %v6983_v44 = vcombine.low %v11981_v56, %v6964_v35  ;;  %v6984_v50 = vcombine.high %v11981_v56, %v6964_v35 }
 0x6d9   : > { %v6985_v15 = vcombine.low %v11984_v46, %v6973_v51  ;;  %v6986_v63 = vcombine.high %v11984_v46, %v6973_v51  ;;  %v6987_v55 = vcombine.low %v11987_v37, %v6980_v47  ;;  %v6988_v30 = vcombine.high %v11987_v37, %v6980_v47  ;;  %v12342_v0 = vpop.permute.xlu0 %5351  ;;  %v13495_v51 = vld [vmem:[#allocation25_spill] sm:$0xff] }
 0x6da   : > { %7679 = vst.msk [vmem:[%s12130_s7 + $0x50] sm:$0xff] %vm1812_vm0, %v6981_v9  ;;  %7695 = vst.msk [vmem:[%s12130_s7 + $0xd0] sm:$0xff] %vm1812_vm0, %v6982_v42  ;;  %v6709_v17 = vcombine.low %v11990_v22, %v6685_v10  ;;  %v6710_v56 = vcombine.high %v11990_v22, %v6685_v10  ;;  %v6711_v46 = vcombine.low %v11993_v61, %v6692_v3 }
 0x6db   : > { %7711 = vst.msk [vmem:[%s12130_s7 + $0x150] sm:$0xff] %vm1812_vm0, %v6983_v44  ;;  %7727 = vst.msk [vmem:[%s12130_s7 + $0x1d0] sm:$0xff] %vm1812_vm0, %v6984_v50  ;;  %v6712_v37 = vcombine.high %v11993_v61, %v6692_v3  ;;  %v6713_v20 = vcombine.low %v13485_v59, %v6701_v40  ;;  %v6714_v26 = vcombine.high %v13485_v59, %v6701_v40  ;;  %v12344_v61 = vpop.permute.xlu1 %5349 }
 0x6dc   : > { %7743 = vst.msk [vmem:[%s12130_s7 + $0x250] sm:$0xff] %vm1812_vm0, %v6985_v15  ;;  %7759 = vst.msk [vmem:[%s12130_s7 + $0x2d0] sm:$0xff] %vm1812_vm0, %v6986_v63  ;;  %v6715_v43 = vcombine.low %v13486_v60, %v6708_v1  ;;  %v6716_v22 = vcombine.high %v13486_v60, %v6708_v1  ;;  %v7445_v28 = vcombine.low %v13487_v6, %v12158_v13 }
 0x6dd   : > { %7775 = vst.msk [vmem:[%s12130_s7 + $0x350] sm:$0xff] %vm1812_vm0, %v6987_v55  ;;  %7791 = vst.msk [vmem:[%s12130_s7 + $0x3d0] sm:$0xff] %vm1812_vm0, %v6988_v30  ;;  %v7446_v14 = vcombine.high %v13487_v6, %v12158_v13  ;;  %v7173_v41 = vcombine.low %v13488_v39, %v12160_v21  ;;  %v7174_v62 = vcombine.high %v13488_v39, %v12160_v21  ;;  %v12410_v44 = vpop.permute.xlu0 %5355 }
 0x6de   : > { %7677 = vst.msk [vmem:[%s12130_s7 + $0x40] sm:$0xff] %vm1812_vm0, %v6709_v17  ;;  %7693 = vst.msk [vmem:[%s12130_s7 + $0xc0] sm:$0xff] %vm1812_vm0, %v6710_v56  ;;  %v13491_v4 = vcombine.low %v13489_v48, %v13490_v25  ;;  %v13492_v31 = vcombine.high %v13489_v48, %v13490_v25  ;;  %v13493_v13 = vcombine.low %v11773_v34, %v12017_v33 }
 0x6df   : > { %7709 = vst.msk [vmem:[%s12130_s7 + $0x140] sm:$0xff] %vm1812_vm0, %v6711_v46  ;;  %7725 = vst.msk [vmem:[%s12130_s7 + $0x1c0] sm:$0xff] %vm1812_vm0, %v6712_v37  ;;  %v13494_v21 = vcombine.high %v11773_v34, %v12017_v33  ;;  %v7453_v57 = vrot.slane %v7445_v28, %v13463_v54  ;;  %v7460_v27 = vrot.slane %v7446_v14, %v13463_v54  ;;  %v13496_v34 = vld [vmem:[#allocation22_spill] sm:$0xff]  ;;  %v12412_v50 = vpop.permute.xlu1 %5353  ;;  %v13501_v14 = vld [vmem:[#allocation35_spill] sm:$0xff] }
 0x6e0   : > { %v12366_v19 = vrot.slane %v13491_v4, %v13472_v32  ;;  %v12372_v7 = vrot.slane %v13492_v31, %v13472_v32  ;;  %v7437_v12 = vrot.slane %v13493_v13, %v13463_v54  ;;  %7741 = vst.msk [vmem:[%s12130_s7 + $0x240] sm:$0xff] %vm1812_vm0, %v6713_v20  ;;  %7757 = vst.msk [vmem:[%s12130_s7 + $0x2c0] sm:$0xff] %vm1812_vm0, %v6714_v26  ;;  %v13503_v4 = vld [vmem:[#allocation34_spill] sm:$0xff] }
 0x6e1   : > { %v7444_v45 = vrot.slane %v13494_v21, %v13463_v54  ;;  %7773 = vst.msk [vmem:[%s12130_s7 + $0x340] sm:$0xff] %vm1812_vm0, %v6715_v43  ;;  %7789 = vst.msk [vmem:[%s12130_s7 + $0x3c0] sm:$0xff] %vm1812_vm0, %v6716_v22  ;;  %v7181_v23 = vrot.slane %v7173_v41, %v13463_v54  ;;  %v7188_v35 = vrot.slane %v7174_v62, %v13463_v54  ;;  %v12422_v6 = vpop.permute.xlu0 %5359  ;;  %v13502_v62 = vld [vmem:[#allocation32_spill] sm:$0xff] }
 0x6e2   : > { %v13497_v33 = vcombine.low %v13495_v51, %v13496_v34  ;;  %v13498_v10 = vcombine.high %v13495_v51, %v13496_v34  ;;  %v13499_v40 = vcombine.low %v11775_v16, %v12019_v49  ;;  %v13500_v9 = vcombine.high %v11775_v16, %v12019_v49 }
 0x6e3   : > { %v7493_v15 = vcombine.low %v7437_v12, %v7453_v57  ;;  %v7494_v63 = vcombine.high %v7437_v12, %v7453_v57  ;;  %v7509_v55 = vcombine.low %v7444_v45, %v7460_v27  ;;  %v7510_v30 = vcombine.high %v7444_v45, %v7460_v27  ;;  %v12424_v28 = vpop.permute.xlu1 %5357  ;;  %v13504_v12 = vld [vmem:[#allocation37_spill] sm:$0xff] }
 0x6e4   : > { %v7213_v47 = vrot.slane %v13497_v33, %v13472_v32  ;;  %v7220_v3 = vrot.slane %v13498_v10, %v13472_v32  ;;  %v7165_v1 = vrot.slane %v13499_v40, %v13463_v54  ;;  %v7172_v42 = vrot.slane %v13500_v9, %v13463_v54 }
 0x6e5   : > { %v7501_v59 = vrot.slane %v7493_v15, %v13472_v32  ;;  %v7508_v20 = vrot.slane %v7494_v63, %v13472_v32  ;;  %v7517_v26 = vrot.slane %v7509_v55, %v13472_v32  ;;  %v7524_v16 = vrot.slane %v7510_v30, %v13472_v32  ;;  %v12454_v10 = vpop.permute.xlu0 %5363 }
 0x6e6   : > { %v7221_v17 = vcombine.low %v7165_v1, %v7181_v23  ;;  %v7222_v56 = vcombine.high %v7165_v1, %v7181_v23  ;;  %v7237_v46 = vcombine.low %v7172_v42, %v7188_v35  ;;  %v7238_v37 = vcombine.high %v7172_v42, %v7188_v35 }
 0x6e7   : > { %v7525_v39 = vcombine.low %v13501_v14, %v7501_v59  ;;  %v7526_v41 = vcombine.high %v13501_v14, %v7501_v59  ;;  %v7527_v48 = vcombine.low %v13502_v62, %v7508_v20  ;;  %v7528_v25 = vcombine.high %v13502_v62, %v7508_v20  ;;  %v12456_v40 = vpop.permute.xlu1 %5361  ;;  %v13507_v59 = vld [vmem:[#allocation21_spill] sm:$0xff] }
 0x6e8   : > { %v7229_v49 = vrot.slane %v7221_v17, %v13472_v32  ;;  %v7236_v60 = vrot.slane %v7222_v56, %v13472_v32  ;;  %v7245_v43 = vrot.slane %v7237_v46, %v13472_v32  ;;  %v7252_v22 = vrot.slane %v7238_v37, %v13472_v32 }
 0x6e9   : > { %v7529_v31 = vcombine.low %v13503_v4, %v7517_v26  ;;  %v7530_v13 = vcombine.high %v13503_v4, %v7517_v26  ;;  %v7531_v21 = vcombine.low %v13504_v12, %v7524_v16  ;;  %v7532_v45 = vcombine.high %v13504_v12, %v7524_v16  ;;  %7683 = vst.msk [vmem:[%s12130_s7 + $0x70] sm:$0xff] %vm1812_vm0, %v7525_v39  ;;  %v5376_v15 = vpop.permute.xlu0 %5375  ;;  %v13508_v16 = vld [vmem:[#allocation20_spill] sm:$0xff] }
 0x6ea   : > { %7699 = vst.msk [vmem:[%s12130_s7 + $0xf0] sm:$0xff] %vm1812_vm0, %v7526_v41  ;;  %7715 = vst.msk [vmem:[%s12130_s7 + $0x170] sm:$0xff] %vm1812_vm0, %v7527_v48  ;;  %v7253_v57 = vcombine.low %v12366_v19, %v7229_v49  ;;  %v7254_v27 = vcombine.high %v12366_v19, %v7229_v49  ;;  %v7255_v23 = vcombine.low %v12372_v7, %v7236_v60 }
 0x6eb   : > { %7731 = vst.msk [vmem:[%s12130_s7 + $0x1f0] sm:$0xff] %vm1812_vm0, %v7528_v25  ;;  %v7256_v35 = vcombine.high %v12372_v7, %v7236_v60  ;;  %7747 = vst.msk [vmem:[%s12130_s7 + $0x270] sm:$0xff] %vm1812_vm0, %v7529_v31  ;;  %v7257_v51 = vcombine.low %v7213_v47, %v7245_v43  ;;  %v7258_v34 = vcombine.high %v7213_v47, %v7245_v43  ;;  %v13505_v7 = vld [vmem:[#allocation27_spill] sm:$0xff]  ;;  %v5374_v63 = vpop.permute.xlu1 %5373 }
 0x6ec   : > { %7763 = vst.msk [vmem:[%s12130_s7 + $0x2f0] sm:$0xff] %vm1812_vm0, %v7530_v13  ;;  %7779 = vst.msk [vmem:[%s12130_s7 + $0x370] sm:$0xff] %vm1812_vm0, %v7531_v21  ;;  %v7259_v19 = vcombine.low %v7220_v3, %v7252_v22  ;;  %v7260_v33 = vcombine.high %v7220_v3, %v7252_v22  ;;  %v5901_v1 = vcombine.low %v13505_v7, %v12342_v0  ;;  %v13506_v3 = vld [vmem:[#allocation19_spill] sm:$0xff] }
 0x6ed   : > { %7795 = vst.msk [vmem:[%s12130_s7 + $0x3f0] sm:$0xff] %vm1812_vm0, %v7532_v45  ;;  %7681 = vst.msk [vmem:[%s12130_s7 + $0x60] sm:$0xff] %vm1812_vm0, %v7253_v57  ;;  %v5902_v47 = vcombine.high %v13505_v7, %v12342_v0  ;;  %v5629_v9 = vcombine.low %v13506_v3, %v12344_v61  ;;  %v5630_v42 = vcombine.high %v13506_v3, %v12344_v61  ;;  %v5380_v14 = vpop.permute.xlu0 %5379 }
 0x6ee   : > { %7697 = vst.msk [vmem:[%s12130_s7 + $0xe0] sm:$0xff] %vm1812_vm0, %v7254_v27  ;;  %7713 = vst.msk [vmem:[%s12130_s7 + $0x160] sm:$0xff] %vm1812_vm0, %v7255_v23  ;;  %v12483_v55 = vrot.slane %v5901_v1, %v13463_v54  ;;  %v5917_v17 = vcombine.low %v12206_v11, %v5376_v15  ;;  %v5918_v56 = vcombine.high %v12206_v11, %v5376_v15 }
 0x6ef   : > { %7729 = vst.msk [vmem:[%s12130_s7 + $0x1e0] sm:$0xff] %vm1812_vm0, %v7256_v35  ;;  %7745 = vst.msk [vmem:[%s12130_s7 + $0x260] sm:$0xff] %vm1812_vm0, %v7257_v51  ;;  %v12486_v0 = vrot.slane %v5902_v47, %v13463_v54  ;;  %v12489_v30 = vrot.slane %v5629_v9, %v13463_v54  ;;  %v12492_v61 = vrot.slane %v5630_v42, %v13463_v54 }
 0x6f0   : > { %7761 = vst.msk [vmem:[%s12130_s7 + $0x2e0] sm:$0xff] %vm1812_vm0, %v7258_v34  ;;  %7777 = vst.msk [vmem:[%s12130_s7 + $0x360] sm:$0xff] %vm1812_vm0, %v7259_v19  ;;  %v5645_v46 = vcombine.low %v12208_v24, %v5374_v63  ;;  %v5646_v37 = vcombine.high %v12208_v24, %v5374_v63  ;;  %v6445_v20 = vcombine.low %v13507_v59, %v12410_v44 }
 0x6f1   : > { %7793 = vst.msk [vmem:[%s12130_s7 + $0x3e0] sm:$0xff] %vm1812_vm0, %v7260_v33  ;;  %v6446_v26 = vcombine.high %v13507_v59, %v12410_v44  ;;  %v6173_v49 = vcombine.low %v13508_v16, %v12412_v50  ;;  %v6174_v60 = vcombine.high %v13508_v16, %v12412_v50  ;;  %v12507_v43 = vrot.slane %v5917_v17, %v13463_v54  ;;  %v5378_v44 = vpop.permute.xlu1 %5377  ;;  %v5384_v23 = vpop.permute.xlu0 %5383 }
 0x6f2   : > { %v12510_v11 = vrot.slane %v5918_v56, %v13463_v54  ;;  %v12513_v24 = vrot.slane %v5645_v46, %v13463_v54  ;;  %v12516_v22 = vrot.slane %v5646_v37, %v13463_v54  ;;  %v6461_v39 = vcombine.low %v12226_v29, %v5380_v14 }
 0x6f3   : > { %v6462_v41 = vcombine.high %v12226_v29, %v5380_v14  ;;  %v6189_v50 = vcombine.low %v12228_v36, %v5378_v44  ;;  %v6190_v62 = vcombine.high %v12228_v36, %v5378_v44  ;;  %v5965_v48 = vcombine.low %v12483_v55, %v12507_v43 }
 0x6f4   : > { %v5966_v25 = vcombine.high %v12483_v55, %v12507_v43  ;;  %v5981_v4 = vcombine.low %v12486_v0, %v12510_v11  ;;  %v5982_v31 = vcombine.high %v12486_v0, %v12510_v11  ;;  %v5693_v13 = vcombine.low %v12489_v30, %v12513_v24 }
 0x6f5   : > { %v5694_v29 = vcombine.high %v12489_v30, %v12513_v24  ;;  %v5709_v36 = vcombine.low %v12492_v61, %v12516_v22  ;;  %v6989_v21 = vcombine.low %v11625_v8, %v12422_v6  ;;  %v6990_v45 = vcombine.high %v11625_v8, %v12422_v6  ;;  %v5382_v8 = vpop.permute.xlu1 %5381  ;;  %v5388_v17 = vpop.permute.xlu0 %5387 }
 0x6f6   : > { %v6717_v57 = vcombine.low %v11627_v18, %v12424_v28  ;;  %v6718_v27 = vcombine.high %v11627_v18, %v12424_v28  ;;  %v12547_v35 = vrot.slane %v6445_v20, %v13463_v54  ;;  %v12550_v51 = vrot.slane %v6446_v26, %v13463_v54 }
 0x6f7   : > { %v12553_v34 = vrot.slane %v6173_v49, %v13463_v54  ;;  %v12556_v19 = vrot.slane %v6174_v60, %v13463_v54  ;;  %v12559_v6 = vrot.slane %v6461_v39, %v13463_v54  ;;  %v12562_v33 = vrot.slane %v6462_v41, %v13463_v54 }
 0x6f8   : > { %v12565_v18 = vrot.slane %v6189_v50, %v13463_v54  ;;  %v12568_v28 = vrot.slane %v6190_v62, %v13463_v54  ;;  %v7005_v7 = vcombine.low %v12262_v52, %v5384_v23  ;;  %v7006_v1 = vcombine.high %v12262_v52, %v5384_v23 }
 0x6f9   : > { %v6733_v47 = vcombine.low %v12264_v58, %v5382_v8  ;;  %v6734_v3 = vcombine.high %v12264_v58, %v5382_v8  ;;  %v5386_v37 = vpop.permute.xlu1 %5385  ;;  %v12591_v59 = vrot.slane %v6989_v21, %v13463_v54  ;;  %v12594_v20 = vrot.slane %v6990_v45, %v13463_v54  ;;  %v12622_v21 = vpop.permute.xlu0 %5399 }
 0x6fa   : > { %v12597_v26 = vrot.slane %v6717_v57, %v13463_v54  ;;  %v12600_v16 = vrot.slane %v6718_v27, %v13463_v54  ;;  %v7533_v49 = vcombine.low %v11637_v53, %v12454_v10  ;;  %v7534_v60 = vcombine.high %v11637_v53, %v12454_v10 }
 0x6fb   : > { %v7261_v14 = vcombine.low %v11639_v38, %v12456_v40  ;;  %v7262_v44 = vcombine.high %v11639_v38, %v12456_v40  ;;  %v12611_v39 = vrot.slane %v7005_v7, %v13463_v54  ;;  %v12614_v41 = vrot.slane %v7006_v1, %v13463_v54 }
 0x6fc   : > { %v12617_v50 = vrot.slane %v6733_v47, %v13463_v54  ;;  %v12620_v62 = vrot.slane %v6734_v3, %v13463_v54  ;;  %v7549_v53 = vcombine.low %v12306_v2, %v5388_v17  ;;  %v7550_v10 = vcombine.high %v12306_v2, %v5388_v17 }
 0x6fd   : > { %v7277_v38 = vcombine.low %v12308_v5, %v5386_v37  ;;  %v7278_v40 = vcombine.high %v12308_v5, %v5386_v37  ;;  %v12628_v45 = vpop.permute.xlu1 %5397  ;;  %v7053_v57 = vcombine.low %v12591_v59, %v12611_v39  ;;  %v7054_v27 = vcombine.high %v12591_v59, %v12611_v39  ;;  %v12646_v47 = vpop.permute.xlu0 %5403 }
 0x6fe   : > { %v7069_v23 = vcombine.low %v12594_v20, %v12614_v41  ;;  %v7070_v8 = vcombine.high %v12594_v20, %v12614_v41  ;;  %v6781_v2 = vcombine.low %v12597_v26, %v12617_v50  ;;  %v6782_v5 = vcombine.high %v12597_v26, %v12617_v50 }
 0x6ff   : > { %v6797_v7 = vcombine.low %v12600_v16, %v12620_v62  ;;  %v6798_v1 = vcombine.high %v12600_v16, %v12620_v62  ;;  %v12649_v3 = vrot.slane %v7533_v49, %v13463_v54  ;;  %v12652_v17 = vrot.slane %v7534_v60, %v13463_v54 }
 0x700   : > { %v12657_v59 = vrot.slane %v7549_v53, %v13463_v54  ;;  %v12660_v20 = vrot.slane %v7550_v10, %v13463_v54  ;;  %v12663_v26 = vrot.slane %v7277_v38, %v13463_v54  ;;  %v12666_v16 = vrot.slane %v7278_v40, %v13463_v54 }
 0x701   : > { %v12654_v37 = vpop.permute.xlu1 %5401  ;;  %v12669_v49 = vrot.slane %v7261_v14, %v13463_v54  ;;  %v12672_v60 = vrot.slane %v7262_v44, %v13463_v54  ;;  %v12682_v53 = vpop.permute.xlu0 %5407  ;;  %v12718_v15 = vrot.slane %v5965_v48, %v13472_v32  ;;  %v12724_v42 = vrot.slane %v5966_v25, %v13472_v32 }
 0x702   : > { %13509 = vst [vmem:[#allocation36_spill] sm:$0xff] %v12663_v26  ;;  %13510 = vst [vmem:[#allocation11_spill] sm:$0xff] %v12666_v16  ;;  %v7597_v39 = vcombine.low %v12649_v3, %v12657_v59  ;;  %v7598_v41 = vcombine.high %v12649_v3, %v12657_v59  ;;  %v7613_v50 = vcombine.low %v12652_v17, %v12660_v20 }
 0x703   : > { %13511 = vst [vmem:[#allocation39_spill] sm:$0xff] %v12669_v49  ;;  %13512 = vst [vmem:[#allocation38_spill] sm:$0xff] %v12672_v60  ;;  %v7614_v62 = vcombine.high %v12652_v17, %v12660_v20  ;;  %v12730_v9 = vrot.slane %v5981_v4, %v13472_v32  ;;  %v12736_v12 = vrot.slane %v5982_v31, %v13472_v32 }
 0x704   : > { %v12742_v55 = vrot.slane %v5693_v13, %v13472_v32  ;;  %v12748_v43 = vrot.slane %v5694_v29, %v13472_v32  ;;  %v12754_v0 = vrot.slane %v5709_v36, %v13472_v32  ;;  %v13515_v11 = vcombine.high %v12492_v61, %v12516_v22 }
 0x705   : > { %v12692_v40 = vpop.permute.xlu1 %5405  ;;  %v12694_v3 = vpop.permute.xlu0 %5411  ;;  %v13516_v4 = vcombine.low %v12547_v35, %v12559_v6  ;;  %v13517_v30 = vcombine.high %v12547_v35, %v12559_v6  ;;  %v13518_v13 = vcombine.low %v12550_v51, %v12562_v33  ;;  %v13519_v61 = vcombine.high %v12550_v51, %v12562_v33 }
 0x706   : > { %13513 = vst [vmem:[#allocation17_spill] sm:$0xff] %v12694_v3  ;;  %v12760_v25 = vrot.slane %v13515_v11, %v13472_v32  ;;  %v13520_v36 = vcombine.low %v12553_v34, %v12565_v18  ;;  %v13521_v35 = vcombine.high %v12553_v34, %v12565_v18  ;;  %v13523_v51 = vcombine.high %v12556_v19, %v12568_v28 }
 0x707   : > { %v12766_v31 = vrot.slane %v13516_v4, %v13472_v32  ;;  %v12772_v24 = vrot.slane %v13517_v30, %v13472_v32  ;;  %v12778_v29 = vrot.slane %v13518_v13, %v13472_v32  ;;  %v12784_v22 = vrot.slane %v13519_v61, %v13472_v32 }
 0x708   : > { %v12790_v11 = vrot.slane %v13520_v36, %v13472_v32  ;;  %v12796_v6 = vrot.slane %v13521_v35, %v13472_v32  ;;  %v13522_v4 = vcombine.low %v12556_v19, %v12568_v28  ;;  %v12808_v33 = vrot.slane %v13523_v51, %v13472_v32 }
 0x709   : > { %v12696_v59 = vpop.permute.xlu1 %5409  ;;  %v12698_v17 = vpop.permute.xlu0 %5423  ;;  %v12811_v61 = vrot.slane %v7053_v57, %v13472_v32  ;;  %v12814_v34 = vrot.slane %v7054_v27, %v13472_v32  ;;  %v12817_v18 = vrot.slane %v7069_v23, %v13472_v32  ;;  %v12820_v36 = vrot.slane %v7070_v8, %v13472_v32 }
 0x70a   : > { %v12802_v30 = vrot.slane %v13522_v4, %v13472_v32  ;;  %v12823_v4 = vrot.slane %v6781_v2, %v13472_v32  ;;  %v12826_v19 = vrot.slane %v6782_v5, %v13472_v32  ;;  %v12829_v28 = vrot.slane %v6797_v7, %v13472_v32 }
 0x70b   : > { %v12832_v57 = vrot.slane %v6798_v1, %v13472_v32  ;;  %v12845_v1 = vrot.slane %v7597_v39, %v13472_v32  ;;  %v12848_v26 = vrot.slane %v7598_v41, %v13472_v32 }
 0x70d   : > { %v12700_v20 = vpop.permute.xlu1 %5421  ;;  %v12702_v14 = vpop.permute.xlu0 %5427  ;;  %13525 = vst [vmem:[#allocation14_spill] sm:$0xff] %v12845_v1  ;;  %13526 = vst [vmem:[#allocation16_spill] sm:$0xff] %v12848_v26 }
 0x711   : > { %v12704_v46 = vpop.permute.xlu1 %5425  ;;  %v12706_v44 = vpop.permute.xlu0 %5431 }
 0x715   : > { %v12708_v10 = vpop.permute.xlu1 %5429  ;;  %v12710_v58 = vpop.permute.xlu0 %5435 }
 0x719   : > { %v12712_v38 = vpop.permute.xlu1 %5433  ;;  %v5448_v56 = vpop.permute.xlu0 %5447 }
 0x71a   : > { %13514 = vst [vmem:[#allocation24_spill] sm:$0xff] %v12712_v38  ;;  %v5933_v27 = vcombine.low %v12622_v21, %v5448_v56  ;;  %v5934_v23 = vcombine.high %v12622_v21, %v5448_v56 }
 0x71c   : > { %v5941_v39 = vrot.slane %v5933_v27, %v13463_v54  ;;  %v5948_v41 = vrot.slane %v5934_v23, %v13463_v54 }
 0x71d   : > { %v5446_v52 = vpop.permute.xlu1 %5445  ;;  %v5452_v63 = vpop.permute.xlu0 %5451 }
 0x71e   : > { %v5661_v8 = vcombine.low %v12628_v45, %v5446_v52  ;;  %v5662_v51 = vcombine.high %v12628_v45, %v5446_v52  ;;  %v6477_v2 = vcombine.low %v12646_v47, %v5452_v63  ;;  %v6478_v16 = vcombine.high %v12646_v47, %v5452_v63 }
 0x71f   : > { %v12855_v63 = vrot.slane %v7613_v50, %v13472_v32  ;;  %v12858_v45 = vrot.slane %v7614_v62, %v13472_v32 }
 0x720   : > { %v12870_v50 = vrot.slane %v6478_v16, %v13463_v54 }
 0x721   : > { %v5450_v48 = vpop.permute.xlu1 %5449  ;;  %v5456_v13 = vpop.permute.xlu0 %5455  ;;  %13527 = vst [vmem:[#allocation15_spill] sm:$0xff] %v12855_v63  ;;  %13528 = vst [vmem:[#allocation12_spill] sm:$0xff] %v12858_v45 }
 0x722   : > { %v6205_v5 = vcombine.low %v12654_v37, %v5450_v48  ;;  %v6206_v7 = vcombine.high %v12654_v37, %v5450_v48  ;;  %v7021_v56 = vcombine.low %v12682_v53, %v5456_v13  ;;  %v7022_v52 = vcombine.high %v12682_v53, %v5456_v13 }
 0x723   : > { %v5669_v48 = vrot.slane %v5661_v8, %v13463_v54  ;;  %v5676_v53 = vrot.slane %v5662_v51, %v13463_v54  ;;  %v12867_v13 = vrot.slane %v6477_v2, %v13463_v54 }
 0x724   : > { %v12873_v62 = vrot.slane %v6205_v5, %v13463_v54  ;;  %v12876_v45 = vrot.slane %v6206_v7, %v13463_v54  ;;  %v12882_v27 = vrot.slane %v7022_v52, %v13463_v54 }
 0x725   : > { %v5454_v35 = vpop.permute.xlu1 %5453  ;;  %v12842_v60 = vpop.permute.xlu0 %5459 }
 0x726   : > { %13524 = vst [vmem:[#allocation13_spill] sm:$0xff] %v12842_v60  ;;  %v6749_v47 = vcombine.low %v12692_v40, %v5454_v35  ;;  %v6750_v37 = vcombine.high %v12692_v40, %v5454_v35  ;;  %v12879_v35 = vrot.slane %v7021_v56, %v13463_v54 }
 0x728   : > { %v12887_v16 = vrot.slane %v6749_v47, %v13463_v54  ;;  %v12890_v2 = vrot.slane %v6750_v37, %v13463_v54 }
 0x729   : > { %v12852_v21 = vpop.permute.xlu1 %5457  ;;  %v5472_v40 = vpop.permute.xlu0 %5471 }
 0x72a   : > { %v5949_v23 = vcombine.low %v12698_v17, %v5472_v40  ;;  %v5950_v8 = vcombine.high %v12698_v17, %v5472_v40  ;;  %v7294_v37 = vcombine.high %v12696_v59, %v12852_v21 }
 0x72c   : > { %v5957_v63 = vrot.slane %v5949_v23, %v13463_v54  ;;  %v5964_v17 = vrot.slane %v5950_v8, %v13463_v54 }
 0x72d   : > { %v5470_v51 = vpop.permute.xlu1 %5469  ;;  %v5476_v49 = vpop.permute.xlu0 %5475 }
 0x72e   : > { %v5677_v5 = vcombine.low %v12700_v20, %v5470_v51  ;;  %v5678_v7 = vcombine.high %v12700_v20, %v5470_v51  ;;  %v5997_v51 = vcombine.low %v5941_v39, %v5957_v63  ;;  %v5998_v26 = vcombine.high %v5941_v39, %v5957_v63 }
 0x72f   : > { %v6013_v56 = vcombine.low %v5948_v41, %v5964_v17  ;;  %v6014_v1 = vcombine.high %v5948_v41, %v5964_v17 }
 0x730   : > { %v5685_v40 = vrot.slane %v5677_v5, %v13463_v54  ;;  %v5692_v20 = vrot.slane %v5678_v7, %v13463_v54  ;;  %v6005_v38 = vrot.slane %v5997_v51, %v13472_v32  ;;  %v6012_v47 = vrot.slane %v5998_v26, %v13472_v32 }
 0x731   : > { %v5474_v52 = vpop.permute.xlu1 %5473  ;;  %v6021_v5 = vrot.slane %v6013_v56, %v13472_v32  ;;  %v6028_v7 = vrot.slane %v6014_v1, %v13472_v32 }
 0x732   : > { %v5725_v60 = vcombine.low %v5669_v48, %v5685_v40  ;;  %v5726_v23 = vcombine.high %v5669_v48, %v5685_v40  ;;  %v5741_v3 = vcombine.low %v5676_v53, %v5692_v20  ;;  %v5742_v8 = vcombine.high %v5676_v53, %v5692_v20 }
 0x733   : > { %v6029_v53 = vcombine.low %v12718_v15, %v6005_v38  ;;  %v6030_v17 = vcombine.high %v12718_v15, %v6005_v38  ;;  %v6031_v26 = vcombine.low %v12724_v42, %v6012_v47  ;;  %v6032_v56 = vcombine.high %v12724_v42, %v6012_v47  ;;  %v5480_v38 = vpop.permute.xlu0 %5479 }
 0x734   : > { %v5733_v63 = vrot.slane %v5725_v60, %v13472_v32  ;;  %v5740_v39 = vrot.slane %v5726_v23, %v13472_v32  ;;  %v5749_v41 = vrot.slane %v5741_v3, %v13472_v32  ;;  %v5756_v48 = vrot.slane %v5742_v8, %v13472_v32 }
 0x735   : > { %v6033_v1 = vcombine.low %v12730_v9, %v6021_v5  ;;  %v6034_v60 = vcombine.high %v12730_v9, %v6021_v5  ;;  %v6035_v3 = vcombine.low %v12736_v12, %v6028_v7  ;;  %v6036_v40 = vcombine.high %v12736_v12, %v6028_v7  ;;  %7672 = vst.msk [vmem:[%s12130_s7 + $0x18] sm:$0xff] %vm1812_vm0, %v6029_v53  ;;  %v5478_v47 = vpop.permute.xlu1 %5477 }
 0x736   : > { %7688 = vst.msk [vmem:[%s12130_s7 + $0x98] sm:$0xff] %vm1812_vm0, %v6030_v17  ;;  %7704 = vst.msk [vmem:[%s12130_s7 + $0x118] sm:$0xff] %vm1812_vm0, %v6031_v26  ;;  %v5757_v42 = vcombine.low %v12742_v55, %v5733_v63  ;;  %v5758_v9 = vcombine.high %v12742_v55, %v5733_v63  ;;  %v5759_v15 = vcombine.low %v12748_v43, %v5740_v39 }
 0x737   : > { %7720 = vst.msk [vmem:[%s12130_s7 + $0x198] sm:$0xff] %vm1812_vm0, %v6032_v56  ;;  %v5760_v12 = vcombine.high %v12748_v43, %v5740_v39  ;;  %7736 = vst.msk [vmem:[%s12130_s7 + $0x218] sm:$0xff] %vm1812_vm0, %v6033_v1  ;;  %v5761_v55 = vcombine.low %v12754_v0, %v5749_v41  ;;  %v5762_v20 = vcombine.high %v12754_v0, %v5749_v41 }
 0x738   : > { %7752 = vst.msk [vmem:[%s12130_s7 + $0x298] sm:$0xff] %vm1812_vm0, %v6034_v60  ;;  %7768 = vst.msk [vmem:[%s12130_s7 + $0x318] sm:$0xff] %vm1812_vm0, %v6035_v3  ;;  %v5763_v43 = vcombine.low %v12760_v25, %v5756_v48  ;;  %v5764_v51 = vcombine.high %v12760_v25, %v5756_v48  ;;  %v6493_v23 = vcombine.low %v12702_v14, %v5476_v49 }
 0x739   : > { %7784 = vst.msk [vmem:[%s12130_s7 + $0x398] sm:$0xff] %vm1812_vm0, %v6036_v40  ;;  %7670 = vst.msk [vmem:[%s12130_s7 + $0x8] sm:$0xff] %vm1812_vm0, %v5757_v42  ;;  %v6494_v8 = vcombine.high %v12702_v14, %v5476_v49  ;;  %v6221_v5 = vcombine.low %v12704_v46, %v5474_v52  ;;  %v6222_v0 = vcombine.high %v12704_v46, %v5474_v52 }
 0x73a   : > { %7686 = vst.msk [vmem:[%s12130_s7 + $0x88] sm:$0xff] %vm1812_vm0, %v5758_v9  ;;  %7702 = vst.msk [vmem:[%s12130_s7 + $0x108] sm:$0xff] %vm1812_vm0, %v5759_v15  ;;  %v7037_v25 = vcombine.low %v12706_v44, %v5480_v38  ;;  %v7038_v7 = vcombine.high %v12706_v44, %v5480_v38  ;;  %v6765_v63 = vcombine.low %v12708_v10, %v5478_v47 }
 0x73b   : > { %7718 = vst.msk [vmem:[%s12130_s7 + $0x188] sm:$0xff] %vm1812_vm0, %v5760_v12  ;;  %7734 = vst.msk [vmem:[%s12130_s7 + $0x208] sm:$0xff] %vm1812_vm0, %v5761_v55  ;;  %v6766_v49 = vcombine.high %v12708_v10, %v5478_v47  ;;  %v6501_v14 = vrot.slane %v6493_v23, %v13463_v54  ;;  %v6508_v46 = vrot.slane %v6494_v8, %v13463_v54 }
 0x73c   : > { %7750 = vst.msk [vmem:[%s12130_s7 + $0x288] sm:$0xff] %vm1812_vm0, %v5762_v20  ;;  %7766 = vst.msk [vmem:[%s12130_s7 + $0x308] sm:$0xff] %vm1812_vm0, %v5763_v43  ;;  %v6229_v52 = vrot.slane %v6221_v5, %v13463_v54  ;;  %v6236_v39 = vrot.slane %v6222_v0, %v13463_v54  ;;  %v7045_v41 = vrot.slane %v7037_v25, %v13463_v54 }
 0x73d   : > { %7782 = vst.msk [vmem:[%s12130_s7 + $0x388] sm:$0xff] %vm1812_vm0, %v5764_v51  ;;  %v12976_v48 = vrot.slane %v7038_v7, %v13463_v54  ;;  %v12979_v53 = vrot.slane %v6765_v63, %v13463_v54  ;;  %v12982_v44 = vrot.slane %v6766_v49, %v13463_v54  ;;  %v6541_v10 = vcombine.low %v12867_v13, %v6501_v14 }
 0x73e   : > { %v6542_v17 = vcombine.high %v12867_v13, %v6501_v14  ;;  %v6557_v26 = vcombine.low %v12870_v50, %v6508_v46  ;;  %v6558_v56 = vcombine.high %v12870_v50, %v6508_v46  ;;  %v6269_v1 = vcombine.low %v12873_v62, %v6229_v52 }
 0x73f   : > { %v6270_v60 = vcombine.high %v12873_v62, %v6229_v52  ;;  %v6285_v3 = vcombine.low %v12876_v45, %v6236_v39  ;;  %v6286_v40 = vcombine.high %v12876_v45, %v6236_v39  ;;  %v6549_v42 = vrot.slane %v6541_v10, %v13472_v32 }
 0x740   : > { %v6556_v9 = vrot.slane %v6542_v17, %v13472_v32  ;;  %v6565_v13 = vrot.slane %v6557_v26, %v13472_v32  ;;  %v6572_v15 = vrot.slane %v6558_v56, %v13472_v32  ;;  %v6277_v50 = vrot.slane %v6269_v1, %v13472_v32 }
 0x741   : > { %v6284_v62 = vrot.slane %v6270_v60, %v13472_v32  ;;  %v6293_v12 = vrot.slane %v6285_v3, %v13472_v32  ;;  %v6300_v45 = vrot.slane %v6286_v40, %v13472_v32  ;;  %v6573_v38 = vcombine.low %v12766_v31, %v6549_v42  ;;  %v5484_v3 = vpop.permute.xlu0 %5483  ;;  %v5482_v40 = vpop.permute.xlu1 %5481 }
 0x742   : > { %v6574_v47 = vcombine.high %v12766_v31, %v6549_v42  ;;  %v6575_v55 = vcombine.low %v12772_v24, %v6556_v9  ;;  %v6576_v20 = vcombine.high %v12772_v24, %v6556_v9  ;;  %v6577_v43 = vcombine.low %v12778_v29, %v6565_v13 }
 0x743   : > { %v6578_v51 = vcombine.high %v12778_v29, %v6565_v13  ;;  %v6579_v23 = vcombine.low %v12784_v22, %v6572_v15  ;;  %v6580_v8 = vcombine.high %v12784_v22, %v6572_v15  ;;  %7676 = vst.msk [vmem:[%s12130_s7 + $0x38] sm:$0xff] %vm1812_vm0, %v6573_v38  ;;  %v6301_v31 = vcombine.low %v12790_v11, %v6277_v50 }
 0x744   : > { %7692 = vst.msk [vmem:[%s12130_s7 + $0xb8] sm:$0xff] %vm1812_vm0, %v6574_v47  ;;  %7708 = vst.msk [vmem:[%s12130_s7 + $0x138] sm:$0xff] %vm1812_vm0, %v6575_v55  ;;  %v6302_v24 = vcombine.high %v12790_v11, %v6277_v50  ;;  %v6303_v29 = vcombine.low %v12796_v6, %v6284_v62  ;;  %v6304_v22 = vcombine.high %v12796_v6, %v6284_v62 }
 0x745   : > { %7724 = vst.msk [vmem:[%s12130_s7 + $0x1b8] sm:$0xff] %vm1812_vm0, %v6576_v20  ;;  %7740 = vst.msk [vmem:[%s12130_s7 + $0x238] sm:$0xff] %vm1812_vm0, %v6577_v43  ;;  %v6305_v5 = vcombine.low %v12802_v30, %v6293_v12  ;;  %v6306_v11 = vcombine.high %v12802_v30, %v6293_v12  ;;  %v6307_v0 = vcombine.low %v12808_v33, %v6300_v45  ;;  %v13530_v12 = vld [vmem:[#allocation39_spill] sm:$0xff]  ;;  %v13534_v20 = vld [vmem:[#allocation17_spill] sm:$0xff] }
 0x746   : > { %7756 = vst.msk [vmem:[%s12130_s7 + $0x2b8] sm:$0xff] %vm1812_vm0, %v6578_v51  ;;  %7772 = vst.msk [vmem:[%s12130_s7 + $0x338] sm:$0xff] %vm1812_vm0, %v6579_v23  ;;  %v6308_v6 = vcombine.high %v12808_v33, %v6300_v45  ;;  %v7085_v25 = vcombine.low %v12879_v35, %v7045_v41  ;;  %v7086_v7 = vcombine.high %v12879_v35, %v7045_v41  ;;  %v13535_v43 = vld [vmem:[#allocation13_spill] sm:$0xff] }
 0x747   : > { %7788 = vst.msk [vmem:[%s12130_s7 + $0x3b8] sm:$0xff] %vm1812_vm0, %v6580_v8  ;;  %7674 = vst.msk [vmem:[%s12130_s7 + $0x28] sm:$0xff] %vm1812_vm0, %v6301_v31  ;;  %v7101_v63 = vcombine.low %v12882_v27, %v12976_v48  ;;  %v7102_v30 = vcombine.high %v12882_v27, %v12976_v48  ;;  %v6813_v33 = vcombine.low %v12887_v16, %v12979_v53 }
 0x748   : > { %7690 = vst.msk [vmem:[%s12130_s7 + $0xa8] sm:$0xff] %vm1812_vm0, %v6302_v24  ;;  %7706 = vst.msk [vmem:[%s12130_s7 + $0x128] sm:$0xff] %vm1812_vm0, %v6303_v29  ;;  %v6814_v35 = vcombine.high %v12887_v16, %v12979_v53  ;;  %v6829_v49 = vcombine.low %v12890_v2, %v12982_v44  ;;  %v6830_v27 = vcombine.high %v12890_v2, %v12982_v44 }
 0x749   : > { %7722 = vst.msk [vmem:[%s12130_s7 + $0x1a8] sm:$0xff] %vm1812_vm0, %v6304_v22  ;;  %7738 = vst.msk [vmem:[%s12130_s7 + $0x228] sm:$0xff] %vm1812_vm0, %v6305_v5  ;;  %v7093_v14 = vrot.slane %v7085_v25, %v13472_v32  ;;  %v7100_v46 = vrot.slane %v7086_v7, %v13472_v32  ;;  %v7109_v52 = vrot.slane %v7101_v63, %v13472_v32  ;;  %v13538_v5 = vld [vmem:[#allocation38_spill] sm:$0xff] }
 0x74a   : > { %7754 = vst.msk [vmem:[%s12130_s7 + $0x2a8] sm:$0xff] %vm1812_vm0, %v6306_v11  ;;  %7770 = vst.msk [vmem:[%s12130_s7 + $0x328] sm:$0xff] %vm1812_vm0, %v6307_v0  ;;  %v7116_v39 = vrot.slane %v7102_v30, %v13472_v32  ;;  %v6821_v41 = vrot.slane %v6813_v33, %v13472_v32  ;;  %v6828_v16 = vrot.slane %v6814_v35, %v13472_v32  ;;  %v13539_v11 = vld [vmem:[#allocation11_spill] sm:$0xff] }
 0x74b   : > { %7786 = vst.msk [vmem:[%s12130_s7 + $0x3a8] sm:$0xff] %vm1812_vm0, %v6308_v6  ;;  %v6837_v48 = vrot.slane %v6829_v49, %v13472_v32  ;;  %v6844_v2 = vrot.slane %v6830_v27, %v13472_v32  ;;  %v7117_v53 = vcombine.low %v12811_v61, %v7093_v14  ;;  %v7118_v44 = vcombine.high %v12811_v61, %v7093_v14 }
 0x74c   : > { %v7119_v10 = vcombine.low %v12814_v34, %v7100_v46  ;;  %v7120_v17 = vcombine.high %v12814_v34, %v7100_v46  ;;  %v7121_v26 = vcombine.low %v12817_v18, %v7109_v52  ;;  %v7122_v56 = vcombine.high %v12817_v18, %v7109_v52 }
 0x74d   : > { %v7123_v1 = vcombine.low %v12820_v36, %v7116_v39  ;;  %v7124_v60 = vcombine.high %v12820_v36, %v7116_v39  ;;  %7680 = vst.msk [vmem:[%s12130_s7 + $0x58] sm:$0xff] %vm1812_vm0, %v7117_v53  ;;  %7696 = vst.msk [vmem:[%s12130_s7 + $0xd8] sm:$0xff] %vm1812_vm0, %v7118_v44  ;;  %v6845_v61 = vcombine.low %v12823_v4, %v6821_v41  ;;  %v13543_v44 = vld [vmem:[#allocation14_spill] sm:$0xff] }
 0x74e   : > { %7712 = vst.msk [vmem:[%s12130_s7 + $0x158] sm:$0xff] %vm1812_vm0, %v7119_v10  ;;  %7728 = vst.msk [vmem:[%s12130_s7 + $0x1d8] sm:$0xff] %vm1812_vm0, %v7120_v17  ;;  %v6846_v34 = vcombine.high %v12823_v4, %v6821_v41  ;;  %v6847_v18 = vcombine.low %v12826_v19, %v6828_v16  ;;  %v6848_v36 = vcombine.high %v12826_v19, %v6828_v16 }
 0x74f   : > { %7744 = vst.msk [vmem:[%s12130_s7 + $0x258] sm:$0xff] %vm1812_vm0, %v7121_v26  ;;  %7760 = vst.msk [vmem:[%s12130_s7 + $0x2d8] sm:$0xff] %vm1812_vm0, %v7122_v56  ;;  %v6849_v42 = vcombine.low %v12829_v28, %v6837_v48  ;;  %v6850_v9 = vcombine.high %v12829_v28, %v6837_v48  ;;  %v6851_v4 = vcombine.low %v12832_v57, %v6844_v2  ;;  %v13529_v28 = vld [vmem:[#allocation24_spill] sm:$0xff] }
 0x750   : > { %7776 = vst.msk [vmem:[%s12130_s7 + $0x358] sm:$0xff] %vm1812_vm0, %v7123_v1  ;;  %7792 = vst.msk [vmem:[%s12130_s7 + $0x3d8] sm:$0xff] %vm1812_vm0, %v7124_v60  ;;  %v6852_v13 = vcombine.high %v12832_v57, %v6844_v2  ;;  %v7581_v19 = vcombine.low %v12710_v58, %v5484_v3  ;;  %v7582_v15 = vcombine.high %v12710_v58, %v5484_v3  ;;  %v13531_v57 = vld [vmem:[#allocation36_spill] sm:$0xff]  ;;  %v13545_v60 = vld [vmem:[#allocation15_spill] sm:$0xff] }
 0x751   : > { %7678 = vst.msk [vmem:[%s12130_s7 + $0x48] sm:$0xff] %vm1812_vm0, %v6845_v61  ;;  %7694 = vst.msk [vmem:[%s12130_s7 + $0xc8] sm:$0xff] %vm1812_vm0, %v6846_v34  ;;  %v7309_v50 = vcombine.low %v13529_v28, %v5482_v40  ;;  %v7310_v62 = vcombine.high %v13529_v28, %v5482_v40  ;;  %v13532_v45 = vcombine.low %v13530_v12, %v13531_v57  ;;  %v13544_v26 = vld [vmem:[#allocation16_spill] sm:$0xff] }
 0x752   : > { %7710 = vst.msk [vmem:[%s12130_s7 + $0x148] sm:$0xff] %vm1812_vm0, %v6847_v18  ;;  %7726 = vst.msk [vmem:[%s12130_s7 + $0x1c8] sm:$0xff] %vm1812_vm0, %v6848_v36  ;;  %v13533_v47 = vcombine.high %v13530_v12, %v13531_v57  ;;  %v13536_v51 = vcombine.low %v13534_v20, %v13535_v43  ;;  %v13537_v23 = vcombine.high %v13534_v20, %v13535_v43  ;;  %v13546_v61 = vld [vmem:[#allocation12_spill] sm:$0xff] }
 0x753   : > { %v7333_v38 = vrot.slane %v13532_v45, %v13472_v32  ;;  %7742 = vst.msk [vmem:[%s12130_s7 + $0x248] sm:$0xff] %vm1812_vm0, %v6849_v42  ;;  %7758 = vst.msk [vmem:[%s12130_s7 + $0x2c8] sm:$0xff] %vm1812_vm0, %v6850_v9  ;;  %v7589_v31 = vrot.slane %v7581_v19, %v13463_v54  ;;  %v7596_v24 = vrot.slane %v7582_v15, %v13463_v54 }
 0x754   : > { %v13122_v55 = vrot.slane %v13533_v47, %v13472_v32  ;;  %v7573_v58 = vrot.slane %v13536_v51, %v13463_v54  ;;  %v7580_v8 = vrot.slane %v13537_v23, %v13463_v54  ;;  %7774 = vst.msk [vmem:[%s12130_s7 + $0x348] sm:$0xff] %vm1812_vm0, %v6851_v4  ;;  %7790 = vst.msk [vmem:[%s12130_s7 + $0x3c8] sm:$0xff] %vm1812_vm0, %v6852_v13 }
 0x755   : > { %v7317_v29 = vrot.slane %v7309_v50, %v13463_v54  ;;  %v7324_v22 = vrot.slane %v7310_v62, %v13463_v54  ;;  %v13540_v0 = vcombine.low %v13538_v5, %v13539_v11  ;;  %v13541_v25 = vcombine.high %v13538_v5, %v13539_v11 }
 0x756   : > { %v13542_v63 = vcombine.low %v12696_v59, %v12852_v21  ;;  %v7308_v33 = vrot.slane %v7294_v37, %v13463_v54  ;;  %v7629_v35 = vcombine.low %v7573_v58, %v7589_v31  ;;  %v7630_v49 = vcombine.high %v7573_v58, %v7589_v31 }
 0x757   : > { %v7349_v6 = vrot.slane %v13540_v0, %v13472_v32  ;;  %v7356_v7 = vrot.slane %v13541_v25, %v13472_v32  ;;  %v7645_v27 = vcombine.low %v7580_v8, %v7596_v24  ;;  %v7646_v14 = vcombine.high %v7580_v8, %v7596_v24 }
 0x758   : > { %v7301_v30 = vrot.slane %v13542_v63, %v13463_v54  ;;  %v7373_v39 = vcombine.low %v7308_v33, %v7324_v22  ;;  %v7374_v41 = vcombine.high %v7308_v33, %v7324_v22  ;;  %v7637_v16 = vrot.slane %v7629_v35, %v13472_v32 }
 0x759   : > { %v7644_v48 = vrot.slane %v7630_v49, %v13472_v32  ;;  %v7653_v2 = vrot.slane %v7645_v27, %v13472_v32  ;;  %v7660_v59 = vrot.slane %v7646_v14, %v13472_v32 }
 0x75a   : > { %v7357_v46 = vcombine.low %v7301_v30, %v7317_v29  ;;  %v7358_v52 = vcombine.high %v7301_v30, %v7317_v29  ;;  %v7381_v37 = vrot.slane %v7373_v39, %v13472_v32  ;;  %v7388_v53 = vrot.slane %v7374_v41, %v13472_v32 }
 0x75b   : > { %v7661_v10 = vcombine.low %v13543_v44, %v7637_v16  ;;  %v7662_v17 = vcombine.high %v13543_v44, %v7637_v16  ;;  %v7663_v56 = vcombine.low %v13544_v26, %v7644_v48  ;;  %v7664_v1 = vcombine.high %v13544_v26, %v7644_v48 }
 0x75c   : > { %v7365_v54 = vrot.slane %v7357_v46, %v13472_v32  ;;  %v7372_v21 = vrot.slane %v7358_v52, %v13472_v32  ;;  %v7665_v3 = vcombine.low %v13545_v60, %v7653_v2  ;;  %v7666_v40 = vcombine.high %v13545_v60, %v7653_v2 }
 0x75d   : > { %v7667_v32 = vcombine.low %v13546_v61, %v7660_v59  ;;  %v7668_v34 = vcombine.high %v13546_v61, %v7660_v59  ;;  %7684 = vst.msk [vmem:[%s12130_s7 + $0x78] sm:$0xff] %vm1812_vm0, %v7661_v10  ;;  %7700 = vst.msk [vmem:[%s12130_s7 + $0xf8] sm:$0xff] %vm1812_vm0, %v7662_v17  ;;  %v7393_v4 = vcombine.low %v7349_v6, %v7381_v37 }
 0x75e   : > { %7716 = vst.msk [vmem:[%s12130_s7 + $0x178] sm:$0xff] %vm1812_vm0, %v7663_v56  ;;  %7732 = vst.msk [vmem:[%s12130_s7 + $0x1f8] sm:$0xff] %vm1812_vm0, %v7664_v1  ;;  %v7389_v18 = vcombine.low %v7333_v38, %v7365_v54  ;;  %v7390_v36 = vcombine.high %v7333_v38, %v7365_v54  ;;  %v7391_v42 = vcombine.low %v13122_v55, %v7372_v21 }
 0x75f   : > { %v7392_v9 = vcombine.high %v13122_v55, %v7372_v21  ;;  %7748 = vst.msk [vmem:[%s12130_s7 + $0x278] sm:$0xff] %vm1812_vm0, %v7665_v3  ;;  %7764 = vst.msk [vmem:[%s12130_s7 + $0x2f8] sm:$0xff] %vm1812_vm0, %v7666_v40  ;;  %v7394_v13 = vcombine.high %v7349_v6, %v7381_v37  ;;  %v7395_v19 = vcombine.low %v7356_v7, %v7388_v53 }
 0x760   : > { %7780 = vst.msk [vmem:[%s12130_s7 + $0x378] sm:$0xff] %vm1812_vm0, %v7667_v32  ;;  %7796 = vst.msk [vmem:[%s12130_s7 + $0x3f8] sm:$0xff] %vm1812_vm0, %v7668_v34  ;;  %v7396_v15 = vcombine.high %v7356_v7, %v7388_v53 }
 0x761   : > { %7682 = vst.msk [vmem:[%s12130_s7 + $0x68] sm:$0xff] %vm1812_vm0, %v7389_v18  ;;  %7698 = vst.msk [vmem:[%s12130_s7 + $0xe8] sm:$0xff] %vm1812_vm0, %v7390_v36 }
 0x762   : > { %7714 = vst.msk [vmem:[%s12130_s7 + $0x168] sm:$0xff] %vm1812_vm0, %v7391_v42  ;;  %7730 = vst.msk [vmem:[%s12130_s7 + $0x1e8] sm:$0xff] %vm1812_vm0, %v7392_v9 }
 0x763   : > { %7746 = vst.msk [vmem:[%s12130_s7 + $0x268] sm:$0xff] %vm1812_vm0, %v7393_v4  ;;  %7762 = vst.msk [vmem:[%s12130_s7 + $0x2e8] sm:$0xff] %vm1812_vm0, %v7394_v13 }
 0x764   : > { %7778 = vst.msk [vmem:[%s12130_s7 + $0x368] sm:$0xff] %vm1812_vm0, %v7395_v19  ;;  %7794 = vst.msk [vmem:[%s12130_s7 + $0x3e8] sm:$0xff] %vm1812_vm0, %v7396_v15 }
 0x765   : > { %8941 = shalt.err (!%p8938_p5)
}
 0x766   : > { %s8942_s23 = scalar_lea.hbm %s13191_s24, 16384  ;;  %s8946_s30 = scalar_lea.hbm %s13269_s3, 32768 }
 0x767   : > { %p8943_p4 = scmp.ne.s32.totalorder %s13191_s24, %s8942_s23  ;;  %p8947_p12 = scmp.lt.u32.totalorder %s13191_s24, %s13269_s3 }
 0x768   : > { %p8948_p1 = scmp.lt.u32.totalorder %s8946_s30, %s8942_s23  ;;  %p8950_p8 = scmp.lt.u32.totalorder %s8942_s23, %s13191_s24 }
 0x769   : > { %p8944_p7 = pnand %p8943_p4, %p13547_p9 }
 0x76a   : > { %p8949_p3 = por %p8948_p1, %p8947_p12 }
 0x76b   : > { %p8945_p10 = pneg %p8944_p7 }
 0x76c   : > { %p8951_p11 = por %p8950_p8, %p8949_p3 }
 0x76e   : > { %p8952_p0 = pnand %p8951_p11, %p8945_p10 }
 0x770   : > { %8955 = shalt.err (!%p8952_p0)
}
 0x771   : > { %s9027_s7 = smov 128   ;;  %s9028_s18 = smov 8  }
 0x772   : > { %8822 = dma.vmem_to_hbm [thread:$0]  (%p13547_p9), %s13193_s19, 16384, %s13191_s24, %s7798_s6, %s9027_s7, %s9027_s7, %s9028_s18  }
 0x773 PF: > { %s7829_s15 = sand.u32 1, %s8990_s12   ;;  %p13548_p6 = scmp.ne.s32.totalorder %s13339_s27, 0 }
 0x774   : > { %p13549_p13 = scmp.ge.s32.totalorder %s9010_s17, 2  ;;  %s7830_s21 = scalar_lea.sflag [#allocation4], %s7829_s15 }
 0x776   : > { %p8829_p2 = pnand %p13549_p13, %p13548_p6 }
 0x778   : > { %8985 = dma.done.wait (!%p8829_p2), %s7830_s21, 16384  }
 0x779   : > { %8987 = vsyncadd (!%p8829_p2), %s7830_s21, 4294950912  ;;  %s19_s17 = sadd.s32 1, %s9010_s17   ;;  %s13550_s12 = smov %s8994_s13 }
 0x77a   : > { %p16_p5 = scmp.ge.s32.totalorder %s19_s17, 4   ;;  %s13551_s13 = smov %s8998_s14 }
 0x77b   : > { %s13552_s14 = smov %s9105_s26  ;;  %s13553_s15 = smov %s9006_s16 }
 0x77c   : > { %s13554_s16 = smov %s13556_s20  ;;  %18 = sbr.rel (!%p16_p5) target bundleno = 6 (0x6), region = 77 }
 0x783   :  { %7835 = vsyncpa [#allocation3], 1 }
 0x784   :  { %7837 = vsyncpa [#allocation3 + $0x1], 1 }
 0x785   :  { %7838 = vsyncpa [#allocation4], 1 }
 0x786   :  { %7840 = vsyncpa [#allocation4 + $0x1], 1 }

</bundles_post_ra>
